<compile_context>
chip_gen: v7x
topology: tpu7x:2x2x1
jax: 0.10.0
libtpu: 0.0.40
codegen_flags: <defaults>
</compile_context>

<pallas_src>
import functools

import jax
import jax.numpy as jnp
from jax.experimental import pallas as pl
from jax.experimental.pallas import tpu as pltpu


# ----------------------------------------------------------------------------
# Fully fused NIMA forward kernel (whole batch, one grid step).
# ----------------------------------------------------------------------------
def _nima_fused_kernel(p1_ref, w1_ref, w2_ref, wf1_ref, wf2_ref, wrd_ref,
                       b_ref, o_ref, pad2_ref, *, N, H, W, C1, C2, F1, OUT):
    H2, W2 = H // 2, W // 2          # after pool1
    H4, W4 = H2 // 2, W2 // 2        # after pool2
    m2 = H2 * W2 * N

    # ---- conv1: single im2col matmul (patch matrix prebuilt in wrapper) -----
    y1 = jnp.dot(p1_ref[...], w1_ref[...], preferred_element_type=jnp.float32)
    y1 = jnp.maximum(y1 + b_ref[0:1, 0:C1], 0.0)            # (H*W*N, C1)

    # ---- maxpool1 2x2 (leading-dim reshapes; (N, C) stay as the minor tile) -
    t = y1.reshape(H, W2, 2, N, C1)
    y1 = jnp.maximum(t[:, :, 0], t[:, :, 1])                # (H, W2, N, C1)
    t = y1.reshape(H2, 2, W2, N, C1)
    p1 = jnp.maximum(t[:, 0], t[:, 1])                      # (H2, W2, N, C1)

    # ---- zero ONLY the 1-element halo ring + store pooled map (bf16) --------
    zrow = jnp.zeros((1, W2 + 2, N, C1), jnp.bfloat16)
    zcol = jnp.zeros((H2, 1, N, C1), jnp.bfloat16)
    pad2_ref[0:1, :, :, :] = zrow
    pad2_ref[H2 + 1:H2 + 2, :, :, :] = zrow
    pad2_ref[1:H2 + 1, 0:1, :, :] = zcol
    pad2_ref[1:H2 + 1, W2 + 1:W2 + 2, :, :] = zcol
    pad2_ref[1:H2 + 1, 1:W2 + 1, :, :] = p1.astype(jnp.bfloat16)

    # ---- conv2: in-kernel im2col -> ONE (m2, 9*C1) x (9*C1, C2) matmul ------
    taps = [pad2_ref[kh:kh + H2, kw:kw + W2, :, :].reshape(m2, C1)
            for kh in range(3) for kw in range(3)]
    patches2 = jnp.concatenate(taps, axis=-1)               # (m2, 144) bf16
    y2 = jnp.dot(patches2, w2_ref[...], preferred_element_type=jnp.float32)
    y2 = jnp.maximum(y2 + b_ref[1:2, 0:C2], 0.0)            # (m2, C2)

    # ---- maxpool2 2x2 --------------------------------------------------------
    t = y2.reshape(H2, W4, 2, N, C2)
    y2 = jnp.maximum(t[:, :, 0], t[:, :, 1])                # (H2, W4, N, C2)
    t = y2.reshape(H4, 2, W4, N, C2)
    p2 = jnp.maximum(t[:, 0], t[:, 1])                      # (H4, W4, N, C2)

    # ---- fc1: lane-concat 16 pooled cells -> single (N, 512) x (512, F1) ----
    p2b = p2.astype(jnp.bfloat16).reshape(H4 * W4, N, C2)
    feat = jnp.concatenate([p2b[i] for i in range(H4 * W4)], axis=-1)  # (N,512)
    h1 = jnp.dot(feat, wf1_ref[...], preferred_element_type=jnp.float32)
    h1 = jnp.maximum(h1 + b_ref[2:3, 0:F1], 0.0)            # (N, F1)

    # ---- fc2 + rating-distribution head --------------------------------------
    # TODO(synk): nn.Dropout in the VGG classifier is identity at inference.
    h2 = jnp.dot(h1.astype(jnp.bfloat16), wf2_ref[...],
                 preferred_element_type=jnp.float32)
    h2 = jnp.maximum(h2 + b_ref[3:4, 0:F1], 0.0)            # (N, F1)
    logits = jnp.dot(h2.astype(jnp.bfloat16), wrd_ref[...],
                     preferred_element_type=jnp.float32) + b_ref[4:5, 0:OUT]

    # ---- softmax (exact divide so rows sum to 1 at f32 accuracy) ------------
    logits = logits - jnp.max(logits, axis=1, keepdims=True)
    e = jnp.exp(logits)
    o_ref[...] = e / jnp.sum(e, axis=1, keepdims=True)      # (N, OUT)


def _full_spec(arr):
    zeros = (0,) * arr.ndim
    return pl.BlockSpec(arr.shape, lambda i, _z=zeros: _z)


# ----------------------------------------------------------------------------
# NIMA model (baseline CNN + rating-distribution head + softmax).
# ----------------------------------------------------------------------------
def _uniform(key, shape, fan_in):
    bound = 1.0 / jnp.sqrt(jnp.float32(fan_in))
    return jax.random.uniform(key, shape, jnp.float32, -bound, bound)


class NIMAPallas:
    # TODO(synk): baseline is a scaled-down VGG-style CNN (not the full
    # 16-layer pretrained VGG16); weights are synthetic, deterministic.
    def __init__(self, key, out_features=10):
        ks = jax.random.split(key, 10)
        # conv block 1: 3 -> 16   (weights interpreted as (kh, kw, cin, cout))
        w_c1 = _uniform(ks[0], (3, 3, 3, 16), 3 * 3 * 3)
        b_c1 = _uniform(ks[1], (16,), 3 * 3 * 3)
        # conv block 2: 16 -> 32
        w_c2 = _uniform(ks[2], (3, 3, 16, 32), 3 * 3 * 16)
        b_c2 = _uniform(ks[3], (32,), 3 * 3 * 16)
        # classifier (VGG classifier with its last Linear removed)
        w_f1 = _uniform(ks[4], (32 * 4 * 4, 64), 32 * 4 * 4)
        b_f1 = _uniform(ks[5], (64,), 32 * 4 * 4)
        w_f2 = _uniform(ks[6], (64, 64), 64)
        b_f2 = _uniform(ks[7], (64,), 64)
        # rating-distribution head: 64 -> out_features
        w_rd = _uniform(ks[8], (64, out_features), 64)
        b_rd = _uniform(ks[9], (out_features,), 64)
        self.out_features = out_features

        # MXU operands stored as bf16 (f32 accumulation happens in-kernel).
        # im2col weight layouts: rows ordered (kh, kw, cin), cols = cout.
        self.w_c1 = w_c1.reshape(27, 16).astype(jnp.bfloat16)
        self.w_c2 = w_c2.reshape(144, 32).astype(jnp.bfloat16)
        # Permute fc1 rows ONCE at init: torch NCHW flatten index is
        # c*16 + h*4 + w; regroup into (h, w, c) order so the kernel's
        # per-cell lane concat needs no activation transpose.
        self.w_f1 = (w_f1.reshape(32, 4, 4, 64)
                     .transpose(1, 2, 0, 3)
                     .reshape(512, 64)
                     .astype(jnp.bfloat16))
        self.w_f2 = w_f2.astype(jnp.bfloat16)
        self.w_rd = w_rd.astype(jnp.bfloat16)

        # All 5 biases packed into a single f32 (8, 128) buffer: one DMA,
        # static row/lane slices inside the kernel.
        bp = jnp.zeros((8, 128), jnp.float32)
        bp = bp.at[0, :16].set(b_c1)
        bp = bp.at[1, :32].set(b_c2)
        bp = bp.at[2, :64].set(b_f1)
        bp = bp.at[3, :64].set(b_f2)
        bp = bp.at[4, :out_features].set(b_rd)
        self.b_pack = bp

    def __call__(self, x_nchw):
        # x_nchw: (N, C, H, W) float32, as in the PyTorch forward.
        N, C, H, W = x_nchw.shape
        out_f = self.out_features

        # Trace-time im2col for conv1 on the ~8 KB input: NCHW -> (H, W, N, C)
        # spatial-major, zero halo, 3x3 patch extraction, bf16 cast.
        xt = jnp.transpose(x_nchw, (2, 3, 0, 1))
        xp = jnp.pad(xt, ((1, 1), (1, 1), (0, 0), (0, 0)))
        taps = [xp[kh:kh + H, kw:kw + W]
                for kh in range(3) for kw in range(3)]
        patches1 = (jnp.concatenate(taps, axis=-1)
                    .reshape(H * W * N, 9 * C)
                    .astype(jnp.bfloat16))

        kern = functools.partial(_nima_fused_kernel,
                                 N=N, H=H, W=W, C1=16, C2=32, F1=64, OUT=out_f)
        args = (patches1, self.w_c1, self.w_c2, self.w_f1, self.w_f2,
                self.w_rd, self.b_pack)
        return pl.pallas_call(
            kern,
            out_shape=jax.ShapeDtypeStruct((N, out_f), jnp.float32),
            grid=(1,),
            in_specs=[_full_spec(a) for a in args],
            out_specs=pl.BlockSpec((N, out_f), lambda i: (0, 0)),
            scratch_shapes=[
                pltpu.VMEM((H // 2 + 2, W // 2 + 2, N, 16), jnp.bfloat16),
            ],
            compiler_params=pltpu.CompilerParams(
                dimension_semantics=("arbitrary",)),
        )(*args)


if __name__ == "__main__":
    key = jax.random.PRNGKey(0)
    k_param, k_data = jax.random.split(key)
    model = NIMAPallas(k_param, out_features=10)

    x = jax.random.normal(k_data, (2, 3, 16, 16), dtype=jnp.float32)  # NCHW
    fwd = jax.jit(model.__call__)
    out = jax.block_until_ready(fwd(x))

    assert out.shape == (2, 10), out.shape
    assert bool(jnp.all(jnp.isfinite(out)))
    assert bool(jnp.all(out >= 0.0))
    # exact softmax divide -> rows sum to 1 at f32 accuracy
    assert bool(jnp.allclose(jnp.sum(out, axis=1), 1.0, atol=1e-4))
    print("KERNEL_OK")
</pallas_src>

<mosaic_0001>
module attributes {stable_mosaic.version = 11 : i64} {
  func.func @_nima_fused_kernel(%arg0: i32, %arg1: memref<512x27xbf16, #tpu.memory_space<vmem>>, %arg2: memref<27x16xbf16, #tpu.memory_space<vmem>>, %arg3: memref<144x32xbf16, #tpu.memory_space<vmem>>, %arg4: memref<512x64xbf16, #tpu.memory_space<vmem>>, %arg5: memref<64x64xbf16, #tpu.memory_space<vmem>>, %arg6: memref<64x10xbf16, #tpu.memory_space<vmem>>, %arg7: memref<8x128xf32, #tpu.memory_space<vmem>>, %arg8: memref<2x10xf32, #tpu.memory_space<vmem>>, %arg9: memref<10x10x2x16xbf16, #tpu.memory_space<vmem>>) attributes {dimension_semantics = [#tpu.dimension_semantics<arbitrary>], iteration_bounds = array<i64: 1>, scalar_prefetch = 0 : i64, scratch_operands = 1 : i64, tpu.core_type = #tpu.core_type<tc>, window_params = [{pipeline_mode = #tpu.pipeline_mode<synchronous>, transform_indices = @transform_0, window_bounds = array<i64: 512, 27>}, {pipeline_mode = #tpu.pipeline_mode<synchronous>, transform_indices = @transform_1, window_bounds = array<i64: 27, 16>}, {pipeline_mode = #tpu.pipeline_mode<synchronous>, transform_indices = @transform_2, window_bounds = array<i64: 144, 32>}, {pipeline_mode = #tpu.pipeline_mode<synchronous>, transform_indices = @transform_3, window_bounds = array<i64: 512, 64>}, {pipeline_mode = #tpu.pipeline_mode<synchronous>, transform_indices = @transform_4, window_bounds = array<i64: 64, 64>}, {pipeline_mode = #tpu.pipeline_mode<synchronous>, transform_indices = @transform_5, window_bounds = array<i64: 64, 10>}, {pipeline_mode = #tpu.pipeline_mode<synchronous>, transform_indices = @transform_6, window_bounds = array<i64: 8, 128>}, {pipeline_mode = #tpu.pipeline_mode<synchronous>, transform_indices = @transform_7, window_bounds = array<i64: 2, 10>}]} {
    %c0 = arith.constant 0 : index
    %c0_0 = arith.constant 0 : index
    %0 = vector.load %arg1[%c0, %c0_0] : memref<512x27xbf16, #tpu.memory_space<vmem>>, vector<512x27xbf16>
    %c0_1 = arith.constant 0 : index
    %c0_2 = arith.constant 0 : index
    %1 = vector.load %arg2[%c0_1, %c0_2] : memref<27x16xbf16, #tpu.memory_space<vmem>>, vector<27x16xbf16>
    %cst = arith.constant dense<0.000000e+00> : vector<512x16xf32>
    %2 = tpu.matmul %0, %1, %cst {dimension_numbers = #tpu.dot_dimension_numbers<[1], [0], [0], [1], [0, 0, 1, 1], [], []>} : vector<512x27xbf16>, vector<27x16xbf16>, vector<512x16xf32> -> vector<512x16xf32>
    %c0_3 = arith.constant 0 : index
    %c0_4 = arith.constant 0 : index
    %3 = vector.load %arg7[%c0_3, %c0_4] : memref<8x128xf32, #tpu.memory_space<vmem>>, vector<1x16xf32>
    %4 = vector.broadcast %3 : vector<1x16xf32> to vector<512x16xf32>
    %5 = arith.addf %2, %4 : vector<512x16xf32>
    %cst_5 = arith.constant 0.000000e+00 : f32
    %6 = vector.broadcast %cst_5 : f32 to vector<512x16xf32>
    %7 = arith.maximumf %5, %6 : vector<512x16xf32>
    %8 = vector.shape_cast %7 : vector<512x16xf32> to vector<16x8x2x2x16xf32>
    %9 = vector.extract_strided_slice %8 {offsets = [0, 0, 0, 0, 0], sizes = [16, 8, 1, 2, 16], strides = [1, 1, 1, 1, 1]} : vector<16x8x2x2x16xf32> to vector<16x8x1x2x16xf32>
    %10 = vector.shape_cast %9 : vector<16x8x1x2x16xf32> to vector<16x8x2x16xf32>
    %11 = vector.extract_strided_slice %8 {offsets = [0, 0, 1, 0, 0], sizes = [16, 8, 1, 2, 16], strides = [1, 1, 1, 1, 1]} : vector<16x8x2x2x16xf32> to vector<16x8x1x2x16xf32>
    %12 = vector.shape_cast %11 : vector<16x8x1x2x16xf32> to vector<16x8x2x16xf32>
    %13 = arith.maximumf %10, %12 : vector<16x8x2x16xf32>
    %14 = vector.shape_cast %13 : vector<16x8x2x16xf32> to vector<8x2x8x2x16xf32>
    %15 = vector.extract_strided_slice %14 {offsets = [0, 0, 0, 0, 0], sizes = [8, 1, 8, 2, 16], strides = [1, 1, 1, 1, 1]} : vector<8x2x8x2x16xf32> to vector<8x1x8x2x16xf32>
    %16 = vector.shape_cast %15 : vector<8x1x8x2x16xf32> to vector<8x8x2x16xf32>
    %17 = vector.extract_strided_slice %14 {offsets = [0, 1, 0, 0, 0], sizes = [8, 1, 8, 2, 16], strides = [1, 1, 1, 1, 1]} : vector<8x2x8x2x16xf32> to vector<8x1x8x2x16xf32>
    %18 = vector.shape_cast %17 : vector<8x1x8x2x16xf32> to vector<8x8x2x16xf32>
    %19 = arith.maximumf %16, %18 : vector<8x8x2x16xf32>
    %cst_6 = arith.constant 0.000000e+00 : bf16
    %20 = vector.broadcast %cst_6 : bf16 to vector<1x10x2x16xbf16>
    %cst_7 = arith.constant 0.000000e+00 : bf16
    %21 = vector.broadcast %cst_7 : bf16 to vector<8x1x2x16xbf16>
    %c0_8 = arith.constant 0 : index
    %c0_9 = arith.constant 0 : index
    %c0_10 = arith.constant 0 : index
    %c0_11 = arith.constant 0 : index
    %22 = vector.load %arg9[%c0_8, %c0_9, %c0_10, %c0_11] : memref<10x10x2x16xbf16, #tpu.memory_space<vmem>>, vector<1x10x2x16xbf16>
    tpu.vector_store %arg9[%c0_8, %c0_9, %c0_10, %c0_11], %20 {strides = array<i32>} : memref<10x10x2x16xbf16, #tpu.memory_space<vmem>>, vector<1x10x2x16xbf16>,
    %c9 = arith.constant 9 : index
    %c0_12 = arith.constant 0 : index
    %c0_13 = arith.constant 0 : index
    %c0_14 = arith.constant 0 : index
    %23 = vector.load %arg9[%c9, %c0_12, %c0_13, %c0_14] : memref<10x10x2x16xbf16, #tpu.memory_space<vmem>>, vector<1x10x2x16xbf16>
    tpu.vector_store %arg9[%c9, %c0_12, %c0_13, %c0_14], %20 {strides = array<i32>} : memref<10x10x2x16xbf16, #tpu.memory_space<vmem>>, vector<1x10x2x16xbf16>,
    %c1 = arith.constant 1 : index
    %c0_15 = arith.constant 0 : index
    %c0_16 = arith.constant 0 : index
    %c0_17 = arith.constant 0 : index
    %24 = vector.load %arg9[%c1, %c0_15, %c0_16, %c0_17] : memref<10x10x2x16xbf16, #tpu.memory_space<vmem>>, vector<8x1x2x16xbf16>
    tpu.vector_store %arg9[%c1, %c0_15, %c0_16, %c0_17], %21 {strides = array<i32>} : memref<10x10x2x16xbf16, #tpu.memory_space<vmem>>, vector<8x1x2x16xbf16>,
    %c1_18 = arith.constant 1 : index
    %c9_19 = arith.constant 9 : index
    %c0_20 = arith.constant 0 : index
    %c0_21 = arith.constant 0 : index
    %25 = vector.load %arg9[%c1_18, %c9_19, %c0_20, %c0_21] : memref<10x10x2x16xbf16, #tpu.memory_space<vmem>>, vector<8x1x2x16xbf16>
    tpu.vector_store %arg9[%c1_18, %c9_19, %c0_20, %c0_21], %21 {strides = array<i32>} : memref<10x10x2x16xbf16, #tpu.memory_space<vmem>>, vector<8x1x2x16xbf16>,
    %26 = arith.truncf %19 : vector<8x8x2x16xf32> to vector<8x8x2x16xbf16>
    %c1_22 = arith.constant 1 : index
    %c1_23 = arith.constant 1 : index
    %c0_24 = arith.constant 0 : index
    %c0_25 = arith.constant 0 : index
    %27 = vector.load %arg9[%c1_22, %c1_23, %c0_24, %c0_25] : memref<10x10x2x16xbf16, #tpu.memory_space<vmem>>, vector<8x8x2x16xbf16>
    tpu.vector_store %arg9[%c1_22, %c1_23, %c0_24, %c0_25], %26 {strides = array<i32>} : memref<10x10x2x16xbf16, #tpu.memory_space<vmem>>, vector<8x8x2x16xbf16>,
    %c0_26 = arith.constant 0 : index
    %c0_27 = arith.constant 0 : index
    %c0_28 = arith.constant 0 : index
    %c0_29 = arith.constant 0 : index
    %28 = vector.load %arg9[%c0_26, %c0_27, %c0_28, %c0_29] : memref<10x10x2x16xbf16, #tpu.memory_space<vmem>>, vector<8x8x2x16xbf16>
    %29 = vector.shape_cast %28 : vector<8x8x2x16xbf16> to vector<128x16xbf16>
    %c0_30 = arith.constant 0 : index
    %c1_31 = arith.constant 1 : index
    %c0_32 = arith.constant 0 : index
    %c0_33 = arith.constant 0 : index
    %30 = vector.load %arg9[%c0_30, %c1_31, %c0_32, %c0_33] : memref<10x10x2x16xbf16, #tpu.memory_space<vmem>>, vector<8x8x2x16xbf16>
    %31 = vector.shape_cast %30 : vector<8x8x2x16xbf16> to vector<128x16xbf16>
    %c0_34 = arith.constant 0 : index
    %c2 = arith.constant 2 : index
    %c0_35 = arith.constant 0 : index
    %c0_36 = arith.constant 0 : index
    %32 = vector.load %arg9[%c0_34, %c2, %c0_35, %c0_36] : memref<10x10x2x16xbf16, #tpu.memory_space<vmem>>, vector<8x8x2x16xbf16>
    %33 = vector.shape_cast %32 : vector<8x8x2x16xbf16> to vector<128x16xbf16>
    %c1_37 = arith.constant 1 : index
    %c0_38 = arith.constant 0 : index
    %c0_39 = arith.constant 0 : index
    %c0_40 = arith.constant 0 : index
    %34 = vector.load %arg9[%c1_37, %c0_38, %c0_39, %c0_40] : memref<10x10x2x16xbf16, #tpu.memory_space<vmem>>, vector<8x8x2x16xbf16>
    %35 = vector.shape_cast %34 : vector<8x8x2x16xbf16> to vector<128x16xbf16>
    %c1_41 = arith.constant 1 : index
    %c1_42 = arith.constant 1 : index
    %c0_43 = arith.constant 0 : index
    %c0_44 = arith.constant 0 : index
    %36 = vector.load %arg9[%c1_41, %c1_42, %c0_43, %c0_44] : memref<10x10x2x16xbf16, #tpu.memory_space<vmem>>, vector<8x8x2x16xbf16>
    %37 = vector.shape_cast %36 : vector<8x8x2x16xbf16> to vector<128x16xbf16>
    %c1_45 = arith.constant 1 : index
    %c2_46 = arith.constant 2 : index
    %c0_47 = arith.constant 0 : index
    %c0_48 = arith.constant 0 : index
    %38 = vector.load %arg9[%c1_45, %c2_46, %c0_47, %c0_48] : memref<10x10x2x16xbf16, #tpu.memory_space<vmem>>, vector<8x8x2x16xbf16>
    %39 = vector.shape_cast %38 : vector<8x8x2x16xbf16> to vector<128x16xbf16>
    %c2_49 = arith.constant 2 : index
    %c0_50 = arith.constant 0 : index
    %c0_51 = arith.constant 0 : index
    %c0_52 = arith.constant 0 : index
    %40 = vector.load %arg9[%c2_49, %c0_50, %c0_51, %c0_52] : memref<10x10x2x16xbf16, #tpu.memory_space<vmem>>, vector<8x8x2x16xbf16>
    %41 = vector.shape_cast %40 : vector<8x8x2x16xbf16> to vector<128x16xbf16>
    %c2_53 = arith.constant 2 : index
    %c1_54 = arith.constant 1 : index
    %c0_55 = arith.constant 0 : index
    %c0_56 = arith.constant 0 : index
    %42 = vector.load %arg9[%c2_53, %c1_54, %c0_55, %c0_56] : memref<10x10x2x16xbf16, #tpu.memory_space<vmem>>, vector<8x8x2x16xbf16>
    %43 = vector.shape_cast %42 : vector<8x8x2x16xbf16> to vector<128x16xbf16>
    %c2_57 = arith.constant 2 : index
    %c2_58 = arith.constant 2 : index
    %c0_59 = arith.constant 0 : index
    %c0_60 = arith.constant 0 : index
    %44 = vector.load %arg9[%c2_57, %c2_58, %c0_59, %c0_60] : memref<10x10x2x16xbf16, #tpu.memory_space<vmem>>, vector<8x8x2x16xbf16>
    %45 = vector.shape_cast %44 : vector<8x8x2x16xbf16> to vector<128x16xbf16>
    %46 = tpu.concatenate %29, %31, %33, %35, %37, %39, %41, %43, %45 in 1 : vector<128x16xbf16>, vector<128x16xbf16>, vector<128x16xbf16>, vector<128x16xbf16>, vector<128x16xbf16>, vector<128x16xbf16>, vector<128x16xbf16>, vector<128x16xbf16>, vector<128x16xbf16> -> vector<128x144xbf16>
    %c0_61 = arith.constant 0 : index
    %c0_62 = arith.constant 0 : index
    %47 = vector.load %arg3[%c0_61, %c0_62] : memref<144x32xbf16, #tpu.memory_space<vmem>>, vector<144x32xbf16>
    %cst_63 = arith.constant dense<0.000000e+00> : vector<128x32xf32>
    %48 = tpu.matmul %46, %47, %cst_63 {dimension_numbers = #tpu.dot_dimension_numbers<[1], [0], [0], [1], [0, 0, 1, 1], [], []>} : vector<128x144xbf16>, vector<144x32xbf16>, vector<128x32xf32> -> vector<128x32xf32>
    %c1_64 = arith.constant 1 : index
    %c0_65 = arith.constant 0 : index
    %49 = vector.load %arg7[%c1_64, %c0_65] : memref<8x128xf32, #tpu.memory_space<vmem>>, vector<1x32xf32>
    %50 = vector.broadcast %49 : vector<1x32xf32> to vector<128x32xf32>
    %51 = arith.addf %48, %50 : vector<128x32xf32>
    %cst_66 = arith.constant 0.000000e+00 : f32
    %52 = vector.broadcast %cst_66 : f32 to vector<128x32xf32>
    %53 = arith.maximumf %51, %52 : vector<128x32xf32>
    %54 = vector.shape_cast %53 : vector<128x32xf32> to vector<8x4x2x2x32xf32>
    %55 = vector.extract_strided_slice %54 {offsets = [0, 0, 0, 0, 0], sizes = [8, 4, 1, 2, 32], strides = [1, 1, 1, 1, 1]} : vector<8x4x2x2x32xf32> to vector<8x4x1x2x32xf32>
    %56 = vector.shape_cast %55 : vector<8x4x1x2x32xf32> to vector<8x4x2x32xf32>
    %57 = vector.extract_strided_slice %54 {offsets = [0, 0, 1, 0, 0], sizes = [8, 4, 1, 2, 32], strides = [1, 1, 1, 1, 1]} : vector<8x4x2x2x32xf32> to vector<8x4x1x2x32xf32>
    %58 = vector.shape_cast %57 : vector<8x4x1x2x32xf32> to vector<8x4x2x32xf32>
    %59 = arith.maximumf %56, %58 : vector<8x4x2x32xf32>
    %60 = vector.shape_cast %59 : vector<8x4x2x32xf32> to vector<4x2x4x2x32xf32>
    %61 = vector.extract_strided_slice %60 {offsets = [0, 0, 0, 0, 0], sizes = [4, 1, 4, 2, 32], strides = [1, 1, 1, 1, 1]} : vector<4x2x4x2x32xf32> to vector<4x1x4x2x32xf32>
    %62 = vector.shape_cast %61 : vector<4x1x4x2x32xf32> to vector<4x4x2x32xf32>
    %63 = vector.extract_strided_slice %60 {offsets = [0, 1, 0, 0, 0], sizes = [4, 1, 4, 2, 32], strides = [1, 1, 1, 1, 1]} : vector<4x2x4x2x32xf32> to vector<4x1x4x2x32xf32>
    %64 = vector.shape_cast %63 : vector<4x1x4x2x32xf32> to vector<4x4x2x32xf32>
    %65 = arith.maximumf %62, %64 : vector<4x4x2x32xf32>
    %66 = arith.truncf %65 : vector<4x4x2x32xf32> to vector<4x4x2x32xbf16>
    %67 = vector.shape_cast %66 : vector<4x4x2x32xbf16> to vector<16x2x32xbf16>
    %68 = vector.extract_strided_slice %67 {offsets = [0, 0, 0], sizes = [1, 2, 32], strides = [1, 1, 1]} : vector<16x2x32xbf16> to vector<1x2x32xbf16>
    %69 = vector.shape_cast %68 : vector<1x2x32xbf16> to vector<2x32xbf16>
    %70 = vector.extract_strided_slice %67 {offsets = [1, 0, 0], sizes = [1, 2, 32], strides = [1, 1, 1]} : vector<16x2x32xbf16> to vector<1x2x32xbf16>
    %71 = vector.shape_cast %70 : vector<1x2x32xbf16> to vector<2x32xbf16>
    %72 = vector.extract_strided_slice %67 {offsets = [2, 0, 0], sizes = [1, 2, 32], strides = [1, 1, 1]} : vector<16x2x32xbf16> to vector<1x2x32xbf16>
    %73 = vector.shape_cast %72 : vector<1x2x32xbf16> to vector<2x32xbf16>
    %74 = vector.extract_strided_slice %67 {offsets = [3, 0, 0], sizes = [1, 2, 32], strides = [1, 1, 1]} : vector<16x2x32xbf16> to vector<1x2x32xbf16>
    %75 = vector.shape_cast %74 : vector<1x2x32xbf16> to vector<2x32xbf16>
    %76 = vector.extract_strided_slice %67 {offsets = [4, 0, 0], sizes = [1, 2, 32], strides = [1, 1, 1]} : vector<16x2x32xbf16> to vector<1x2x32xbf16>
    %77 = vector.shape_cast %76 : vector<1x2x32xbf16> to vector<2x32xbf16>
    %78 = vector.extract_strided_slice %67 {offsets = [5, 0, 0], sizes = [1, 2, 32], strides = [1, 1, 1]} : vector<16x2x32xbf16> to vector<1x2x32xbf16>
    %79 = vector.shape_cast %78 : vector<1x2x32xbf16> to vector<2x32xbf16>
    %80 = vector.extract_strided_slice %67 {offsets = [6, 0, 0], sizes = [1, 2, 32], strides = [1, 1, 1]} : vector<16x2x32xbf16> to vector<1x2x32xbf16>
    %81 = vector.shape_cast %80 : vector<1x2x32xbf16> to vector<2x32xbf16>
    %82 = vector.extract_strided_slice %67 {offsets = [7, 0, 0], sizes = [1, 2, 32], strides = [1, 1, 1]} : vector<16x2x32xbf16> to vector<1x2x32xbf16>
    %83 = vector.shape_cast %82 : vector<1x2x32xbf16> to vector<2x32xbf16>
    %84 = vector.extract_strided_slice %67 {offsets = [8, 0, 0], sizes = [1, 2, 32], strides = [1, 1, 1]} : vector<16x2x32xbf16> to vector<1x2x32xbf16>
    %85 = vector.shape_cast %84 : vector<1x2x32xbf16> to vector<2x32xbf16>
    %86 = vector.extract_strided_slice %67 {offsets = [9, 0, 0], sizes = [1, 2, 32], strides = [1, 1, 1]} : vector<16x2x32xbf16> to vector<1x2x32xbf16>
    %87 = vector.shape_cast %86 : vector<1x2x32xbf16> to vector<2x32xbf16>
    %88 = vector.extract_strided_slice %67 {offsets = [10, 0, 0], sizes = [1, 2, 32], strides = [1, 1, 1]} : vector<16x2x32xbf16> to vector<1x2x32xbf16>
    %89 = vector.shape_cast %88 : vector<1x2x32xbf16> to vector<2x32xbf16>
    %90 = vector.extract_strided_slice %67 {offsets = [11, 0, 0], sizes = [1, 2, 32], strides = [1, 1, 1]} : vector<16x2x32xbf16> to vector<1x2x32xbf16>
    %91 = vector.shape_cast %90 : vector<1x2x32xbf16> to vector<2x32xbf16>
    %92 = vector.extract_strided_slice %67 {offsets = [12, 0, 0], sizes = [1, 2, 32], strides = [1, 1, 1]} : vector<16x2x32xbf16> to vector<1x2x32xbf16>
    %93 = vector.shape_cast %92 : vector<1x2x32xbf16> to vector<2x32xbf16>
    %94 = vector.extract_strided_slice %67 {offsets = [13, 0, 0], sizes = [1, 2, 32], strides = [1, 1, 1]} : vector<16x2x32xbf16> to vector<1x2x32xbf16>
    %95 = vector.shape_cast %94 : vector<1x2x32xbf16> to vector<2x32xbf16>
    %96 = vector.extract_strided_slice %67 {offsets = [14, 0, 0], sizes = [1, 2, 32], strides = [1, 1, 1]} : vector<16x2x32xbf16> to vector<1x2x32xbf16>
    %97 = vector.shape_cast %96 : vector<1x2x32xbf16> to vector<2x32xbf16>
    %98 = vector.extract_strided_slice %67 {offsets = [15, 0, 0], sizes = [1, 2, 32], strides = [1, 1, 1]} : vector<16x2x32xbf16> to vector<1x2x32xbf16>
    %99 = vector.shape_cast %98 : vector<1x2x32xbf16> to vector<2x32xbf16>
    %100 = tpu.concatenate %69, %71, %73, %75, %77, %79, %81, %83, %85, %87, %89, %91, %93, %95, %97, %99 in 1 : vector<2x32xbf16>, vector<2x32xbf16>, vector<2x32xbf16>, vector<2x32xbf16>, vector<2x32xbf16>, vector<2x32xbf16>, vector<2x32xbf16>, vector<2x32xbf16>, vector<2x32xbf16>, vector<2x32xbf16>, vector<2x32xbf16>, vector<2x32xbf16>, vector<2x32xbf16>, vector<2x32xbf16>, vector<2x32xbf16>, vector<2x32xbf16> -> vector<2x512xbf16>
    %c0_67 = arith.constant 0 : index
    %c0_68 = arith.constant 0 : index
    %101 = vector.load %arg4[%c0_67, %c0_68] : memref<512x64xbf16, #tpu.memory_space<vmem>>, vector<512x64xbf16>
    %cst_69 = arith.constant dense<0.000000e+00> : vector<2x64xf32>
    %102 = tpu.matmul %100, %101, %cst_69 {dimension_numbers = #tpu.dot_dimension_numbers<[1], [0], [0], [1], [0, 0, 1, 1], [], []>} : vector<2x512xbf16>, vector<512x64xbf16>, vector<2x64xf32> -> vector<2x64xf32>
    %c2_70 = arith.constant 2 : index
    %c0_71 = arith.constant 0 : index
    %103 = vector.load %arg7[%c2_70, %c0_71] : memref<8x128xf32, #tpu.memory_space<vmem>>, vector<1x64xf32>
    %104 = vector.broadcast %103 : vector<1x64xf32> to vector<2x64xf32>
    %105 = arith.addf %102, %104 : vector<2x64xf32>
    %cst_72 = arith.constant 0.000000e+00 : f32
    %106 = vector.broadcast %cst_72 : f32 to vector<2x64xf32>
    %107 = arith.maximumf %105, %106 : vector<2x64xf32>
    %108 = arith.truncf %107 : vector<2x64xf32> to vector<2x64xbf16>
    %c0_73 = arith.constant 0 : index
    %c0_74 = arith.constant 0 : index
    %109 = vector.load %arg5[%c0_73, %c0_74] : memref<64x64xbf16, #tpu.memory_space<vmem>>, vector<64x64xbf16>
    %cst_75 = arith.constant dense<0.000000e+00> : vector<2x64xf32>
    %110 = tpu.matmul %108, %109, %cst_75 {dimension_numbers = #tpu.dot_dimension_numbers<[1], [0], [0], [1], [0, 0, 1, 1], [], []>} : vector<2x64xbf16>, vector<64x64xbf16>, vector<2x64xf32> -> vector<2x64xf32>
    %c3 = arith.constant 3 : index
    %c0_76 = arith.constant 0 : index
    %111 = vector.load %arg7[%c3, %c0_76] : memref<8x128xf32, #tpu.memory_space<vmem>>, vector<1x64xf32>
    %112 = vector.broadcast %111 : vector<1x64xf32> to vector<2x64xf32>
    %113 = arith.addf %110, %112 : vector<2x64xf32>
    %cst_77 = arith.constant 0.000000e+00 : f32
    %114 = vector.broadcast %cst_77 : f32 to vector<2x64xf32>
    %115 = arith.maximumf %113, %114 : vector<2x64xf32>
    %116 = arith.truncf %115 : vector<2x64xf32> to vector<2x64xbf16>
    %c0_78 = arith.constant 0 : index
    %c0_79 = arith.constant 0 : index
    %117 = vector.load %arg6[%c0_78, %c0_79] : memref<64x10xbf16, #tpu.memory_space<vmem>>, vector<64x10xbf16>
    %cst_80 = arith.constant dense<0.000000e+00> : vector<2x10xf32>
    %118 = tpu.matmul %116, %117, %cst_80 {dimension_numbers = #tpu.dot_dimension_numbers<[1], [0], [0], [1], [0, 0, 1, 1], [], []>} : vector<2x64xbf16>, vector<64x10xbf16>, vector<2x10xf32> -> vector<2x10xf32>
    %c4 = arith.constant 4 : index
    %c0_81 = arith.constant 0 : index
    %119 = vector.load %arg7[%c4, %c0_81] : memref<8x128xf32, #tpu.memory_space<vmem>>, vector<1x10xf32>
    %120 = vector.broadcast %119 : vector<1x10xf32> to vector<2x10xf32>
    %121 = arith.addf %118, %120 : vector<2x10xf32>
    %cst_82 = arith.constant dense<0xFF800000> : vector<2xf32>
    %122 = vector.multi_reduction <maximumf>, %121, %cst_82 [1] : vector<2x10xf32> to vector<2xf32>
    %123 = vector.shape_cast %122 : vector<2xf32> to vector<2x1xf32>
    %124 = vector.broadcast %123 : vector<2x1xf32> to vector<2x10xf32>
    %125 = arith.subf %121, %124 : vector<2x10xf32>
    %126 = math.exp %125 : vector<2x10xf32>
    %cst_83 = arith.constant dense<0.000000e+00> : vector<2xf32>
    %127 = vector.multi_reduction <add>, %126, %cst_83 [1] : vector<2x10xf32> to vector<2xf32>
    %128 = vector.shape_cast %127 : vector<2xf32> to vector<2x1xf32>
    %129 = vector.broadcast %128 : vector<2x1xf32> to vector<2x10xf32>
    %130 = arith.divf %126, %129 : vector<2x10xf32>
    %c0_84 = arith.constant 0 : index
    %c0_85 = arith.constant 0 : index
    %131 = vector.load %arg8[%c0_84, %c0_85] : memref<2x10xf32, #tpu.memory_space<vmem>>, vector<2x10xf32>
    tpu.vector_store %arg8[%c0_84, %c0_85], %130 {strides = array<i32>} : memref<2x10xf32, #tpu.memory_space<vmem>>, vector<2x10xf32>,
    return
  }
  func.func @transform_0(%arg0: i32) -> (i32, i32) {
    %c0_i32 = arith.constant 0 : i32
    %c0_i32_0 = arith.constant 0 : i32
    %c0_i32_1 = arith.constant 0 : i32
    return %c0_i32, %c0_i32_0 : i32, i32
  }
  func.func @transform_1(%arg0: i32) -> (i32, i32) {
    %c0_i32 = arith.constant 0 : i32
    %c0_i32_0 = arith.constant 0 : i32
    %c0_i32_1 = arith.constant 0 : i32
    return %c0_i32, %c0_i32_0 : i32, i32
  }
  func.func @transform_2(%arg0: i32) -> (i32, i32) {
    %c0_i32 = arith.constant 0 : i32
    %c0_i32_0 = arith.constant 0 : i32
    %c0_i32_1 = arith.constant 0 : i32
    return %c0_i32, %c0_i32_0 : i32, i32
  }
  func.func @transform_3(%arg0: i32) -> (i32, i32) {
    %c0_i32 = arith.constant 0 : i32
    %c0_i32_0 = arith.constant 0 : i32
    %c0_i32_1 = arith.constant 0 : i32
    return %c0_i32, %c0_i32_0 : i32, i32
  }
  func.func @transform_4(%arg0: i32) -> (i32, i32) {
    %c0_i32 = arith.constant 0 : i32
    %c0_i32_0 = arith.constant 0 : i32
    %c0_i32_1 = arith.constant 0 : i32
    return %c0_i32, %c0_i32_0 : i32, i32
  }
  func.func @transform_5(%arg0: i32) -> (i32, i32) {
    %c0_i32 = arith.constant 0 : i32
    %c0_i32_0 = arith.constant 0 : i32
    %c0_i32_1 = arith.constant 0 : i32
    return %c0_i32, %c0_i32_0 : i32, i32
  }
  func.func @transform_6(%arg0: i32) -> (i32, i32) {
    %c0_i32 = arith.constant 0 : i32
    %c0_i32_0 = arith.constant 0 : i32
    %c0_i32_1 = arith.constant 0 : i32
    return %c0_i32, %c0_i32_0 : i32, i32
  }
  func.func @transform_7(%arg0: i32) -> (i32, i32) {
    %c0_i32 = arith.constant 0 : i32
    %c0_i32_0 = arith.constant 0 : i32
    %c0_i32_1 = arith.constant 0 : i32
    return %c0_i32, %c0_i32_0 : i32, i32
  }
}

</mosaic_0001>

<bundles_post_ra>
// kernel: a_call__.1
= control target key start
LH: loop header
LB: loop body
LE: loop exit
PB: predicated region body
PF: predicated region fallthrough
CT: control target
= control target key end

     0   :  { %vm369_vm0 = vcmask 1044480   ;;  %vm370_vm1 = vcmask 1045504   ;;  %v9098_v2 = vmov 65535   ;;  %vm272_vm2 = vcmask 220160   ;;  %s10839_s0 = inlined_call_operand.vmem [shape: bf16[512,27], index: 0, kind: input, shape index: {}]   ;;  %s10840_s1 = inlined_call_operand.vmem [shape: bf16[27,16], index: 1, kind: input, shape index: {}]   ;;  %s10841_s2 = inlined_call_operand.vmem [shape: bf16[144,32], index: 2, kind: input, shape index: {}]   ;;  %s10842_s3 = inlined_call_operand.vmem [shape: bf16[512,64], index: 3, kind: input, shape index: {}]   ;;  %s10843_s4 = inlined_call_operand.vmem [shape: bf16[64,64], index: 4, kind: input, shape index: {}]   ;;  %s10844_s5 = inlined_call_operand.vmem [shape: bf16[64,10], index: 5, kind: input, shape index: {}]   ;;  %s10845_s6 = inlined_call_operand.vmem [shape: f32[8,128], index: 6, kind: input, shape index: {}]   ;;  %s10846_s7 = inlined_call_operand.hbm [shape: f32[2,10], index: 7, kind: output, shape index: {}]  }
   0x1   :  { %v8985_v0 = vld [vmem:[%s10840_s1] sm:$0xff]   ;;  %v8986_v1 = vld [vmem:[%s10840_s1 + $0x8] sm:$0x3f]   ;;  %v371_v3 = vsel %vm369_vm0, 4294967295, %v9098_v2  ;;  %v8989_v8 = vld [vmem:[%s10839_s0 + $0x10] sm:$0xff]  }
   0x2   :  { %8879 = vmatprep.subr.bf16.mxu0 %v8985_v0  ;;  %v8987_v4 = vld [vmem:[%s10839_s0] sm:$0xff]   ;;  %v372_v5 = vsel %vm370_vm1, %v371_v3, 0  ;;  %v8988_v7 = vld [vmem:[%s10839_s0 + $0x8] sm:$0xff]   ;;  %v8990_v9 = vld [vmem:[%s10839_s0 + $0x18] sm:$0xff]  }
   0x3   :  { %8880 = vmatpush3.bf16.msra.mxu0 %v8985_v0  ;;  %v374_v6 = vand.u32 %v8986_v1, %v372_v5  ;;  %8883 = vmatprep.mubr.msk.bf16.mxu0 %vm272_vm2, %v8987_v4  ;;  %v8991_v10 = vld [vmem:[%s10839_s0 + $0x20] sm:$0xff]   ;;  %v8992_v11 = vld [vmem:[%s10839_s0 + $0x28] sm:$0xff]   ;;  %v8993_v12 = vld [vmem:[%s10839_s0 + $0x30] sm:$0xff]  }
   0x4   :  { %v8994_v13 = vld [vmem:[%s10839_s0 + $0x38] sm:$0xff]   ;;  %v8995_v14 = vld [vmem:[%s10839_s0 + $0x40] sm:$0xff]   ;;  %v8996_v15 = vld [vmem:[%s10839_s0 + $0x48] sm:$0xff]  }
   0x5   :  { %8881 = vmatprep.subr.bf16.mxu0 %v374_v6  ;;  %v8997_v16 = vld [vmem:[%s10839_s0 + $0x50] sm:$0xff]   ;;  %v8998_v17 = vld [vmem:[%s10839_s0 + $0x58] sm:$0xff]   ;;  %v8999_v18 = vld [vmem:[%s10839_s0 + $0x60] sm:$0xff]  }
   0x6   :  { %v9000_v19 = vld [vmem:[%s10839_s0 + $0x68] sm:$0xff]   ;;  %v9001_v20 = vld [vmem:[%s10839_s0 + $0x70] sm:$0xff]   ;;  %v9002_v21 = vld [vmem:[%s10839_s0 + $0x78] sm:$0xff]  }
   0x7   :  { %8882 = vmatpush3.bf16.msra.mxu0 %v374_v6  ;;  %v9003_v22 = vld [vmem:[%s10839_s0 + $0x80] sm:$0xff]  }
   0xa   :  { %8884 = vmatmul.mubr.msk.bf16.vlgmr.msra.gmra.mrb[0].mxu0 %vm272_vm2, %v8988_v7 }
   0xb   :  { %8887 = vmatprep.mubr.msk.bf16.mxu0 %vm272_vm2, %v8989_v8 }
  0x12   :  { %8888 = vmatmul.mubr.msk.bf16.gmra.mrb[4].mxu0 %vm272_vm2, %v8990_v9 }
  0x13   :  { %8891 = vmatprep.mubr.msk.bf16.mxu0 %vm272_vm2, %v8991_v10 }
  0x1a   :  { %8892 = vmatmul.mubr.msk.bf16.gmra.mrb[8].mxu0 %vm272_vm2, %v8992_v11 }
  0x1b   :  { %8895 = vmatprep.mubr.msk.bf16.mxu0 %vm272_vm2, %v8993_v12 }
  0x22   :  { %8896 = vmatmul.mubr.msk.bf16.gmra.mrb[12].mxu0 %vm272_vm2, %v8994_v13 }
  0x23   :  { %8899 = vmatprep.mubr.msk.bf16.mxu0 %vm272_vm2, %v8995_v14 }
  0x2a   :  { %8900 = vmatmul.mubr.msk.bf16.gmra.mrb[16].mxu0 %vm272_vm2, %v8996_v15 }
  0x2b   :  { %8903 = vmatprep.mubr.msk.bf16.mxu0 %vm272_vm2, %v8997_v16 }
  0x32   :  { %8904 = vmatmul.mubr.msk.bf16.gmra.mrb[20].mxu0 %vm272_vm2, %v8998_v17 }
  0x33   :  { %8907 = vmatprep.mubr.msk.bf16.mxu0 %vm272_vm2, %v8999_v18 }
  0x3a   :  { %8908 = vmatmul.mubr.msk.bf16.gmra.mrb[24].mxu0 %vm272_vm2, %v9000_v19 }
  0x3b   :  { %8911 = vmatprep.mubr.msk.bf16.mxu0 %vm272_vm2, %v9001_v20 }
  0x42   :  { %8912 = vmatmul.mubr.msk.bf16.gmra.mrb[28].mxu0 %vm272_vm2, %v9002_v21 }
  0x43   :  { %12 = vsyncpa [#allocation4], 0  ;;  %8915 = vmatprep.mubr.msk.bf16.mxu0 %vm272_vm2, %v9003_v22  ;;  %v9004_v23 = vld [vmem:[%s10839_s0 + $0x88] sm:$0xff]   ;;  %v9005_v24 = vld [vmem:[%s10839_s0 + $0x90] sm:$0xff]   ;;  %vm2329_vm3 = vcmask 122880   ;;  %v9099_v38 = vmov 0   ;;  %v797_v39 = vlaneseq }
  0x44   :  { %v9006_v25 = vld [vmem:[%s10839_s0 + $0x98] sm:$0xff]   ;;  %v9007_v26 = vld [vmem:[%s10839_s0 + $0xa0] sm:$0xff]   ;;  %v9008_v27 = vld [vmem:[%s10839_s0 + $0xa8] sm:$0xff]   ;;  %2331 = vst.msk [vmem:[#allocation2 + $0x1] sm:$0x1] %vm2329_vm3, %v9099_v38  ;;  %7532 = vmatprep.subr.bf16.mxu1 %v9099_v38  ;;  %s9102_s20 = smov 32  }
  0x45   :  { %v9009_v28 = vld [vmem:[%s10839_s0 + $0xb0] sm:$0xff]   ;;  %v9010_v29 = vld [vmem:[%s10839_s0 + $0xb8] sm:$0xff]   ;;  %v9011_v30 = vld [vmem:[%s10839_s0 + $0xc0] sm:$0xff]   ;;  %2332 = vst.msk [vmem:[#allocation2 + $0x2] sm:$0x1] %vm2329_vm3, %v9099_v38  ;;  %v798_v42 = vshrl.u32 %v797_v39, 7 }
  0x46   :  { %v9012_v31 = vld [vmem:[%s10839_s0 + $0xc8] sm:$0xff]   ;;  %v9013_v32 = vld [vmem:[%s10839_s0 + $0xd0] sm:$0xff]   ;;  %v9014_v33 = vld [vmem:[%s10839_s0 + $0xd8] sm:$0xff]   ;;  %2333 = vst.msk [vmem:[#allocation2 + $0x3] sm:$0x1] %vm2329_vm3, %v9099_v38  ;;  %s9104_s23 = smov 80  }
  0x47   :  { %v9015_v34 = vld [vmem:[%s10839_s0 + $0xe0] sm:$0xff]   ;;  %v9016_v35 = vld [vmem:[%s10839_s0 + $0xe8] sm:$0xff]   ;;  %v9017_v36 = vld [vmem:[%s10839_s0 + $0xf0] sm:$0xff]   ;;  %2334 = vst.msk [vmem:[#allocation2 + $0x4] sm:$0x1] %vm2329_vm3, %v9099_v38  ;;  %s9105_s24 = smov 48  }
  0x48   :  { %v9018_v37 = vld [vmem:[%s10839_s0 + $0xf8] sm:$0xff]   ;;  %2335 = vst.msk [vmem:[#allocation2 + $0x5] sm:$0x1] %vm2329_vm3, %v9099_v38  ;;  %2336 = vst.msk [vmem:[#allocation2 + $0x6] sm:$0x1] %vm2329_vm3, %v9099_v38  ;;  %s9101_s0 = smov 16  }
  0x49   :  { %2337 = vst.msk [vmem:[#allocation2 + $0x7] sm:$0x1] %vm2329_vm3, %v9099_v38  ;;  %2338 = vst.msk [vmem:[#allocation2 + $0x8] sm:$0x1] %vm2329_vm3, %v9099_v38  ;;  %v9100_v40 = vmov 1966171168  }
  0x4a   :  { %8916 = vmatmul.mubr.msk.bf16.gmra.mrb[32].mxu0 %vm272_vm2, %v9004_v23  ;;  %2330 = vst.msk [vmem:[#allocation2] sm:$0x1] %vm2329_vm3, %v9099_v38  ;;  %2339 = vst.msk [vmem:[#allocation2 + $0x9] sm:$0x1] %vm2329_vm3, %v9099_v38  ;;  %v3149_v41 = vunpack.c.l.s4 %v9100_v40  ;;  %v9103_v23 = vmov 1983009808  }
  0x4b   :  { %8919 = vmatprep.mubr.msk.bf16.mxu0 %vm272_vm2, %v9005_v24  ;;  %2341 = vst.msk [vmem:[#allocation2 + $0x5a] sm:$0x1] %vm2329_vm3, %v9099_v38  ;;  %2342 = vst.msk [vmem:[#allocation2 + $0x5b] sm:$0x1] %vm2329_vm3, %v9099_v38  ;;  %v2563_v44 = vld [vmem:[#allocation2 + $0x1] sm:$0x1]  ;;  %v795_v24 = vunpack.c.l.s4 %v9103_v23 }
  0x4c   :  { %2343 = vst.msk [vmem:[#allocation2 + $0x5c] sm:$0x1] %vm2329_vm3, %v9099_v38  ;;  %2344 = vst.msk [vmem:[#allocation2 + $0x5d] sm:$0x1] %vm2329_vm3, %v9099_v38  ;;  %v3150_v43 = vunpack.c.0.s8 %v3149_v41  ;;  %v2564_v45 = vld [vmem:[#allocation2 + $0x2] sm:$0x1] }
  0x4d   :  { %2345 = vst.msk [vmem:[#allocation2 + $0x5e] sm:$0x1] %vm2329_vm3, %v9099_v38  ;;  %2346 = vst.msk [vmem:[#allocation2 + $0x5f] sm:$0x1] %vm2329_vm3, %v9099_v38  ;;  %v2565_v46 = vld [vmem:[#allocation2 + $0x3] sm:$0x1]  ;;  %v3600_v51 = vcombine.low %v2563_v44, %v2564_v45 }
  0x4e   :  { %2347 = vst.msk [vmem:[#allocation2 + $0x60] sm:$0x1] %vm2329_vm3, %v9099_v38  ;;  %2348 = vst.msk [vmem:[#allocation2 + $0x61] sm:$0x1] %vm2329_vm3, %v9099_v38  ;;  %v2566_v47 = vld [vmem:[#allocation2 + $0x4] sm:$0x1]  ;;  %v9359_v50 = vsub.s32 %v3150_v43, %v798_v42 }
  0x4f   :  { %2349 = vst.msk [vmem:[#allocation2 + $0x62] sm:$0x1] %vm2329_vm3, %v9099_v38  ;;  %2350 = vst.msk [vmem:[#allocation2 + $0x63] sm:$0x1] %vm2329_vm3, %v9099_v38  ;;  %v2567_v48 = vld [vmem:[#allocation2 + $0x5] sm:$0x1]  ;;  %v3601_v54 = vcombine.low %v2565_v46, %v2566_v47 }
  0x50   :  { %2352 = vst.msk [vmem:[#allocation2 + $0xa] sm:$0x1] %vm2329_vm3, %v9099_v38  ;;  %2353 = vst.msk [vmem:[#allocation2 + $0x14] sm:$0x1] %vm2329_vm3, %v9099_v38  ;;  %v2568_v49 = vld [vmem:[#allocation2 + $0x6] sm:$0x1]  ;;  %v3610_v57 = vrot.slane %v3600_v51, %v9359_v50 }
  0x51   :  { %2354 = vst.msk [vmem:[#allocation2 + $0x1e] sm:$0x1] %vm2329_vm3, %v9099_v38  ;;  %2355 = vst.msk [vmem:[#allocation2 + $0x28] sm:$0x1] %vm2329_vm3, %v9099_v38  ;;  %v2569_v52 = vld [vmem:[#allocation2 + $0x7] sm:$0x1]  ;;  %v3602_v55 = vcombine.low %v2567_v48, %v2568_v49  ;;  %v3617_v58 = vrot.slane %v3601_v54, %v9359_v50 }
  0x52   :  { %8920 = vmatmul.mubr.msk.bf16.gmra.mrb[36].mxu0 %vm272_vm2, %v9006_v25  ;;  %2356 = vst.msk [vmem:[#allocation2 + $0x32] sm:$0x1] %vm2329_vm3, %v9099_v38  ;;  %2357 = vst.msk [vmem:[#allocation2 + $0x3c] sm:$0x1] %vm2329_vm3, %v9099_v38  ;;  %v2570_v53 = vld [vmem:[#allocation2 + $0x8] sm:$0x1]  ;;  %v796_v25 = vunpack.c.0.s8 %v795_v24 }
  0x53   :  { %8923 = vmatprep.mubr.msk.bf16.mxu0 %vm272_vm2, %v9007_v26  ;;  %2358 = vst.msk [vmem:[#allocation2 + $0x46] sm:$0x1] %vm2329_vm3, %v9099_v38  ;;  %2359 = vst.msk [vmem:[#allocation2 + $0x50] sm:$0x1] %vm2329_vm3, %v9099_v38  ;;  %v3603_v56 = vcombine.low %v2569_v52, %v2570_v53  ;;  %v3624_v59 = vrot.slane %v3602_v55, %v9359_v50  ;;  %v2628_v60 = vld [vmem:[#allocation2 + $0x2] sm:$0x1]  ;;  %v3632_v4 = vcombine.low %v3610_v57, %v3617_v58 }
  0x54   :  { %2361 = vst.msk [vmem:[#allocation2 + $0x13] sm:$0x1] %vm2329_vm3, %v9099_v38  ;;  %2362 = vst.msk [vmem:[#allocation2 + $0x1d] sm:$0x1] %vm2329_vm3, %v9099_v38  ;;  %v2629_v61 = vld [vmem:[#allocation2 + $0x3] sm:$0x1] }
  0x55   :  { %2363 = vst.msk [vmem:[#allocation2 + $0x27] sm:$0x1] %vm2329_vm3, %v9099_v38  ;;  %2364 = vst.msk [vmem:[#allocation2 + $0x31] sm:$0x1] %vm2329_vm3, %v9099_v38  ;;  %v2630_v62 = vld [vmem:[#allocation2 + $0x4] sm:$0x1]  ;;  %v3631_v63 = vrot.slane %v3603_v56, %v9359_v50  ;;  %v4072_v3 = vcombine.low %v2628_v60, %v2629_v61  ;;  %v3640_v12 = vrot.slane %v3632_v4, %v9359_v50 }
  0x56   :  { %2365 = vst.msk [vmem:[#allocation2 + $0x3b] sm:$0x1] %vm2329_vm3, %v9099_v38  ;;  %2366 = vst.msk [vmem:[#allocation2 + $0x45] sm:$0x1] %vm2329_vm3, %v9099_v38  ;;  %v2631_v0 = vld [vmem:[#allocation2 + $0x5] sm:$0x1] }
  0x57   :  { %2367 = vst.msk [vmem:[#allocation2 + $0x4f] sm:$0x1] %vm2329_vm3, %v9099_v38  ;;  %2368 = vst.msk [vmem:[#allocation2 + $0x59] sm:$0x1] %vm2329_vm3, %v9099_v38  ;;  %v2632_v1 = vld [vmem:[#allocation2 + $0x6] sm:$0x1]  ;;  %v4073_v7 = vcombine.low %v2630_v62, %v2631_v0  ;;  %v3633_v9 = vcombine.low %v3624_v59, %v3631_v63  ;;  %v4082_v11 = vrot.slane %v4072_v3, %v9359_v50 }
  0x58   :  { %v2633_v2 = vld [vmem:[#allocation2 + $0x7] sm:$0x1]  ;;  %v2634_v5 = vld [vmem:[#allocation2 + $0x8] sm:$0x1]  ;;  %v2635_v6 = vld [vmem:[#allocation2 + $0x9] sm:$0x1] }
  0x59   :  { %v4074_v8 = vcombine.low %v2632_v1, %v2633_v2  ;;  %v4075_v10 = vcombine.low %v2634_v5, %v2635_v6  ;;  %v4089_v13 = vrot.slane %v4073_v7, %v9359_v50  ;;  %v3647_v15 = vrot.slane %v3633_v9, %v9359_v50  ;;  %v9378_v26 = vld [vmem:[%s10845_s6] ss:$0 sm:$0xff]  ;;  %s9106_s25 = smov 64   ;;  %s9107_s28 = smov 112  }
  0x5a   :  { %8924 = vmatmul.mubr.msk.bf16.gmra.mrb[40].mxu0 %vm272_vm2, %v9008_v27  ;;  %vm7296_vm4 = vcmask 130048   ;;  %s9108_s29 = smov 96   ;;  %vm7321_vm5 = vcmask 261120   ;;  %vm7338_vm6 = vcmask 392192   ;;  %vm7355_vm7 = vcmask 523264  }
  0x5b   :  { %8927 = vmatprep.mubr.msk.bf16.mxu0 %vm272_vm2, %v9009_v28  ;;  %v4096_v14 = vrot.slane %v4074_v8, %v9359_v50  ;;  %v4103_v16 = vrot.slane %v4075_v10, %v9359_v50  ;;  %v4104_v17 = vcombine.low %v4082_v11, %v4089_v13  ;;  %v3648_v18 = vcombine.low %v3640_v12, %v3647_v15 }
  0x5c   :  { %vm7372_vm8 = vcmask 654336   ;;  %vm7389_vm9 = vcmask 785408   ;;  %vm7406_vm10 = vcmask 916480   ;;  %vm9110_vm11 = vmmov 0  }
  0x5d   :  { %v4105_v19 = vcombine.low %v4096_v14, %v4103_v16  ;;  %v4112_v20 = vrot.slane %v4104_v17, %v9359_v50  ;;  %3992 = vrot.lane.b32.xlu0 %v3648_v18, %s9101_s0  ;;  %vm8634_vm12 = vcmask 74752  }
  0x5f   :  { %v4119_v21 = vrot.slane %v4105_v19, %v9359_v50 }
  0x61   :  { %v4120_v22 = vcombine.low %v4112_v20, %v4119_v21 }
  0x62   :  { %8928 = vmatmul.mubr.msk.bf16.gmra.mrb[44].mxu0 %vm272_vm2, %v9010_v29  ;;  %v9381_v29 = vsub.s32 %v796_v25, %v798_v42 }
  0x63   :  { %8931 = vmatprep.mubr.msk.bf16.mxu0 %vm272_vm2, %v9011_v30  ;;  %4464 = vrot.lane.b32.xlu0 %v4120_v22, %s9102_s20 }
  0x6a   :  { %8932 = vmatmul.mubr.msk.bf16.gmra.mrb[48].mxu0 %vm272_vm2, %v9012_v31 }
  0x6b   :  { %8935 = vmatprep.mubr.msk.bf16.mxu0 %vm272_vm2, %v9013_v32 }
  0x72   :  { %8936 = vmatmul.mubr.msk.bf16.gmra.mrb[52].mxu0 %vm272_vm2, %v9014_v33 }
  0x73   :  { %8939 = vmatprep.mubr.msk.bf16.mxu0 %vm272_vm2, %v9015_v34 }
  0x7a   :  { %8940 = vmatmul.mubr.msk.bf16.gmra.mrb[56].mxu0 %vm272_vm2, %v9016_v35 }
  0x7b   :  { %8943 = vmatprep.mubr.msk.bf16.mxu0 %vm272_vm2, %v9017_v36 }
  0x82   :  { %8944 = vmatmul.mubr.msk.bf16.gmra.mrb[60].mxu0 %vm272_vm2, %v9018_v37 }
  0xdd   :  { %v8885_v27 = vpop.f32.mrb[0].mxu0 }
  0xde   :  { %v419_v28 = vadd.f32 %v8885_v27, %v9378_v26  ;;  %v410_v30 = vpop.f32.mrb[1].mxu0 }
  0xdf   :  { %v411_v31 = vadd.f32 %v9378_v26, %v410_v30  ;;  %v8886_v32 = vpop.f32.mrb[2].mxu0 }
  0xe0   :  { %v667_v33 = vmax.f32 %v419_v28, 0.0  ;;  %v422_v34 = vadd.f32 %v8886_v32, %v9378_v26  ;;  %v413_v35 = vpop.f32.mrb[3].mxu0 }
  0xe1   :  { %v665_v36 = vmax.f32 %v411_v31, 0.0  ;;  %v414_v37 = vadd.f32 %v9378_v26, %v413_v35 }
  0xe2   :  { %v827_v39 = vcombine.high %v667_v33, %v667_v33  ;;  %v834_v40 = vrot.slane %v667_v33, %v9381_v29  ;;  %v668_v41 = vmax.f32 %v422_v34, 0.0 }
  0xe3   :  { %v793_v43 = vcombine.high %v665_v36, %v665_v36  ;;  %v800_v44 = vrot.slane %v665_v36, %v9381_v29  ;;  %v666_v42 = vmax.f32 %v414_v37, 0.0 }
  0xe4   :  { %v841_v45 = vrot.slane %v827_v39, %v9381_v29  ;;  %v842_v46 = vcombine.high %v834_v40, %v834_v40  ;;  %v844_v47 = vcombine.high %v668_v41, %v668_v41  ;;  %v851_v48 = vrot.slane %v668_v41, %v9381_v29 }
  0xe5   :  { %v807_v49 = vrot.slane %v793_v43, %v9381_v29  ;;  %v808_v51 = vcombine.high %v800_v44, %v800_v44  ;;  %v810_v52 = vcombine.high %v666_v42, %v666_v42  ;;  %v817_v53 = vrot.slane %v666_v42, %v9381_v29  ;;  %v8889_v54 = vpop.f32.mrb[4].mxu0 }
  0xe6   :  { %v843_v55 = vcombine.high %v841_v45, %v841_v45  ;;  %v858_v56 = vrot.slane %v844_v47, %v9381_v29  ;;  %v426_v57 = vpop.f32.mrb[5].mxu0  ;;  %v859_v59 = vcombine.high %v851_v48, %v851_v48  ;;  %v2141_v63 = vmax.f32 %v834_v40, %v842_v46 }
  0xe7   :  { %v809_v58 = vcombine.high %v807_v49, %v807_v49  ;;  %v824_v60 = vrot.slane %v810_v52, %v9381_v29  ;;  %v825_v61 = vcombine.high %v817_v53, %v817_v53  ;;  %v8890_v62 = vpop.f32.mrb[6].mxu0  ;;  %v435_v0 = vadd.f32 %v8889_v54, %v9378_v26 }
  0xe8   :  { %v429_v1 = vpop.f32.mrb[7].mxu0  ;;  %v2137_v2 = vmax.f32 %v800_v44, %v808_v51  ;;  %v860_v3 = vcombine.high %v858_v56, %v858_v56  ;;  %v427_v5 = vadd.f32 %v9378_v26, %v426_v57  ;;  %v2142_v6 = vmax.f32 %v841_v45, %v843_v55 }
  0xe9   :  { %v826_v4 = vcombine.high %v824_v60, %v824_v60  ;;  %v671_v7 = vmax.f32 %v435_v0, 0.0  ;;  %v438_v8 = vadd.f32 %v8890_v62, %v9378_v26  ;;  %v430_v9 = vadd.f32 %v9378_v26, %v429_v1 }
  0xea   :  { %v2138_v10 = vmax.f32 %v807_v49, %v809_v58  ;;  %v2143_v11 = vmax.f32 %v851_v48, %v859_v59  ;;  %v2139_v12 = vmax.f32 %v817_v53, %v825_v61  ;;  %v669_v13 = vmax.f32 %v427_v5, 0.0 }
  0xeb   :  { %v895_v14 = vcombine.high %v671_v7, %v671_v7  ;;  %v902_v15 = vrot.slane %v671_v7, %v9381_v29  ;;  %v672_v16 = vmax.f32 %v438_v8, 0.0  ;;  %v670_v17 = vmax.f32 %v430_v9, 0.0 }
  0xec   :  { %v2144_v18 = vmax.f32 %v858_v56, %v860_v3  ;;  %v2140_v19 = vmax.f32 %v824_v60, %v826_v4  ;;  %v861_v20 = vcombine.high %v669_v13, %v669_v13  ;;  %v868_v21 = vrot.slane %v669_v13, %v9381_v29 }
  0xed   :  { %v8893_v22 = vpop.f32.mrb[8].mxu0  ;;  %v909_v23 = vrot.slane %v895_v14, %v9381_v29  ;;  %v910_v24 = vcombine.high %v902_v15, %v902_v15  ;;  %v912_v25 = vcombine.high %v672_v16, %v672_v16  ;;  %v919_v27 = vrot.slane %v672_v16, %v9381_v29 }
  0xee   :  { %v442_v28 = vpop.f32.mrb[9].mxu0  ;;  %v875_v30 = vrot.slane %v861_v20, %v9381_v29  ;;  %v876_v31 = vcombine.high %v868_v21, %v868_v21  ;;  %v878_v32 = vcombine.high %v670_v17, %v670_v17  ;;  %v885_v33 = vrot.slane %v670_v17, %v9381_v29 }
  0xef   :  { %v8894_v34 = vpop.f32.mrb[10].mxu0  ;;  %v911_v35 = vcombine.high %v909_v23, %v909_v23  ;;  %v2149_v36 = vmax.f32 %v902_v15, %v910_v24  ;;  %v926_v37 = vrot.slane %v912_v25, %v9381_v29  ;;  %v927_v39 = vcombine.high %v919_v27, %v919_v27 }
  0xf0   :  { %v445_v40 = vpop.f32.mrb[11].mxu0  ;;  %v877_v41 = vcombine.high %v875_v30, %v875_v30  ;;  %v2145_v43 = vmax.f32 %v868_v21, %v876_v31  ;;  %v892_v44 = vrot.slane %v878_v32, %v9381_v29  ;;  %v893_v42 = vcombine.high %v885_v33, %v885_v33 }
  0xf1   :  { %v2150_v45 = vmax.f32 %v909_v23, %v911_v35  ;;  %v2269_v46 = vmax.f32 %v2141_v63, %v2149_v36  ;;  %v928_v47 = vcombine.high %v926_v37, %v926_v37  ;;  %v2151_v48 = vmax.f32 %v919_v27, %v927_v39 }
  0xf2   :  { %v2146_v49 = vmax.f32 %v875_v30, %v877_v41  ;;  %v2265_v51 = vmax.f32 %v2137_v2, %v2145_v43  ;;  %v894_v52 = vcombine.high %v892_v44, %v892_v44  ;;  %v2147_v53 = vmax.f32 %v885_v33, %v893_v42 }
  0xf3   :  { %v2270_v54 = vmax.f32 %v2142_v6, %v2150_v45  ;;  %v2373_v55 = vpack.c.bf16 %v2269_v46, %v2269_v46  ;;  %v2152_v56 = vmax.f32 %v926_v37, %v928_v47  ;;  %v2271_v57 = vmax.f32 %v2143_v11, %v2151_v48 }
  0xf4   :  { %v2266_v58 = vmax.f32 %v2138_v10, %v2146_v49  ;;  %v2369_v59 = vpack.c.bf16 %v2265_v51, %v2265_v51  ;;  %v2148_v60 = vmax.f32 %v892_v44, %v894_v52  ;;  %v2267_v61 = vmax.f32 %v2139_v12, %v2147_v53 }
  0xf5   :  { %v8897_v62 = vpop.f32.mrb[12].mxu0  ;;  %v2374_v0 = vpack.c.bf16 %v2270_v54, %v2270_v54  ;;  %2438 = vst.msk [vmem:[#allocation2 + $0xf] sm:$0x1] %vm2329_vm3, %v2373_v55  ;;  %v2272_v1 = vmax.f32 %v2144_v18, %v2152_v56  ;;  %v2375_v63 = vpack.c.bf16 %v2271_v57, %v2271_v57  ;;  %v451_v3 = vadd.f32 %v8893_v22, %v9378_v26 }
  0xf6   :  { %v458_v4 = vpop.f32.mrb[13].mxu0  ;;  %v2370_v2 = vpack.c.bf16 %v2266_v58, %v2266_v58  ;;  %2434 = vst.msk [vmem:[#allocation2 + $0xb] sm:$0x1] %vm2329_vm3, %v2369_v59  ;;  %v2268_v5 = vmax.f32 %v2140_v19, %v2148_v60  ;;  %v2371_v6 = vpack.c.bf16 %v2267_v61, %v2267_v61  ;;  %v443_v7 = vadd.f32 %v9378_v26, %v442_v28 }
  0xf7   :  { %v8898_v8 = vpop.f32.mrb[14].mxu0  ;;  %2439 = vst.msk [vmem:[#allocation2 + $0x10] sm:$0x1] %vm2329_vm3, %v2374_v0  ;;  %v2376_v9 = vpack.c.bf16 %v2272_v1, %v2272_v1  ;;  %2440 = vst.msk [vmem:[#allocation2 + $0x11] sm:$0x1] %vm2329_vm3, %v2375_v63  ;;  %v675_v10 = vmax.f32 %v451_v3, 0.0  ;;  %v454_v11 = vadd.f32 %v8894_v34, %v9378_v26  ;;  %v446_v12 = vadd.f32 %v9378_v26, %v445_v40 }
  0xf8   :  { %v461_v13 = vpop.f32.mrb[15].mxu0  ;;  %2435 = vst.msk [vmem:[#allocation2 + $0xc] sm:$0x1] %vm2329_vm3, %v2370_v2  ;;  %v2372_v14 = vpack.c.bf16 %v2268_v5, %v2268_v5  ;;  %2436 = vst.msk [vmem:[#allocation2 + $0xd] sm:$0x1] %vm2329_vm3, %v2371_v6  ;;  %v673_v15 = vmax.f32 %v443_v7, 0.0  ;;  %v467_v16 = vadd.f32 %v8897_v62, %v9378_v26  ;;  %v459_v17 = vadd.f32 %v9378_v26, %v458_v4 }
  0xf9   :  { %2441 = vst.msk [vmem:[#allocation2 + $0x12] sm:$0x1] %vm2329_vm3, %v2376_v9  ;;  %v963_v18 = vcombine.high %v675_v10, %v675_v10  ;;  %v970_v19 = vrot.slane %v675_v10, %v9381_v29  ;;  %v676_v20 = vmax.f32 %v454_v11, 0.0  ;;  %v674_v21 = vmax.f32 %v446_v12, 0.0 }
  0xfa   :  { %2437 = vst.msk [vmem:[#allocation2 + $0xe] sm:$0x1] %vm2329_vm3, %v2372_v14  ;;  %v929_v22 = vcombine.high %v673_v15, %v673_v15  ;;  %v936_v23 = vrot.slane %v673_v15, %v9381_v29  ;;  %v679_v24 = vmax.f32 %v467_v16, 0.0  ;;  %v677_v25 = vmax.f32 %v459_v17, 0.0 }
  0xfb   :  { %v977_v27 = vrot.slane %v963_v18, %v9381_v29  ;;  %v978_v28 = vcombine.high %v970_v19, %v970_v19  ;;  %v980_v30 = vcombine.high %v676_v20, %v676_v20  ;;  %v987_v31 = vrot.slane %v676_v20, %v9381_v29 }
  0xfc   :  { %v943_v32 = vrot.slane %v929_v22, %v9381_v29  ;;  %v944_v33 = vcombine.high %v936_v23, %v936_v23  ;;  %v946_v34 = vcombine.high %v674_v21, %v674_v21  ;;  %v953_v35 = vrot.slane %v674_v21, %v9381_v29 }
  0xfd   :  { %v8901_v36 = vpop.f32.mrb[16].mxu0  ;;  %v979_v37 = vcombine.high %v977_v27, %v977_v27  ;;  %v2157_v39 = vmax.f32 %v970_v19, %v978_v28  ;;  %v994_v40 = vrot.slane %v980_v30, %v9381_v29  ;;  %v995_v41 = vcombine.high %v987_v31, %v987_v31 }
  0xfe   :  { %v474_v43 = vpop.f32.mrb[17].mxu0  ;;  %v945_v44 = vcombine.high %v943_v32, %v943_v32  ;;  %v2153_v42 = vmax.f32 %v936_v23, %v944_v33  ;;  %v960_v45 = vrot.slane %v946_v34, %v9381_v29  ;;  %v961_v46 = vcombine.high %v953_v35, %v953_v35 }
  0xff   :  { %v9428_v47 = vpop.f32.mrb[18].mxu0  ;;  %v2158_v48 = vmax.f32 %v977_v27, %v979_v37  ;;  %v996_v49 = vcombine.high %v994_v40, %v994_v40  ;;  %v2159_v51 = vmax.f32 %v987_v31, %v995_v41  ;;  %v1031_v52 = vcombine.high %v679_v24, %v679_v24 }
 0x100   :  { %v9430_v53 = vpop.f32.mrb[19].mxu0  ;;  %v2154_v54 = vmax.f32 %v943_v32, %v945_v44  ;;  %v962_v55 = vcombine.high %v960_v45, %v960_v45  ;;  %v2155_v56 = vmax.f32 %v953_v35, %v961_v46  ;;  %v1038_v57 = vrot.slane %v679_v24, %v9381_v29 }
 0x101   :  { %v2160_v58 = vmax.f32 %v994_v40, %v996_v49  ;;  %v1045_v59 = vrot.slane %v1031_v52, %v9381_v29  ;;  %v997_v60 = vcombine.high %v677_v25, %v677_v25  ;;  %v1004_v61 = vrot.slane %v677_v25, %v9381_v29 }
 0x102   :  { %v2156_v62 = vmax.f32 %v960_v45, %v962_v55  ;;  %v1046_v0 = vcombine.high %v1038_v57, %v1038_v57  ;;  %v470_v1 = vadd.f32 %v8898_v8, %v9378_v26  ;;  %v462_v63 = vadd.f32 %v9378_v26, %v461_v13 }
 0x103   :  { %v1047_v3 = vcombine.high %v1045_v59, %v1045_v59  ;;  %v1011_v4 = vrot.slane %v997_v60, %v9381_v29  ;;  %v1012_v2 = vcombine.high %v1004_v61, %v1004_v61  ;;  %v483_v5 = vadd.f32 %v8901_v36, %v9378_v26 }
 0x104   :  { %v2165_v6 = vmax.f32 %v1038_v57, %v1046_v0  ;;  %v680_v7 = vmax.f32 %v470_v1, 0.0  ;;  %v678_v9 = vmax.f32 %v462_v63, 0.0  ;;  %v475_v10 = vadd.f32 %v9378_v26, %v474_v43 }
 0x105   :  { %v9440_v11 = vpop.f32.mrb[20].mxu0  ;;  %v2166_v12 = vmax.f32 %v1045_v59, %v1047_v3  ;;  %v1013_v14 = vcombine.high %v1011_v4, %v1011_v4  ;;  %v2161_v15 = vmax.f32 %v1004_v61, %v1012_v2  ;;  %v683_v16 = vmax.f32 %v483_v5, 0.0 }
 0x106   :  { %v9442_v8 = vpop.f32.mrb[21].mxu0  ;;  %v2277_v13 = vmax.f32 %v2157_v39, %v2165_v6  ;;  %v1048_v17 = vcombine.high %v680_v7, %v680_v7  ;;  %v1055_v18 = vrot.slane %v680_v7, %v9381_v29  ;;  %v1014_v19 = vcombine.high %v678_v9, %v678_v9 }
 0x107   :  { %v8906_v20 = vpop.f32.mrb[22].mxu0  ;;  %v2278_v21 = vmax.f32 %v2158_v48, %v2166_v12  ;;  %v2162_v22 = vmax.f32 %v1011_v4, %v1013_v14  ;;  %v2273_v23 = vmax.f32 %v2153_v42, %v2161_v15  ;;  %v1021_v24 = vrot.slane %v678_v9, %v9381_v29 }
 0x108   :  { %v493_v25 = vpop.f32.mrb[23].mxu0  ;;  %v2381_v27 = vpack.c.bf16 %v2277_v13, %v2277_v13  ;;  %v1062_v28 = vrot.slane %v1048_v17, %v9381_v29  ;;  %v1063_v30 = vcombine.high %v1055_v18, %v1055_v18  ;;  %v1028_v31 = vrot.slane %v1014_v19, %v9381_v29 }
 0x109   :  { %v2382_v32 = vpack.c.bf16 %v2278_v21, %v2278_v21  ;;  %v2274_v33 = vmax.f32 %v2154_v54, %v2162_v22  ;;  %v2377_v34 = vpack.c.bf16 %v2273_v23, %v2273_v23  ;;  %v1029_v35 = vcombine.high %v1021_v24, %v1021_v24 }
 0x10a   :  { %2446 = vst.msk [vmem:[#allocation2 + $0x19] sm:$0x1] %vm2329_vm3, %v2381_v27  ;;  %v1064_v36 = vcombine.high %v1062_v28, %v1062_v28  ;;  %v2167_v37 = vmax.f32 %v1055_v18, %v1063_v30  ;;  %v1030_v39 = vcombine.high %v1028_v31, %v1028_v31  ;;  %v1099_v40 = vcombine.high %v683_v16, %v683_v16 }
 0x10b   :  { %2447 = vst.msk [vmem:[#allocation2 + $0x1a] sm:$0x1] %vm2329_vm3, %v2382_v32  ;;  %v2378_v41 = vpack.c.bf16 %v2274_v33, %v2274_v33  ;;  %2442 = vst.msk [vmem:[#allocation2 + $0x15] sm:$0x1] %vm2329_vm3, %v2377_v34  ;;  %v2163_v43 = vmax.f32 %v1021_v24, %v1029_v35  ;;  %v1106_v44 = vrot.slane %v683_v16, %v9381_v29  ;;  %v681_v42 = vmax.f32 %v475_v10, 0.0 }
 0x10c   :  { %v2168_v45 = vmax.f32 %v1062_v28, %v1064_v36  ;;  %v2279_v46 = vmax.f32 %v2159_v51, %v2167_v37  ;;  %v2164_v48 = vmax.f32 %v1028_v31, %v1030_v39  ;;  %v1113_v49 = vrot.slane %v1099_v40, %v9381_v29  ;;  %v9471_v10 = vld [vmem:[#allocation2 + $0xd] sm:$0x1] }
 0x10d   :  { %v9453_v52 = vpop.f32.mrb[24].mxu0  ;;  %2443 = vst.msk [vmem:[#allocation2 + $0x16] sm:$0x1] %vm2329_vm3, %v2378_v41  ;;  %v2275_v54 = vmax.f32 %v2155_v56, %v2163_v43  ;;  %v1114_v55 = vcombine.high %v1106_v44, %v1106_v44  ;;  %v1065_v57 = vcombine.high %v681_v42, %v681_v42  ;;  %v1072_v59 = vrot.slane %v681_v42, %v9381_v29 }
 0x10e   :  { %v9457_v60 = vpop.f32.mrb[25].mxu0  ;;  %v2280_v61 = vmax.f32 %v2160_v58, %v2168_v45  ;;  %v2383_v0 = vpack.c.bf16 %v2279_v46, %v2279_v46  ;;  %v2276_v1 = vmax.f32 %v2156_v62, %v2164_v48  ;;  %v1115_v63 = vcombine.high %v1113_v49, %v1113_v49  ;;  %v9469_v62 = vld [vmem:[#allocation2 + $0xc] sm:$0x1] }
 0x10f   :  { %v9459_v3 = vpop.f32.mrb[26].mxu0  ;;  %v2379_v51 = vpack.c.bf16 %v2275_v54, %v2275_v54  ;;  %v2173_v4 = vmax.f32 %v1106_v44, %v1114_v55  ;;  %v1079_v2 = vrot.slane %v1065_v57, %v9381_v29  ;;  %v1080_v5 = vcombine.high %v1072_v59, %v1072_v59 }
 0x110   :  { %v9462_v6 = vpop.f32.mrb[27].mxu0  ;;  %v2384_v56 = vpack.c.bf16 %v2280_v61, %v2280_v61  ;;  %2448 = vst.msk [vmem:[#allocation2 + $0x1b] sm:$0x1] %vm2329_vm3, %v2383_v0  ;;  %v2380_v7 = vpack.c.bf16 %v2276_v1, %v2276_v1  ;;  %v9465_v9 = vmax.f32 %v1113_v49, %v1115_v63  ;;  %v486_v58 = vadd.f32 %v9428_v47, %v9378_v26  ;;  %v2823_v1 = vld [vmem:[#allocation2 + $0xe] sm:$0x1] }
 0x111   :  { %2444 = vst.msk [vmem:[#allocation2 + $0x17] sm:$0x1] %vm2329_vm3, %v2379_v51  ;;  %v1081_v12 = vcombine.high %v1079_v2, %v1079_v2  ;;  %v2169_v14 = vmax.f32 %v1072_v59, %v1080_v5  ;;  %v478_v15 = vadd.f32 %v9378_v26, %v9430_v53  ;;  %v499_v16 = vadd.f32 %v9440_v11, %v9378_v26 }
 0x112   :  { %2449 = vst.msk [vmem:[#allocation2 + $0x1c] sm:$0x1] %vm2329_vm3, %v2384_v56  ;;  %2445 = vst.msk [vmem:[#allocation2 + $0x18] sm:$0x1] %vm2329_vm3, %v2380_v7  ;;  %v684_v13 = vmax.f32 %v486_v58, 0.0  ;;  %v491_v47 = vadd.f32 %v9378_v26, %v9442_v8  ;;  %v502_v17 = vadd.f32 %v8906_v20, %v9378_v26  ;;  %v494_v18 = vadd.f32 %v9378_v26, %v493_v25 }
 0x113   :  { %v2170_v19 = vmax.f32 %v1079_v2, %v1081_v12  ;;  %v682_v21 = vmax.f32 %v478_v15, 0.0  ;;  %v687_v22 = vmax.f32 %v499_v16, 0.0  ;;  %v5488_v53 = vcombine.low %v9469_v62, %v9471_v10  ;;  %v2824_v56 = vld [vmem:[#allocation2 + $0xf] sm:$0x1]  ;;  %v2825_v16 = vld [vmem:[#allocation2 + $0x10] sm:$0x1] }
 0x114   :  { %v1116_v23 = vcombine.high %v684_v13, %v684_v13  ;;  %v1123_v11 = vrot.slane %v684_v13, %v9381_v29  ;;  %v685_v24 = vmax.f32 %v491_v47, 0.0  ;;  %v688_v27 = vmax.f32 %v502_v17, 0.0  ;;  %v2826_v13 = vld [vmem:[#allocation2 + $0x11] sm:$0x1] }
 0x115   :  { %v9487_v28 = vpop.f32.mrb[28].mxu0  ;;  %v1082_v30 = vcombine.high %v682_v21, %v682_v21  ;;  %v1089_v8 = vrot.slane %v682_v21, %v9381_v29  ;;  %v1167_v31 = vcombine.high %v687_v22, %v687_v22  ;;  %v1174_v20 = vrot.slane %v687_v22, %v9381_v29 }
 0x116   :  { %v9491_v25 = vpop.f32.mrb[29].mxu0  ;;  %v1130_v32 = vrot.slane %v1116_v23, %v9381_v29  ;;  %v1131_v33 = vcombine.high %v1123_v11, %v1123_v11  ;;  %v1133_v34 = vcombine.high %v685_v24, %v685_v24  ;;  %v1140_v35 = vrot.slane %v685_v24, %v9381_v29  ;;  %v2827_v23 = vld [vmem:[#allocation2 + $0x12] sm:$0x1] }
 0x117   :  { %v9495_v36 = vpop.f32.mrb[30].mxu0  ;;  %v1096_v37 = vrot.slane %v1082_v30, %v9381_v29  ;;  %v1097_v39 = vcombine.high %v1089_v8, %v1089_v8  ;;  %v1181_v40 = vrot.slane %v1167_v31, %v9381_v29  ;;  %v1182_v41 = vcombine.high %v1174_v20, %v1174_v20 }
 0x118   :  { %v9499_v43 = vpop.f32.mrb[31].mxu0  ;;  %v1132_v44 = vcombine.high %v1130_v32, %v1130_v32  ;;  %v2175_v42 = vmax.f32 %v1123_v11, %v1131_v33  ;;  %v1147_v45 = vrot.slane %v1133_v34, %v9381_v29  ;;  %v1148_v46 = vcombine.high %v1140_v35, %v1140_v35  ;;  %v2828_v11 = vld [vmem:[#allocation2 + $0x13] sm:$0x1] }
 0x119   :  { %v1098_v48 = vcombine.high %v1096_v37, %v1096_v37  ;;  %v9502_v49 = vmax.f32 %v1089_v8, %v1097_v39  ;;  %v1183_v54 = vcombine.high %v1181_v40, %v1181_v40  ;;  %v2181_v55 = vmax.f32 %v1174_v20, %v1182_v41  ;;  %v2693_v39 = vld [vmem:[#allocation2 + $0xb] sm:$0x1] }
 0x11a   :  { %v2176_v57 = vmax.f32 %v1130_v32, %v1132_v44  ;;  %v1149_v59 = vcombine.high %v1147_v45, %v1147_v45  ;;  %v2177_v61 = vmax.f32 %v1140_v35, %v1148_v46  ;;  %v1184_v0 = vcombine.high %v688_v27, %v688_v27 }
 0x11b   :  { %v9504_v63 = vmax.f32 %v1096_v37, %v1098_v48  ;;  %v2182_v51 = vmax.f32 %v1181_v40, %v1183_v54  ;;  %v2285_v2 = vmax.f32 %v2173_v4, %v2181_v55  ;;  %v1191_v5 = vrot.slane %v688_v27, %v9381_v29  ;;  %v2694_v48 = vld [vmem:[#allocation2 + $0xc] sm:$0x1]  ;;  %v2695_v54 = vld [vmem:[#allocation2 + $0xd] sm:$0x1] }
 0x11c   :  { %v2178_v7 = vmax.f32 %v1147_v45, %v1149_v59  ;;  %v2281_v58 = vmax.f32 %v2169_v14, %v2177_v61  ;;  %v1198_v12 = vrot.slane %v1184_v0, %v9381_v29  ;;  %v686_v15 = vmax.f32 %v494_v18, 0.0 }
 0x11d   :  { %v9508_v47 = vpop.f32.mrb[32].mxu0  ;;  %v2286_v17 = vmax.f32 %v9465_v9, %v2182_v51  ;;  %v2389_v21 = vpack.c.bf16 %v2285_v2, %v2285_v2  ;;  %v1199_v22 = vcombine.high %v1191_v5, %v1191_v5  ;;  %v5489_v24 = vcombine.low %v2823_v1, %v2824_v56  ;;  %v2696_v1 = vld [vmem:[#allocation2 + $0xe] sm:$0x1]  ;;  %v2699_v51 = vld [vmem:[#allocation2 + $0x11] sm:$0x1] }
 0x11e   :  { %v9511_v4 = vpop.f32.mrb[33].mxu0  ;;  %v2282_v27 = vmax.f32 %v2170_v19, %v2178_v7  ;;  %v2385_v30 = vpack.c.bf16 %v2281_v58, %v2281_v58  ;;  %v1200_v8 = vcombine.high %v1198_v12, %v1198_v12  ;;  %v1150_v14 = vcombine.high %v686_v15, %v686_v15  ;;  %v2692_v19 = vld [vmem:[#allocation2 + $0xa] sm:$0x1]  ;;  %v2697_v58 = vld [vmem:[#allocation2 + $0xf] sm:$0x1] }
 0x11f   :  { %v9513_v31 = vpop.f32.mrb[34].mxu0  ;;  %v2390_v18 = vpack.c.bf16 %v2286_v17, %v2286_v17  ;;  %2454 = vst.msk [vmem:[#allocation2 + $0x23] sm:$0x1] %vm2329_vm3, %v2389_v21  ;;  %v2183_v20 = vmax.f32 %v1191_v5, %v1199_v22  ;;  %v1157_v32 = vrot.slane %v686_v15, %v9381_v29  ;;  %v5490_v9 = vcombine.low %v2825_v16, %v2826_v13 }
 0x120   :  { %v2386_v33 = vpack.c.bf16 %v2282_v27, %v2282_v27  ;;  %2450 = vst.msk [vmem:[#allocation2 + $0x1f] sm:$0x1] %vm2329_vm3, %v2385_v30  ;;  %v2184_v34 = vmax.f32 %v1198_v12, %v1200_v8  ;;  %v1164_v35 = vrot.slane %v1150_v14, %v9381_v29  ;;  %v5491_v37 = vcombine.low %v2827_v23, %v2828_v11  ;;  %v9519_v40 = vpop.f32.mrb[35].mxu0  ;;  %v2757_v11 = vld [vmem:[#allocation2 + $0xc] sm:$0x1] }
 0x121   :  { %2455 = vst.msk [vmem:[#allocation2 + $0x24] sm:$0x1] %vm2329_vm3, %v2390_v18  ;;  %v2287_v41 = vmax.f32 %v2175_v42, %v2183_v20  ;;  %v1165_v44 = vcombine.high %v1157_v32, %v1157_v32  ;;  %v5498_v45 = vrot.slane %v5488_v53, %v9359_v50  ;;  %v5505_v46 = vrot.slane %v5489_v24, %v9359_v50  ;;  %v2698_v42 = vld [vmem:[#allocation2 + $0x10] sm:$0x1]  ;;  %v2759_v14 = vld [vmem:[#allocation2 + $0xe] sm:$0x1] }
 0x122   :  { %2451 = vst.msk [vmem:[#allocation2 + $0x20] sm:$0x1] %vm2329_vm3, %v2386_v33  ;;  %v2288_v55 = vmax.f32 %v2176_v57, %v2184_v34  ;;  %v1166_v59 = vcombine.high %v1164_v35, %v1164_v35  ;;  %v5512_v61 = vrot.slane %v5490_v9, %v9359_v50  ;;  %v5519_v0 = vrot.slane %v5491_v37, %v9359_v50  ;;  %v2761_v18 = vld [vmem:[#allocation2 + $0x10] sm:$0x1]  ;;  %v2756_v34 = vld [vmem:[#allocation2 + $0xb] sm:$0x1] }
 0x123   :  { %v2391_v2 = vpack.c.bf16 %v2287_v41, %v2287_v41  ;;  %v2179_v5 = vmax.f32 %v1157_v32, %v1165_v44  ;;  %v5520_v56 = vcombine.low %v5498_v45, %v5505_v46  ;;  %v4544_v62 = vcombine.low %v2692_v19, %v2693_v39  ;;  %v2760_v41 = vld [vmem:[#allocation2 + $0xf] sm:$0x1]  ;;  %v2763_v44 = vld [vmem:[#allocation2 + $0x12] sm:$0x1] }
 0x124   :  { %v2392_v10 = vpack.c.bf16 %v2288_v55, %v2288_v55  ;;  %v2180_v53 = vmax.f32 %v1164_v35, %v1166_v59  ;;  %v5521_v7 = vcombine.low %v5512_v61, %v5519_v0  ;;  %v4545_v12 = vcombine.low %v2694_v48, %v2695_v54  ;;  %v2758_v35 = vld [vmem:[#allocation2 + $0xd] sm:$0x1] }
 0x125   :  { %2456 = vst.msk [vmem:[#allocation2 + $0x25] sm:$0x1] %vm2329_vm3, %v2391_v2  ;;  %v2283_v57 = vmax.f32 %v9502_v49, %v2179_v5  ;;  %v5528_v15 = vrot.slane %v5520_v56, %v9359_v50  ;;  %v4546_v16 = vcombine.low %v2696_v1, %v2697_v58  ;;  %v4547_v13 = vcombine.low %v2698_v42, %v2699_v51  ;;  %v9538_v24 = vpop.f32.mrb[36].mxu0  ;;  %v2762_v1 = vld [vmem:[#allocation2 + $0x11] sm:$0x1] }
 0x126   :  { %2457 = vst.msk [vmem:[#allocation2 + $0x26] sm:$0x1] %vm2329_vm3, %v2392_v10  ;;  %v2284_v17 = vmax.f32 %v9504_v63, %v2180_v53  ;;  %v5535_v21 = vrot.slane %v5521_v7, %v9359_v50  ;;  %v4554_v22 = vrot.slane %v4544_v62, %v9359_v50  ;;  %v4561_v23 = vrot.slane %v4545_v12, %v9359_v50  ;;  %v9544_v63 = vpop.f32.mrb[37].mxu0 }
 0x127   :  { %v2387_v27 = vpack.c.bf16 %v2283_v57, %v2283_v57  ;;  %v4568_v49 = vrot.slane %v4546_v16, %v9359_v50  ;;  %v4575_v30 = vrot.slane %v4547_v13, %v9359_v50  ;;  %v515_v8 = vadd.f32 %v9453_v52, %v9378_v26  ;;  %v9548_v37 = vpop.f32.mrb[38].mxu0  ;;  %v2637_v16 = vld [vmem:[#allocation2 + $0xd] sm:$0x1]  ;;  %v2643_v13 = vld [vmem:[#allocation2 + $0x13] sm:$0x1] }
 0x128   :  { %v2388_v20 = vpack.c.bf16 %v2284_v17, %v2284_v17  ;;  %v5536_v32 = vcombine.low %v5528_v15, %v5535_v21  ;;  %v4576_v9 = vcombine.low %v4554_v22, %v4561_v23  ;;  %v507_v33 = vadd.f32 %v9378_v26, %v9457_v60  ;;  %v9553_v46 = vpop.f32.mrb[39].mxu0  ;;  %v2636_v15 = vld [vmem:[#allocation2 + $0xc] sm:$0x1] }
 0x129   :  { %2452 = vst.msk [vmem:[#allocation2 + $0x21] sm:$0x1] %vm2329_vm3, %v2387_v27  ;;  %v4577_v19 = vcombine.low %v4568_v49, %v4575_v30  ;;  %v691_v39 = vmax.f32 %v515_v8, 0.0  ;;  %v518_v52 = vadd.f32 %v9459_v3, %v9378_v26  ;;  %v5016_v45 = vcombine.low %v2756_v34, %v2757_v11  ;;  %v2638_v27 = vld [vmem:[#allocation2 + $0xe] sm:$0x1] }
 0x12a   :  { %2453 = vst.msk [vmem:[#allocation2 + $0x22] sm:$0x1] %vm2329_vm3, %v2388_v20  ;;  %5880 = vrot.lane.b32.xlu0 %v5536_v32, %s9104_s23  ;;  %v4584_v60 = vrot.slane %v4576_v9, %v9359_v50  ;;  %v689_v48 = vmax.f32 %v507_v33, 0.0  ;;  %v5017_v54 = vcombine.low %v2758_v35, %v2759_v14  ;;  %v5018_v55 = vcombine.low %v2760_v41, %v2761_v18  ;;  %v2640_v49 = vld [vmem:[#allocation2 + $0x10] sm:$0x1] }
 0x12b   :  { %v4591_v59 = vrot.slane %v4577_v19, %v9359_v50  ;;  %v1235_v61 = vcombine.high %v691_v39, %v691_v39  ;;  %v1242_v3 = vrot.slane %v691_v39, %v9381_v29  ;;  %v692_v0 = vmax.f32 %v518_v52, 0.0  ;;  %v2641_v32 = vld [vmem:[#allocation2 + $0x11] sm:$0x1]  ;;  %v2642_v9 = vld [vmem:[#allocation2 + $0x12] sm:$0x1] }
 0x12c   :  { %v1201_v42 = vcombine.high %v689_v48, %v689_v48  ;;  %v1208_v51 = vrot.slane %v689_v48, %v9381_v29  ;;  %v5019_v2 = vcombine.low %v2762_v1, %v2763_v44  ;;  %v5026_v5 = vrot.slane %v5016_v45, %v9359_v50  ;;  %v2639_v39 = vld [vmem:[#allocation2 + $0xf] sm:$0x1]  ;;  %v2572_v48 = vld [vmem:[#allocation2 + $0xc] sm:$0x1] }
 0x12d   :  { %v4592_v56 = vcombine.low %v4584_v60, %v4591_v59  ;;  %v1249_v62 = vrot.slane %v1235_v61, %v9381_v29  ;;  %v1250_v10 = vcombine.high %v1242_v3, %v1242_v3  ;;  %v1252_v53 = vcombine.high %v692_v0, %v692_v0  ;;  %v9566_v17 = vpop.f32.mrb[40].mxu0 }
 0x12e   :  { %v1215_v7 = vrot.slane %v1201_v42, %v9381_v29  ;;  %v1216_v58 = vcombine.high %v1208_v51, %v1208_v51  ;;  %v1259_v12 = vrot.slane %v692_v0, %v9381_v29  ;;  %v5033_v57 = vrot.slane %v5017_v54, %v9359_v50  ;;  %v9573_v30 = vpop.f32.mrb[41].mxu0  ;;  %v2574_v54 = vld [vmem:[#allocation2 + $0xe] sm:$0x1]  ;;  %v2576_v0 = vld [vmem:[#allocation2 + $0x10] sm:$0x1] }
 0x12f   :  { %4936 = vrot.lane.b32.xlu1 %v4592_v56, %s9105_s24  ;;  %v1251_v21 = vcombine.high %v1249_v62, %v1249_v62  ;;  %v9569_v22 = vmax.f32 %v1242_v3, %v1250_v10  ;;  %v1266_v23 = vrot.slane %v1252_v53, %v9381_v29  ;;  %v5040_v11 = vrot.slane %v5018_v55, %v9359_v50  ;;  %v9578_v33 = vpop.f32.mrb[42].mxu0  ;;  %v2573_v56 = vld [vmem:[#allocation2 + $0xd] sm:$0x1] }
 0x130   :  { %v1217_v8 = vcombine.high %v1215_v7, %v1215_v7  ;;  %v9575_v14 = vmax.f32 %v1208_v51, %v1216_v58  ;;  %v1267_v18 = vcombine.high %v1259_v12, %v1259_v12  ;;  %v5047_v20 = vrot.slane %v5019_v2, %v9359_v50 }
 0x131   :  { %v9580_v34 = vmax.f32 %v1249_v62, %v1251_v21  ;;  %v1268_v35 = vcombine.high %v1266_v23, %v1266_v23  ;;  %v5048_v19 = vcombine.low %v5026_v5, %v5033_v57  ;;  %v4121_v52 = vcombine.low %v2636_v15, %v2637_v16  ;;  %v2571_v5 = vld [vmem:[#allocation2 + $0xb] sm:$0x1]  ;;  %v2578_v62 = vld [vmem:[#allocation2 + $0x12] sm:$0x1]  ;;  %v9596_v57 = vpop.f32.mrb[43].mxu0 }
 0x132   :  { %v9582_v41 = vmax.f32 %v1215_v7, %v1217_v8  ;;  %v9584_v44 = vmax.f32 %v1259_v12, %v1267_v18  ;;  %v5049_v45 = vcombine.low %v5040_v11, %v5047_v20  ;;  %v4122_v60 = vcombine.low %v2638_v27, %v2639_v39  ;;  %v2575_v7 = vld [vmem:[#allocation2 + $0xf] sm:$0x1]  ;;  %v2577_v21 = vld [vmem:[#allocation2 + $0x11] sm:$0x1] }
 0x133   :  { %v9586_v55 = vmax.f32 %v1266_v23, %v1268_v35  ;;  %v5056_v59 = vrot.slane %v5048_v19, %v9359_v50  ;;  %v4123_v61 = vcombine.low %v2640_v49, %v2641_v32  ;;  %v4124_v3 = vcombine.low %v2642_v9, %v2643_v13 }
 0x134   :  { %v5063_v1 = vrot.slane %v5049_v45, %v9359_v50  ;;  %v4131_v42 = vrot.slane %v4121_v52, %v9359_v50  ;;  %v4138_v51 = vrot.slane %v4122_v60, %v9359_v50  ;;  %v510_v2 = vadd.f32 %v9378_v26, %v9462_v6 }
 0x135   :  { %v4145_v10 = vrot.slane %v4123_v61, %v9359_v50  ;;  %v4152_v53 = vrot.slane %v4124_v3, %v9359_v50  ;;  %v3649_v58 = vcombine.low %v2571_v5, %v2572_v48  ;;  %v3650_v12 = vcombine.low %v2573_v56, %v2574_v54  ;;  %v9598_v11 = vpop.f32.mrb[44].mxu0 }
 0x136   :  { %v5064_v15 = vcombine.low %v5056_v59, %v5063_v1  ;;  %v4153_v16 = vcombine.low %v4131_v42, %v4138_v51  ;;  %v690_v13 = vmax.f32 %v510_v2, 0.0  ;;  %v3651_v23 = vcombine.low %v2575_v7, %v2576_v0  ;;  %v9616_v1 = vpop.f32.mrb[45].mxu0 }
 0x137   :  { %v4154_v6 = vcombine.low %v4145_v10, %v4152_v53  ;;  %v3652_v27 = vcombine.low %v2577_v21, %v2578_v62  ;;  %v3659_v49 = vrot.slane %v3649_v58, %v9359_v50  ;;  %v3666_v8 = vrot.slane %v3650_v12, %v9359_v50  ;;  %v9620_v5 = vpop.f32.mrb[46].mxu0  ;;  %v9630_v12 = vld [vmem:[#allocation2 + $0x16] sm:$0x1] }
 0x138   :  { %5408 = vrot.lane.b32.xlu1 %v5064_v15, %s9106_s25  ;;  %v4161_v18 = vrot.slane %v4153_v16, %v9359_v50  ;;  %v1218_v20 = vcombine.high %v690_v13, %v690_v13  ;;  %v1225_v32 = vrot.slane %v690_v13, %v9381_v29  ;;  %v3673_v9 = vrot.slane %v3651_v23, %v9359_v50  ;;  %v9632_v15 = vld [vmem:[#allocation2 + $0x17] sm:$0x1]  ;;  %v9634_v16 = vpop.f32.mrb[47].mxu0 }
 0x139   :  { %v4168_v35 = vrot.slane %v4154_v6, %v9359_v50  ;;  %v3680_v19 = vrot.slane %v3652_v27, %v9359_v50  ;;  %v3681_v39 = vcombine.low %v3659_v49, %v3666_v8  ;;  %v531_v52 = vadd.f32 %v9487_v28, %v9378_v26 }
 0x13a   :  { %v1232_v45 = vrot.slane %v1218_v20, %v9381_v29  ;;  %v1233_v60 = vcombine.high %v1225_v32, %v1225_v32  ;;  %v523_v48 = vadd.f32 %v9378_v26, %v9491_v25  ;;  %v534_v54 = vadd.f32 %v9495_v36, %v9378_v26 }
 0x13b   :  { %v4169_v59 = vcombine.low %v4161_v18, %v4168_v35  ;;  %v3682_v61 = vcombine.low %v3673_v9, %v3680_v19  ;;  %v3689_v3 = vrot.slane %v3681_v39, %v9359_v50  ;;  %v695_v0 = vmax.f32 %v531_v52, 0.0 }
 0x13c   :  { %v1234_v42 = vcombine.high %v1232_v45, %v1232_v45  ;;  %v9618_v51 = vmax.f32 %v1225_v32, %v1233_v60  ;;  %v693_v28 = vmax.f32 %v523_v48, 0.0  ;;  %v696_v2 = vmax.f32 %v534_v54, 0.0 }
 0x13d   :  { %4466 = vrot.lane.b32.xlu0 %v4169_v59, %s9102_s20  ;;  %v3696_v25 = vrot.slane %v3682_v61, %v9359_v50  ;;  %v1303_v56 = vcombine.high %v695_v0, %v695_v0  ;;  %v1310_v36 = vrot.slane %v695_v0, %v9381_v29  ;;  %v526_v62 = vadd.f32 %v9378_v26, %v9499_v43  ;;  %v9638_v27 = vpop.f32.mrb[48].mxu0 }
 0x13e   :  { %v9627_v10 = vmax.f32 %v1232_v45, %v1234_v42  ;;  %v1269_v53 = vcombine.high %v693_v28, %v693_v28  ;;  %v1276_v7 = vrot.slane %v693_v28, %v9381_v29  ;;  %v1320_v58 = vcombine.high %v696_v2, %v696_v2  ;;  %v9642_v18 = vpop.f32.mrb[49].mxu0 }
 0x13f   :  { %v3697_v13 = vcombine.low %v3689_v3, %v3696_v25  ;;  %v1317_v21 = vrot.slane %v1303_v56, %v9381_v29  ;;  %v1318_v23 = vcombine.high %v1310_v36, %v1310_v36  ;;  %v1327_v6 = vrot.slane %v696_v2, %v9381_v29  ;;  %v9647_v19 = vpop.f32.mrb[50].mxu0  ;;  %v3018_v25 = vld [vmem:[#allocation2 + $0x18] sm:$0x1] }
 0x140   :  { %v1283_v26 = vrot.slane %v1269_v53, %v9381_v29  ;;  %v1284_v43 = vcombine.high %v1276_v7, %v1276_v7  ;;  %v1334_v49 = vrot.slane %v1320_v58, %v9381_v29  ;;  %v694_v8 = vmax.f32 %v526_v62, 0.0  ;;  %v9649_v48 = vpop.f32.mrb[51].mxu0  ;;  %v3021_v58 = vld [vmem:[#allocation2 + $0x1b] sm:$0x1] }
 0x141   :  { %3994 = vrot.lane.b32.xlu1 %v3697_v13, %s9101_s0  ;;  %v1319_v20 = vcombine.high %v1317_v21, %v1317_v21  ;;  %v2197_v32 = vmax.f32 %v1310_v36, %v1318_v23  ;;  %v1335_v9 = vcombine.high %v1327_v6, %v1327_v6  ;;  %v6904_v35 = vcombine.low %v9630_v12, %v9632_v15  ;;  %v3023_v23 = vld [vmem:[#allocation2 + $0x1d] sm:$0x1] }
 0x142   :  { %v1285_v39 = vcombine.high %v1283_v26, %v1283_v26  ;;  %v2193_v52 = vmax.f32 %v1276_v7, %v1284_v43  ;;  %v1336_v45 = vcombine.high %v1334_v49, %v1334_v49  ;;  %v1286_v60 = vcombine.high %v694_v8, %v694_v8  ;;  %v3020_v7 = vld [vmem:[#allocation2 + $0x1a] sm:$0x1] }
 0x143   :  { %v2198_v54 = vmax.f32 %v1317_v21, %v1319_v20  ;;  %v2293_v59 = vmax.f32 %v9569_v22, %v2197_v32  ;;  %v2199_v61 = vmax.f32 %v1327_v6, %v1335_v9  ;;  %v1293_v3 = vrot.slane %v694_v8, %v9381_v29  ;;  %v3019_v21 = vld [vmem:[#allocation2 + $0x19] sm:$0x1]  ;;  %v2886_v9 = vld [vmem:[#allocation2 + $0x14] sm:$0x1] }
 0x144   :  { %v2194_v0 = vmax.f32 %v1283_v26, %v1285_v39  ;;  %v2289_v42 = vmax.f32 %v9575_v14, %v2193_v52  ;;  %v2200_v28 = vmax.f32 %v1334_v49, %v1336_v45  ;;  %v1300_v2 = vrot.slane %v1286_v60, %v9381_v29  ;;  %v3022_v14 = vld [vmem:[#allocation2 + $0x1c] sm:$0x1]  ;;  %v2952_v49 = vld [vmem:[#allocation2 + $0x16] sm:$0x1] }
 0x145   :  { %v2294_v56 = vmax.f32 %v9580_v34, %v2198_v54  ;;  %v2397_v36 = vpack.c.bf16 %v2293_v59, %v2293_v59  ;;  %v2295_v62 = vmax.f32 %v9584_v44, %v2199_v61  ;;  %v1301_v53 = vcombine.high %v1293_v3, %v1293_v3  ;;  %v2954_v44 = vld [vmem:[#allocation2 + $0x18] sm:$0x1]  ;;  %v9661_v39 = vpop.f32.mrb[52].mxu0  ;;  %v2951_v59 = vld [vmem:[#allocation2 + $0x15] sm:$0x1] }
 0x146   :  { %v2290_v22 = vmax.f32 %v9582_v41, %v2194_v0  ;;  %v2393_v12 = vpack.c.bf16 %v2289_v42, %v2289_v42  ;;  %v2296_v15 = vmax.f32 %v9586_v55, %v2200_v28  ;;  %v1302_v13 = vcombine.high %v1300_v2, %v1300_v2  ;;  %v2956_v55 = vld [vmem:[#allocation2 + $0x1a] sm:$0x1]  ;;  %v2953_v61 = vld [vmem:[#allocation2 + $0x17] sm:$0x1]  ;;  %v2955_v28 = vld [vmem:[#allocation2 + $0x19] sm:$0x1] }
 0x147   :  { %v2398_v6 = vpack.c.bf16 %v2294_v56, %v2294_v56  ;;  %2462 = vst.msk [vmem:[#allocation2 + $0x2d] sm:$0x1] %vm2329_vm3, %v2397_v36  ;;  %v2399_v26 = vpack.c.bf16 %v2295_v62, %v2295_v62  ;;  %v2195_v34 = vmax.f32 %v1293_v3, %v1301_v53  ;;  %v6905_v43 = vcombine.low %v3018_v25, %v3019_v21  ;;  %v2958_v3 = vld [vmem:[#allocation2 + $0x1c] sm:$0x1]  ;;  %v2888_v56 = vld [vmem:[#allocation2 + $0x16] sm:$0x1] }
 0x148   :  { %v2394_v8 = vpack.c.bf16 %v2290_v22, %v2290_v22  ;;  %2458 = vst.msk [vmem:[#allocation2 + $0x29] sm:$0x1] %vm2329_vm3, %v2393_v12  ;;  %v2400_v20 = vpack.c.bf16 %v2296_v15, %v2296_v15  ;;  %v2196_v41 = vmax.f32 %v1300_v2, %v1302_v13  ;;  %v6906_v32 = vcombine.low %v3020_v7, %v3021_v58  ;;  %v2957_v53 = vld [vmem:[#allocation2 + $0x1b] sm:$0x1]  ;;  %v2889_v58 = vld [vmem:[#allocation2 + $0x17] sm:$0x1] }
 0x149   :  { %2463 = vst.msk [vmem:[#allocation2 + $0x2e] sm:$0x1] %vm2329_vm3, %v2398_v6  ;;  %2464 = vst.msk [vmem:[#allocation2 + $0x2f] sm:$0x1] %vm2329_vm3, %v2399_v26  ;;  %v2291_v52 = vmax.f32 %v9618_v51, %v2195_v34  ;;  %v6907_v45 = vcombine.low %v3022_v14, %v3023_v23  ;;  %v6914_v60 = vrot.slane %v6904_v35, %v9359_v50  ;;  %v2887_v51 = vld [vmem:[#allocation2 + $0x15] sm:$0x1] }
 0x14a   :  { %v6921_v54 = vrot.slane %v6905_v43, %v9359_v50  ;;  %2459 = vst.msk [vmem:[#allocation2 + $0x2a] sm:$0x1] %vm2329_vm3, %v2394_v8  ;;  %2465 = vst.msk [vmem:[#allocation2 + $0x30] sm:$0x1] %vm2329_vm3, %v2400_v20  ;;  %v2292_v0 = vmax.f32 %v9627_v10, %v2196_v41  ;;  %v6928_v42 = vrot.slane %v6906_v32, %v9359_v50  ;;  %v2890_v22 = vld [vmem:[#allocation2 + $0x18] sm:$0x1] }
 0x14b   :  { %v6432_v2 = vcombine.low %v2951_v59, %v2952_v49  ;;  %v6433_v25 = vcombine.low %v2953_v61, %v2954_v44  ;;  %v2395_v36 = vpack.c.bf16 %v2291_v52, %v2291_v52  ;;  %v6935_v35 = vrot.slane %v6907_v45, %v9359_v50  ;;  %v2892_v21 = vld [vmem:[#allocation2 + $0x1a] sm:$0x1]  ;;  %v2893_v14 = vld [vmem:[#allocation2 + $0x1b] sm:$0x1]  ;;  %v2891_v34 = vld [vmem:[#allocation2 + $0x19] sm:$0x1] }
 0x14c   :  { %v6936_v62 = vcombine.low %v6914_v60, %v6921_v54  ;;  %v6434_v7 = vcombine.low %v2955_v28, %v2956_v55  ;;  %v2396_v12 = vpack.c.bf16 %v2292_v0, %v2292_v0  ;;  %v6435_v15 = vcombine.low %v2957_v53, %v2958_v3  ;;  %v9685_v52 = vld [vmem:[%s10845_s6] ss:$0 sm:$0xff]  ;;  %v2765_v45 = vld [vmem:[#allocation2 + $0x16] sm:$0x1] }
 0x14d   :  { %v6442_v13 = vrot.slane %v6432_v2, %v9359_v50  ;;  %v6449_v10 = vrot.slane %v6433_v25, %v9359_v50  ;;  %2460 = vst.msk [vmem:[#allocation2 + $0x2b] sm:$0x1] %vm2329_vm3, %v2395_v36  ;;  %v6937_v23 = vcombine.low %v6928_v42, %v6935_v35  ;;  %v5960_v43 = vcombine.low %v2886_v9, %v2887_v51  ;;  %v2764_v2 = vld [vmem:[#allocation2 + $0x15] sm:$0x1]  ;;  %v2767_v25 = vld [vmem:[#allocation2 + $0x18] sm:$0x1] }
 0x14e   :  { %v6944_v6 = vrot.slane %v6936_v62, %v9359_v50  ;;  %v6456_v26 = vrot.slane %v6434_v7, %v9359_v50  ;;  %2461 = vst.msk [vmem:[#allocation2 + $0x2c] sm:$0x1] %vm2329_vm3, %v2396_v12  ;;  %v6463_v49 = vrot.slane %v6435_v15, %v9359_v50  ;;  %v5961_v8 = vcombine.low %v2888_v56, %v2889_v58  ;;  %v9695_v51 = vpop.f32.mrb[53].mxu0 }
 0x14f   :  { %v6464_v44 = vcombine.low %v6442_v13, %v6449_v10  ;;  %v5962_v20 = vcombine.low %v2890_v22, %v2891_v34  ;;  %v6951_v41 = vrot.slane %v6937_v23, %v9359_v50  ;;  %v5963_v32 = vcombine.low %v2892_v21, %v2893_v14  ;;  %v2766_v22 = vld [vmem:[#allocation2 + $0x17] sm:$0x1]  ;;  %v9702_v12 = vpop.f32.mrb[54].mxu0  ;;  %v2768_v34 = vld [vmem:[#allocation2 + $0x19] sm:$0x1] }
 0x150   :  { %v5970_v55 = vrot.slane %v5960_v43, %v9359_v50  ;;  %v547_v9 = vadd.f32 %v9685_v52, %v9508_v47  ;;  %v6465_v60 = vcombine.low %v6456_v26, %v6463_v49  ;;  %v5977_v59 = vrot.slane %v5961_v8, %v9359_v50  ;;  %v9705_v14 = vpop.f32.mrb[55].mxu0  ;;  %v2771_v43 = vld [vmem:[#allocation2 + $0x1c] sm:$0x1] }
 0x151   :  { %v6472_v54 = vrot.slane %v6464_v44, %v9359_v50  ;;  %v5984_v61 = vrot.slane %v5962_v20, %v9359_v50  ;;  %v6952_v3 = vcombine.low %v6944_v6, %v6951_v41  ;;  %v5991_v0 = vrot.slane %v5963_v32, %v9359_v50 }
 0x152   :  { %v699_v42 = vmax.f32 %v547_v9, 0.0  ;;  %v539_v28 = vadd.f32 %v9685_v52, %v9511_v4  ;;  %v6479_v47 = vrot.slane %v6465_v60, %v9359_v50  ;;  %v5992_v56 = vcombine.low %v5970_v55, %v5977_v59  ;;  %v2769_v4 = vld [vmem:[#allocation2 + $0x1a] sm:$0x1]  ;;  %v2700_v60 = vld [vmem:[#allocation2 + $0x14] sm:$0x1] }
 0x153   :  { %v550_v36 = vadd.f32 %v9685_v52, %v9513_v31  ;;  %v5065_v35 = vcombine.low %v2764_v2, %v2765_v45  ;;  %8738 = vmatprep.mubr.msk.bf16.mxu1 %vm7296_vm4, %v6952_v3  ;;  %v5993_v62 = vcombine.low %v5984_v61, %v5991_v0  ;;  %v5066_v21 = vcombine.low %v2766_v22, %v2767_v25  ;;  %v2770_v45 = vld [vmem:[#allocation2 + $0x1b] sm:$0x1]  ;;  %v2701_v0 = vld [vmem:[#allocation2 + $0x15] sm:$0x1] }
 0x154   :  { %v1371_v53 = vcombine.high %v699_v42, %v699_v42  ;;  %v1378_v7 = vrot.slane %v699_v42, %v9381_v29  ;;  %v697_v58 = vmax.f32 %v539_v28, 0.0  ;;  %v6480_v15 = vcombine.low %v6472_v54, %v6479_v47  ;;  %v2702_v42 = vld [vmem:[#allocation2 + $0x16] sm:$0x1]  ;;  %v2703_v28 = vld [vmem:[#allocation2 + $0x17] sm:$0x1] }
 0x155   :  { %v6000_v13 = vrot.slane %v5992_v56, %v9359_v50  ;;  %v700_v10 = vmax.f32 %v550_v36, 0.0  ;;  %v6007_v31 = vrot.slane %v5993_v62, %v9359_v50  ;;  %v5067_v20 = vcombine.low %v2768_v34, %v2769_v4  ;;  %v2704_v36 = vld [vmem:[#allocation2 + $0x18] sm:$0x1]  ;;  %v2706_v62 = vld [vmem:[#allocation2 + $0x1a] sm:$0x1] }
 0x156   :  { %v1385_v23 = vrot.slane %v1371_v53, %v9381_v29  ;;  %v1386_v6 = vcombine.high %v1378_v7, %v1378_v7  ;;  %v1337_v26 = vcombine.high %v697_v58, %v697_v58  ;;  %6824 = vrot.lane.b32.xlu0 %v6480_v15, %s9107_s28  ;;  %v1344_v49 = vrot.slane %v697_v58, %v9381_v29  ;;  %v2707_v53 = vld [vmem:[#allocation2 + $0x1b] sm:$0x1] }
 0x157   :  { %v1388_v44 = vcombine.high %v700_v10, %v700_v10  ;;  %v1395_v8 = vrot.slane %v700_v10, %v9381_v29  ;;  %v6008_v41 = vcombine.low %v6000_v13, %v6007_v31  ;;  %v5068_v3 = vcombine.low %v2770_v45, %v2771_v43  ;;  %v2705_v31 = vld [vmem:[#allocation2 + $0x19] sm:$0x1]  ;;  %v2582_v43 = vld [vmem:[#allocation2 + $0x18] sm:$0x1] }
 0x158   :  { %v1387_v32 = vcombine.high %v1385_v23, %v1385_v23  ;;  %v9712_v55 = vmax.f32 %v1378_v7, %v1386_v6  ;;  %v1351_v9 = vrot.slane %v1337_v26, %v9381_v29  ;;  %v1352_v54 = vcombine.high %v1344_v49, %v1344_v49 }
 0x159   :  { %v1402_v59 = vrot.slane %v1388_v44, %v9381_v29  ;;  %v1403_v61 = vcombine.high %v1395_v8, %v1395_v8  ;;  %6352 = vrot.lane.b32.xlu1 %v6008_v41, %s9108_s29  ;;  %v5075_v47 = vrot.slane %v5065_v35, %v9359_v50  ;;  %v5082_v56 = vrot.slane %v5066_v21, %v9359_v50  ;;  %v2580_v35 = vld [vmem:[#allocation2 + $0x16] sm:$0x1] }
 0x15a   :  { %v9717_v2 = vmax.f32 %v1385_v23, %v1387_v32  ;;  %v1353_v25 = vcombine.high %v1351_v9, %v1351_v9  ;;  %v9721_v7 = vmax.f32 %v1344_v49, %v1352_v54  ;;  %v5089_v4 = vrot.slane %v5067_v20, %v9359_v50  ;;  %v2584_v49 = vld [vmem:[#allocation2 + $0x1a] sm:$0x1]  ;;  %v2579_v32 = vld [vmem:[#allocation2 + $0x15] sm:$0x1] }
 0x15b   :  { %v1404_v58 = vcombine.high %v1402_v59, %v1402_v59  ;;  %v9723_v22 = vmax.f32 %v1395_v8, %v1403_v61  ;;  %v5096_v13 = vrot.slane %v5068_v3, %v9359_v50  ;;  %v5097_v10 = vcombine.low %v5075_v47, %v5082_v56  ;;  %v2583_v61 = vld [vmem:[#allocation2 + $0x19] sm:$0x1]  ;;  %v9739_v56 = vpop.f32.mrb[56].mxu0 }
 0x15c   :  { %v9726_v15 = vmax.f32 %v1351_v9, %v1353_v25  ;;  %v4593_v23 = vcombine.low %v2700_v60, %v2701_v0  ;;  %v4594_v21 = vcombine.low %v2702_v42, %v2703_v28  ;;  %v4595_v26 = vcombine.low %v2704_v36, %v2705_v31  ;;  %v2586_v9 = vld [vmem:[#allocation2 + $0x1c] sm:$0x1]  ;;  %v2585_v28 = vld [vmem:[#allocation2 + $0x1b] sm:$0x1] }
 0x15d   :  { %v9729_v6 = vmax.f32 %v1402_v59, %v1404_v58  ;;  %v4596_v34 = vcombine.low %v2706_v62, %v2707_v53  ;;  %v5098_v44 = vcombine.low %v5089_v4, %v5096_v13  ;;  %v5105_v8 = vrot.slane %v5097_v10, %v9359_v50  ;;  %v2581_v59 = vld [vmem:[#allocation2 + $0x17] sm:$0x1]  ;;  %v2829_v58 = vld [vmem:[#allocation2 + $0x16] sm:$0x1]  ;;  %v2831_v13 = vld [vmem:[#allocation2 + $0x18] sm:$0x1] }
 0x15e   :  { %v4603_v20 = vrot.slane %v4593_v23, %v9359_v50  ;;  %v542_v41 = vadd.f32 %v9685_v52, %v9519_v40  ;;  %v4610_v45 = vrot.slane %v4594_v21, %v9359_v50  ;;  %v4617_v60 = vrot.slane %v4595_v26, %v9359_v50  ;;  %v2830_v4 = vld [vmem:[#allocation2 + $0x17] sm:$0x1]  ;;  %v2833_v21 = vld [vmem:[#allocation2 + $0x1a] sm:$0x1]  ;;  %v2834_v26 = vld [vmem:[#allocation2 + $0x1b] sm:$0x1] }
 0x15f   :  { %v4624_v54 = vrot.slane %v4596_v34, %v9359_v50  ;;  %v3698_v3 = vcombine.low %v2579_v32, %v2580_v35  ;;  %v5112_v0 = vrot.slane %v5098_v44, %v9359_v50  ;;  %v3699_v25 = vcombine.low %v2581_v59, %v2582_v43  ;;  %v9744_v34 = vpop.f32.mrb[57].mxu0  ;;  %v2836_v32 = vld [vmem:[#allocation2 + $0x1d] sm:$0x1] }
 0x160   :  { %v698_v42 = vmax.f32 %v542_v41, 0.0  ;;  %v3700_v47 = vcombine.low %v2583_v61, %v2584_v49  ;;  %v4625_v40 = vcombine.low %v4603_v20, %v4610_v45  ;;  %v3701_v62 = vcombine.low %v2585_v28, %v2586_v9  ;;  %v2835_v41 = vld [vmem:[#allocation2 + $0x1c] sm:$0x1] }
 0x161   :  { %v4626_v36 = vcombine.low %v4617_v60, %v4624_v54  ;;  %v3708_v53 = vrot.slane %v3698_v3, %v9359_v50  ;;  %v5113_v10 = vcombine.low %v5105_v8, %v5112_v0  ;;  %v3715_v35 = vrot.slane %v3699_v25, %v9359_v50  ;;  %v9750_v8 = vpop.f32.mrb[58].mxu0  ;;  %v2832_v54 = vld [vmem:[#allocation2 + $0x19] sm:$0x1] }
 0x162   :  { %v1354_v31 = vcombine.high %v698_v42, %v698_v42  ;;  %v1361_v23 = vrot.slane %v698_v42, %v9381_v29  ;;  %v4633_v43 = vrot.slane %v4625_v40, %v9359_v50  ;;  %v3722_v44 = vrot.slane %v3700_v47, %v9359_v50 }
 0x163   :  { %v4640_v49 = vrot.slane %v4626_v36, %v9359_v50  ;;  %v3729_v20 = vrot.slane %v3701_v62, %v9359_v50  ;;  %5410 = vrot.lane.b32.xlu0 %v5113_v10, %s9106_s25  ;;  %v3730_v60 = vcombine.low %v3708_v53, %v3715_v35  ;;  %v5537_v59 = vcombine.low %v2829_v58, %v2830_v4  ;;  %v2644_v36 = vld [vmem:[#allocation2 + $0x16] sm:$0x1]  ;;  %v2645_v62 = vld [vmem:[#allocation2 + $0x17] sm:$0x1] }
 0x164   :  { %v1368_v9 = vrot.slane %v1354_v31, %v9381_v29  ;;  %v1369_v45 = vcombine.high %v1361_v23, %v1361_v23  ;;  %v5538_v0 = vcombine.low %v2831_v13, %v2832_v54  ;;  %v5539_v42 = vcombine.low %v2833_v21, %v2834_v26  ;;  %v2646_v13 = vld [vmem:[#allocation2 + $0x18] sm:$0x1]  ;;  %v2651_v31 = vld [vmem:[#allocation2 + $0x1d] sm:$0x1] }
 0x165   :  { %v4641_v61 = vcombine.low %v4633_v43, %v4640_v49  ;;  %v3731_v3 = vcombine.low %v3722_v44, %v3729_v20  ;;  %v3738_v47 = vrot.slane %v3730_v60, %v9359_v50  ;;  %v5540_v40 = vcombine.low %v2835_v41, %v2836_v32  ;;  %v2648_v43 = vld [vmem:[#allocation2 + $0x1a] sm:$0x1]  ;;  %v2649_v49 = vld [vmem:[#allocation2 + $0x1b] sm:$0x1]  ;;  %v2650_v44 = vld [vmem:[#allocation2 + $0x1c] sm:$0x1] }
 0x166   :  { %v1370_v28 = vcombine.high %v1368_v9, %v1368_v9  ;;  %v9754_v25 = vmax.f32 %v1361_v23, %v1369_v45  ;;  %v5547_v53 = vrot.slane %v5537_v59, %v9359_v50  ;;  %v5554_v58 = vrot.slane %v5538_v0, %v9359_v50  ;;  %v2647_v45 = vld [vmem:[#allocation2 + $0x19] sm:$0x1] }
 0x167   :  { %4938 = vrot.lane.b32.xlu1 %v4641_v61, %s9105_s24  ;;  %v3745_v10 = vrot.slane %v3731_v3, %v9359_v50  ;;  %v5561_v4 = vrot.slane %v5539_v42, %v9359_v50  ;;  %v5568_v23 = vrot.slane %v5540_v40, %v9359_v50  ;;  %v563_v21 = vadd.f32 %v9685_v52, %v9538_v24 }
 0x168   :  { %v9762_v35 = vmax.f32 %v1368_v9, %v1370_v28  ;;  %v555_v26 = vadd.f32 %v9685_v52, %v9544_v63  ;;  %v5569_v41 = vcombine.low %v5547_v53, %v5554_v58  ;;  %v566_v32 = vadd.f32 %v9685_v52, %v9548_v37 }
 0x169   :  { %v3746_v20 = vcombine.low %v3738_v47, %v3745_v10  ;;  %v4170_v60 = vcombine.low %v2644_v36, %v2645_v62  ;;  %v5570_v9 = vcombine.low %v5561_v4, %v5568_v23  ;;  %v703_v54 = vmax.f32 %v563_v21, 0.0 }
 0x16a   :  { %v701_v59 = vmax.f32 %v555_v26, 0.0  ;;  %v4171_v61 = vcombine.low %v2646_v13, %v2647_v45  ;;  %v5577_v24 = vrot.slane %v5569_v41, %v9359_v50  ;;  %v704_v3 = vmax.f32 %v566_v32, 0.0 }
 0x16b   :  { %3996 = vrot.lane.b32.xlu0 %v3746_v20, %s9101_s0  ;;  %v4172_v63 = vcombine.low %v2648_v43, %v2649_v49  ;;  %v4173_v0 = vcombine.low %v2650_v44, %v2651_v31  ;;  %v5584_v42 = vrot.slane %v5570_v9, %v9359_v50  ;;  %v1439_v28 = vcombine.high %v703_v54, %v703_v54  ;;  %v9780_v31 = vpop.f32.mrb[59].mxu0 }
 0x16c   :  { %v1446_v47 = vrot.slane %v703_v54, %v9381_v29  ;;  %v1405_v40 = vcombine.high %v701_v59, %v701_v59  ;;  %v1412_v37 = vrot.slane %v701_v59, %v9381_v29  ;;  %v1456_v36 = vcombine.high %v704_v3, %v704_v3 }
 0x16d   :  { %v1463_v62 = vrot.slane %v704_v3, %v9381_v29  ;;  %v4180_v10 = vrot.slane %v4170_v60, %v9359_v50  ;;  %v5585_v53 = vcombine.low %v5577_v24, %v5584_v42  ;;  %v1453_v58 = vrot.slane %v1439_v28, %v9381_v29 }
 0x16e   :  { %v1454_v4 = vcombine.high %v1446_v47, %v1446_v47  ;;  %v1419_v13 = vrot.slane %v1405_v40, %v9381_v29  ;;  %v1420_v23 = vcombine.high %v1412_v37, %v1412_v37  ;;  %v1470_v21 = vrot.slane %v1456_v36, %v9381_v29  ;;  %v2895_v36 = vld [vmem:[#allocation2 + $0x1f] sm:$0x1] }
 0x16f   :  { %v1471_v26 = vcombine.high %v1463_v62, %v1463_v62  ;;  %v4187_v43 = vrot.slane %v4171_v61, %v9359_v50  ;;  %5882 = vrot.lane.b32.xlu1 %v5585_v53, %s9104_s23  ;;  %v1455_v49 = vcombine.high %v1453_v58, %v1453_v58  ;;  %v4194_v41 = vrot.slane %v4172_v63, %v9359_v50  ;;  %v2896_v53 = vld [vmem:[#allocation2 + $0x20] sm:$0x1] }
 0x170   :  { %v2213_v44 = vmax.f32 %v1446_v47, %v1454_v4  ;;  %v1421_v20 = vcombine.high %v1419_v13, %v1419_v13  ;;  %v2209_v32 = vmax.f32 %v1412_v37, %v1420_v23  ;;  %v1472_v45 = vcombine.high %v1470_v21, %v1470_v21  ;;  %v2894_v47 = vld [vmem:[#allocation2 + $0x1e] sm:$0x1]  ;;  %v2899_v4 = vld [vmem:[#allocation2 + $0x23] sm:$0x1]  ;;  %v2900_v23 = vld [vmem:[#allocation2 + $0x24] sm:$0x1] }
 0x171   :  { %v2215_v60 = vmax.f32 %v1463_v62, %v1471_v26  ;;  %v4201_v9 = vrot.slane %v4173_v0, %v9359_v50  ;;  %v2214_v54 = vmax.f32 %v1453_v58, %v1455_v49  ;;  %v4202_v3 = vcombine.low %v4180_v10, %v4187_v43  ;;  %v2897_v58 = vld [vmem:[#allocation2 + $0x21] sm:$0x1]  ;;  %v2960_v26 = vld [vmem:[#allocation2 + $0x20] sm:$0x1] }
 0x172   :  { %v2301_v59 = vmax.f32 %v9712_v55, %v2213_v44  ;;  %v2210_v24 = vmax.f32 %v1419_v13, %v1421_v20  ;;  %v2297_v42 = vmax.f32 %v9721_v7, %v2209_v32  ;;  %v2216_v61 = vmax.f32 %v1470_v21, %v1472_v45  ;;  %v2898_v55 = vld [vmem:[#allocation2 + $0x22] sm:$0x1]  ;;  %v2901_v21 = vld [vmem:[#allocation2 + $0x25] sm:$0x1]  ;;  %v2964_v20 = vld [vmem:[#allocation2 + $0x24] sm:$0x1] }
 0x173   :  { %v2303_v28 = vmax.f32 %v9723_v22, %v2215_v60  ;;  %v4203_v40 = vcombine.low %v4194_v41, %v4201_v9  ;;  %v2302_v63 = vmax.f32 %v9717_v2, %v2214_v54  ;;  %v4210_v0 = vrot.slane %v4202_v3, %v9359_v50  ;;  %v2962_v44 = vld [vmem:[#allocation2 + $0x22] sm:$0x1]  ;;  %v9798_v41 = vpop.f32.mrb[60].mxu0  ;;  %v2959_v9 = vld [vmem:[#allocation2 + $0x1f] sm:$0x1] }
 0x174   :  { %v2405_v37 = vpack.c.bf16 %v2301_v59, %v2301_v59  ;;  %v2298_v62 = vmax.f32 %v9726_v15, %v2210_v24  ;;  %v2401_v10 = vpack.c.bf16 %v2297_v42, %v2297_v42  ;;  %v2304_v7 = vmax.f32 %v9729_v6, %v2216_v61  ;;  %v2966_v54 = vld [vmem:[#allocation2 + $0x26] sm:$0x1]  ;;  %v2961_v3 = vld [vmem:[#allocation2 + $0x21] sm:$0x1]  ;;  %v2963_v42 = vld [vmem:[#allocation2 + $0x23] sm:$0x1] }
 0x175   :  { %v2407_v13 = vpack.c.bf16 %v2303_v28, %v2303_v28  ;;  %v4217_v22 = vrot.slane %v4203_v40, %v9359_v50  ;;  %v2406_v43 = vpack.c.bf16 %v2302_v63, %v2302_v63  ;;  %v558_v15 = vadd.f32 %v9685_v52, %v9553_v46 }
 0x176   :  { %2470 = vst.msk [vmem:[#allocation2 + $0x37] sm:$0x1] %vm2329_vm3, %v2405_v37  ;;  %v2402_v2 = vpack.c.bf16 %v2298_v62, %v2298_v62  ;;  %v6009_v49 = vcombine.low %v2894_v47, %v2895_v36  ;;  %2466 = vst.msk [vmem:[#allocation2 + $0x33] sm:$0x1] %vm2329_vm3, %v2401_v10  ;;  %v2408_v6 = vpack.c.bf16 %v2304_v7, %v2304_v7  ;;  %v2965_v47 = vld [vmem:[#allocation2 + $0x25] sm:$0x1] }
 0x177   :  { %2472 = vst.msk [vmem:[#allocation2 + $0x39] sm:$0x1] %vm2329_vm3, %v2407_v13  ;;  %v4218_v32 = vcombine.low %v4210_v0, %v4217_v22  ;;  %v6010_v45 = vcombine.low %v2896_v53, %v2897_v58  ;;  %v6011_v60 = vcombine.low %v2898_v55, %v2899_v4  ;;  %2471 = vst.msk [vmem:[#allocation2 + $0x38] sm:$0x1] %vm2329_vm3, %v2406_v43  ;;  %v702_v46 = vmax.f32 %v558_v15, 0.0 }
 0x178   :  { %2467 = vst.msk [vmem:[#allocation2 + $0x34] sm:$0x1] %vm2329_vm3, %v2402_v2  ;;  %v6012_v59 = vcombine.low %v2900_v23, %v2901_v21  ;;  %v6019_v24 = vrot.slane %v6009_v49, %v9359_v50  ;;  %v6481_v61 = vcombine.low %v2959_v9, %v2960_v26  ;;  %2473 = vst.msk [vmem:[#allocation2 + $0x3a] sm:$0x1] %vm2329_vm3, %v2408_v6 }
 0x179   :  { %4468 = vrot.lane.b32.xlu1 %v4218_v32, %s9102_s20  ;;  %v6026_v28 = vrot.slane %v6010_v45, %v9359_v50  ;;  %v6033_v40 = vrot.slane %v6011_v60, %v9359_v50  ;;  %v6482_v36 = vcombine.low %v2961_v3, %v2962_v44  ;;  %v6483_v53 = vcombine.low %v2963_v42, %v2964_v20  ;;  %v2708_v42 = vld [vmem:[#allocation2 + $0x1e] sm:$0x1] }
 0x17a   :  { %v1422_v63 = vcombine.high %v702_v46, %v702_v46  ;;  %v1429_v37 = vrot.slane %v702_v46, %v9381_v29  ;;  %v6040_v62 = vrot.slane %v6012_v59, %v9359_v50  ;;  %v6484_v0 = vcombine.low %v2965_v47, %v2966_v54 }
 0x17b   :  { %v6041_v58 = vcombine.low %v6019_v24, %v6026_v28  ;;  %v6491_v55 = vrot.slane %v6481_v61, %v9359_v50  ;;  %v6498_v4 = vrot.slane %v6482_v36, %v9359_v50  ;;  %v6505_v10 = vrot.slane %v6483_v53, %v9359_v50  ;;  %v2709_v61 = vld [vmem:[#allocation2 + $0x1f] sm:$0x1]  ;;  %v9831_v36 = vpop.f32.mrb[61].mxu0 }
 0x17c   :  { %v1436_v7 = vrot.slane %v1422_v63, %v9381_v29  ;;  %v1437_v13 = vcombine.high %v1429_v37, %v1429_v37  ;;  %v6042_v22 = vcombine.low %v6033_v40, %v6040_v62  ;;  %v6512_v23 = vrot.slane %v6484_v0, %v9359_v50  ;;  %v2710_v62 = vld [vmem:[#allocation2 + $0x20] sm:$0x1]  ;;  %v2711_v0 = vld [vmem:[#allocation2 + $0x21] sm:$0x1] }
 0x17d   :  { %v6049_v21 = vrot.slane %v6041_v58, %v9359_v50  ;;  %v6513_v26 = vcombine.low %v6491_v55, %v6498_v4  ;;  %v579_v43 = vadd.f32 %v9685_v52, %v9566_v17  ;;  %v571_v2 = vadd.f32 %v9685_v52, %v9573_v30  ;;  %v2712_v58 = vld [vmem:[#allocation2 + $0x22] sm:$0x1] }
 0x17e   :  { %v1438_v15 = vcombine.high %v1436_v7, %v1436_v7  ;;  %v2211_v49 = vmax.f32 %v1429_v37, %v1437_v13  ;;  %v6056_v44 = vrot.slane %v6042_v22, %v9359_v50  ;;  %v6514_v20 = vcombine.low %v6505_v10, %v6512_v23  ;;  %v2714_v10 = vld [vmem:[#allocation2 + $0x24] sm:$0x1] }
 0x17f   :  { %v6521_v6 = vrot.slane %v6513_v26, %v9359_v50  ;;  %v707_v32 = vmax.f32 %v579_v43, 0.0  ;;  %v705_v45 = vmax.f32 %v571_v2, 0.0  ;;  %v582_v60 = vadd.f32 %v9685_v52, %v9578_v33  ;;  %v2713_v43 = vld [vmem:[#allocation2 + $0x23] sm:$0x1] }
 0x180   :  { %v2212_v9 = vmax.f32 %v1436_v7, %v1438_v15  ;;  %v2299_v54 = vmax.f32 %v9754_v25, %v2211_v49  ;;  %v6057_v46 = vcombine.low %v6049_v21, %v6056_v44  ;;  %v6528_v17 = vrot.slane %v6514_v20, %v9359_v50  ;;  %v2715_v7 = vld [vmem:[#allocation2 + $0x25] sm:$0x1]  ;;  %v2773_v20 = vld [vmem:[#allocation2 + $0x20] sm:$0x1] }
 0x181   :  { %v1507_v59 = vcombine.high %v707_v32, %v707_v32  ;;  %v1514_v30 = vrot.slane %v707_v32, %v9381_v29  ;;  %v1473_v24 = vcombine.high %v705_v45, %v705_v45  ;;  %v1480_v3 = vrot.slane %v705_v45, %v9381_v29  ;;  %v2777_v32 = vld [vmem:[#allocation2 + $0x24] sm:$0x1] }
 0x182   :  { %v2300_v28 = vmax.f32 %v9762_v35, %v2212_v9  ;;  %v2403_v40 = vpack.c.bf16 %v2299_v54, %v2299_v54  ;;  %6354 = vrot.lane.b32.xlu0 %v6057_v46, %s9108_s29  ;;  %v6529_v33 = vcombine.low %v6521_v6, %v6528_v17  ;;  %v708_v47 = vmax.f32 %v582_v60, 0.0  ;;  %v2775_v6 = vld [vmem:[#allocation2 + $0x22] sm:$0x1]  ;;  %v2772_v46 = vld [vmem:[#allocation2 + $0x1f] sm:$0x1] }
 0x183   :  { %v1521_v25 = vrot.slane %v1507_v59, %v9381_v29  ;;  %v1522_v53 = vcombine.high %v1514_v30, %v1514_v30  ;;  %v1487_v63 = vrot.slane %v1473_v24, %v9381_v29  ;;  %v1488_v37 = vcombine.high %v1480_v3, %v1480_v3  ;;  %v2774_v17 = vld [vmem:[#allocation2 + $0x21] sm:$0x1]  ;;  %v2779_v59 = vld [vmem:[#allocation2 + $0x26] sm:$0x1] }
 0x184   :  { %v2404_v55 = vpack.c.bf16 %v2300_v28, %v2300_v28  ;;  %2468 = vst.msk [vmem:[#allocation2 + $0x35] sm:$0x1] %vm2329_vm3, %v2403_v40  ;;  %6826 = vrot.lane.b32.xlu1 %v6529_v33, %s9107_s28  ;;  %v1524_v35 = vcombine.high %v708_v47, %v708_v47  ;;  %v1531_v4 = vrot.slane %v708_v47, %v9381_v29  ;;  %v2778_v28 = vld [vmem:[#allocation2 + $0x25] sm:$0x1]  ;;  %v9853_v40 = vpop.f32.mrb[62].mxu0 }
 0x185   :  { %v4642_v13 = vcombine.low %v2708_v42, %v2709_v61  ;;  %v1523_v22 = vcombine.high %v1521_v25, %v1521_v25  ;;  %v9838_v23 = vmax.f32 %v1514_v30, %v1522_v53  ;;  %v1489_v21 = vcombine.high %v1487_v63, %v1487_v63  ;;  %v2776_v61 = vld [vmem:[#allocation2 + $0x23] sm:$0x1] }
 0x186   :  { %v9840_v26 = vmax.f32 %v1480_v3, %v1488_v37  ;;  %2469 = vst.msk [vmem:[#allocation2 + $0x36] sm:$0x1] %vm2329_vm3, %v2404_v55  ;;  %v1538_v2 = vrot.slane %v1524_v35, %v9381_v29  ;;  %v1539_v15 = vcombine.high %v1531_v4, %v1531_v4  ;;  %v4643_v49 = vcombine.low %v2710_v62, %v2711_v0  ;;  %v2838_v37 = vld [vmem:[#allocation2 + $0x21] sm:$0x1]  ;;  %v2839_v62 = vld [vmem:[#allocation2 + $0x22] sm:$0x1] }
 0x187   :  { %v4644_v44 = vcombine.low %v2712_v58, %v2713_v43  ;;  %v9844_v45 = vmax.f32 %v1521_v25, %v1523_v22  ;;  %v9846_v60 = vmax.f32 %v1487_v63, %v1489_v21  ;;  %v4645_v9 = vcombine.low %v2714_v10, %v2715_v7  ;;  %v2837_v63 = vld [vmem:[#allocation2 + $0x20] sm:$0x1]  ;;  %v2842_v10 = vld [vmem:[#allocation2 + $0x25] sm:$0x1]  ;;  %v9860_v7 = vpop.f32.mrb[63].mxu0 }
 0x188   :  { %v4652_v54 = vrot.slane %v4642_v13, %v9359_v50  ;;  %v1540_v30 = vcombine.high %v1538_v2, %v1538_v2  ;;  %v9849_v24 = vmax.f32 %v1531_v4, %v1539_v15  ;;  %v4659_v3 = vrot.slane %v4643_v49, %v9359_v50  ;;  %v2841_v4 = vld [vmem:[#allocation2 + $0x24] sm:$0x1]  ;;  %v2843_v15 = vld [vmem:[#allocation2 + $0x26] sm:$0x1]  ;;  %v2844_v49 = vld [vmem:[#allocation2 + $0x27] sm:$0x1] }
 0x189   :  { %v4666_v42 = vrot.slane %v4644_v44, %v9359_v50  ;;  %v4673_v33 = vrot.slane %v4645_v9, %v9359_v50  ;;  %v5114_v47 = vcombine.low %v2772_v46, %v2773_v20  ;;  %v5115_v25 = vcombine.low %v2774_v17, %v2775_v6  ;;  %v2840_v6 = vld [vmem:[#allocation2 + $0x23] sm:$0x1] }
 0x18a   :  { %v5116_v53 = vcombine.low %v2776_v61, %v2777_v32  ;;  %v9856_v0 = vmax.f32 %v1538_v2, %v1540_v30  ;;  %v4674_v58 = vcombine.low %v4652_v54, %v4659_v3  ;;  %v5117_v55 = vcombine.low %v2778_v28, %v2779_v59  ;;  %v2590_v61 = vld [vmem:[#allocation2 + $0x22] sm:$0x1] }
 0x18b   :  { %v574_v35 = vadd.f32 %v9685_v52, %v9596_v57  ;;  %v4675_v13 = vcombine.low %v4666_v42, %v4673_v33  ;;  %v5124_v22 = vrot.slane %v5114_v47, %v9359_v50  ;;  %v5131_v21 = vrot.slane %v5115_v25, %v9359_v50  ;;  %v2588_v42 = vld [vmem:[#allocation2 + $0x20] sm:$0x1] }
 0x18c   :  { %v5138_v43 = vrot.slane %v5116_v53, %v9359_v50  ;;  %v4682_v2 = vrot.slane %v4674_v58, %v9359_v50  ;;  %v5145_v44 = vrot.slane %v5117_v55, %v9359_v50  ;;  %v5586_v57 = vcombine.low %v2837_v63, %v2838_v37  ;;  %v2592_v53 = vld [vmem:[#allocation2 + $0x24] sm:$0x1]  ;;  %v2587_v55 = vld [vmem:[#allocation2 + $0x1f] sm:$0x1] }
 0x18d   :  { %v706_v20 = vmax.f32 %v574_v35, 0.0  ;;  %v4689_v32 = vrot.slane %v4675_v13, %v9359_v50  ;;  %v5146_v9 = vcombine.low %v5124_v22, %v5131_v21  ;;  %v5587_v54 = vcombine.low %v2839_v62, %v2840_v6  ;;  %v2589_v35 = vld [vmem:[#allocation2 + $0x21] sm:$0x1]  ;;  %v2591_v22 = vld [vmem:[#allocation2 + $0x23] sm:$0x1] }
 0x18e   :  { %v5588_v46 = vcombine.low %v2841_v4, %v2842_v10  ;;  %v5147_v17 = vcombine.low %v5138_v43, %v5145_v44  ;;  %v5589_v3 = vcombine.low %v2843_v15, %v2844_v49  ;;  %v5596_v47 = vrot.slane %v5586_v57, %v9359_v50  ;;  %v2594_v4 = vld [vmem:[#allocation2 + $0x26] sm:$0x1]  ;;  %v2593_v44 = vld [vmem:[#allocation2 + $0x25] sm:$0x1] }
 0x18f   :  { %v1490_v59 = vcombine.high %v706_v20, %v706_v20  ;;  %v1497_v30 = vrot.slane %v706_v20, %v9381_v29  ;;  %v4690_v28 = vcombine.low %v4682_v2, %v4689_v32  ;;  %v5154_v33 = vrot.slane %v5146_v9, %v9359_v50 }
 0x190   :  { %v5603_v25 = vrot.slane %v5587_v54, %v9359_v50  ;;  %v5161_v63 = vrot.slane %v5147_v17, %v9359_v50  ;;  %v5610_v58 = vrot.slane %v5588_v46, %v9359_v50  ;;  %v5617_v10 = vrot.slane %v5589_v3, %v9359_v50  ;;  %v2652_v54 = vld [vmem:[#allocation2 + $0x20] sm:$0x1]  ;;  %v2653_v46 = vld [vmem:[#allocation2 + $0x21] sm:$0x1]  ;;  %v2654_v17 = vld [vmem:[#allocation2 + $0x22] sm:$0x1] }
 0x191   :  { %v1504_v37 = vrot.slane %v1490_v59, %v9381_v29  ;;  %v1505_v62 = vcombine.high %v1497_v30, %v1497_v30  ;;  %4940 = vrot.lane.b32.xlu0 %v4690_v28, %s9105_s24  ;;  %v3747_v21 = vcombine.low %v2587_v55, %v2588_v42  ;;  %v3748_v43 = vcombine.low %v2589_v35, %v2590_v61 }
 0x192   :  { %v5618_v13 = vcombine.low %v5596_v47, %v5603_v25  ;;  %v5162_v15 = vcombine.low %v5154_v33, %v5161_v63  ;;  %v3749_v20 = vcombine.low %v2591_v22, %v2592_v53  ;;  %v5619_v6 = vcombine.low %v5610_v58, %v5617_v10  ;;  %v2655_v25 = vld [vmem:[#allocation2 + $0x23] sm:$0x1]  ;;  %v2656_v53 = vld [vmem:[#allocation2 + $0x24] sm:$0x1]  ;;  %v2657_v63 = vld [vmem:[#allocation2 + $0x25] sm:$0x1] }
 0x193   :  { %v1506_v49 = vcombine.high %v1504_v37, %v1504_v37  ;;  %v9877_v2 = vmax.f32 %v1497_v30, %v1505_v62  ;;  %v3750_v32 = vcombine.low %v2593_v44, %v2594_v4  ;;  %v3757_v9 = vrot.slane %v3747_v21, %v9359_v50  ;;  %v2659_v22 = vld [vmem:[#allocation2 + $0x27] sm:$0x1] }
 0x194   :  { %v5626_v57 = vrot.slane %v5618_v13, %v9359_v50  ;;  %5412 = vrot.lane.b32.xlu1 %v5162_v15, %s9106_s25  ;;  %v3764_v3 = vrot.slane %v3748_v43, %v9359_v50  ;;  %v3771_v30 = vrot.slane %v3749_v20, %v9359_v50  ;;  %v595_v42 = vadd.f32 %v9685_v52, %v9598_v11  ;;  %v2658_v13 = vld [vmem:[#allocation2 + $0x26] sm:$0x1] }
 0x195   :  { %v9882_v59 = vmax.f32 %v1504_v37, %v1506_v49  ;;  %v5633_v61 = vrot.slane %v5619_v6, %v9359_v50  ;;  %v3778_v28 = vrot.slane %v3750_v32, %v9359_v50  ;;  %v587_v33 = vadd.f32 %v9685_v52, %v9616_v1 }
 0x196   :  { %v598_v47 = vadd.f32 %v9685_v52, %v9620_v5  ;;  %v3779_v37 = vcombine.low %v3757_v9, %v3764_v3  ;;  %v711_v62 = vmax.f32 %v595_v42, 0.0  ;;  %v4219_v58 = vcombine.low %v2652_v54, %v2653_v46 }
 0x197   :  { %v4220_v55 = vcombine.low %v2654_v17, %v2655_v25  ;;  %v5634_v35 = vcombine.low %v5626_v57, %v5633_v61  ;;  %v3780_v4 = vcombine.low %v3771_v30, %v3778_v28  ;;  %v709_v11 = vmax.f32 %v587_v33, 0.0 }
 0x198   :  { %v712_v10 = vmax.f32 %v598_v47, 0.0  ;;  %v3787_v21 = vrot.slane %v3779_v37, %v9359_v50  ;;  %v1575_v43 = vcombine.high %v711_v62, %v711_v62  ;;  %v1582_v1 = vrot.slane %v711_v62, %v9381_v29 }
 0x199   :  { %v4221_v15 = vcombine.low %v2656_v53, %v2657_v63  ;;  %5884 = vrot.lane.b32.xlu0 %v5634_v35, %s9104_s23  ;;  %v3794_v5 = vrot.slane %v3780_v4, %v9359_v50  ;;  %v1541_v49 = vcombine.high %v709_v11, %v709_v11  ;;  %v1548_v44 = vrot.slane %v709_v11, %v9381_v29 }
 0x19a   :  { %v1592_v20 = vcombine.high %v712_v10, %v712_v10  ;;  %v1589_v6 = vrot.slane %v1575_v43, %v9381_v29  ;;  %v1590_v57 = vcombine.high %v1582_v1, %v1582_v1  ;;  %v1599_v32 = vrot.slane %v712_v10, %v9381_v29 }
 0x19b   :  { %v4222_v9 = vcombine.low %v2658_v13, %v2659_v22  ;;  %v3795_v54 = vcombine.low %v3787_v21, %v3794_v5  ;;  %v1555_v46 = vrot.slane %v1541_v49, %v9381_v29  ;;  %v1556_v17 = vcombine.high %v1548_v44, %v1548_v44  ;;  %v2902_v5 = vld [vmem:[#allocation2 + $0x28] sm:$0x1]  ;;  %v2903_v49 = vld [vmem:[#allocation2 + $0x29] sm:$0x1] }
 0x19c   :  { %v1606_v3 = vrot.slane %v1592_v20, %v9381_v29  ;;  %v1591_v30 = vcombine.high %v1589_v6, %v1589_v6  ;;  %v2229_v42 = vmax.f32 %v1582_v1, %v1590_v57  ;;  %v1607_v61 = vcombine.high %v1599_v32, %v1599_v32  ;;  %v2967_v1 = vld [vmem:[#allocation2 + $0x29] sm:$0x1]  ;;  %v2972_v57 = vld [vmem:[#allocation2 + $0x2e] sm:$0x1] }
 0x19d   :  { %v4229_v28 = vrot.slane %v4219_v58, %v9359_v50  ;;  %3998 = vrot.lane.b32.xlu1 %v3795_v54, %s9101_s0  ;;  %v1557_v33 = vcombine.high %v1555_v46, %v1555_v46  ;;  %v2225_v47 = vmax.f32 %v1548_v44, %v1556_v17  ;;  %v4236_v53 = vrot.slane %v4220_v55, %v9359_v50  ;;  %v2968_v55 = vld [vmem:[#allocation2 + $0x2a] sm:$0x1] }
 0x19e   :  { %v1608_v25 = vcombine.high %v1606_v3, %v1606_v3  ;;  %v2230_v63 = vmax.f32 %v1589_v6, %v1591_v30  ;;  %v2309_v37 = vmax.f32 %v9838_v23, %v2229_v42  ;;  %v2231_v62 = vmax.f32 %v1599_v32, %v1607_v61  ;;  %v2971_v6 = vld [vmem:[#allocation2 + $0x2d] sm:$0x1]  ;;  %v2974_v32 = vld [vmem:[#allocation2 + $0x30] sm:$0x1]  ;;  %v2904_v17 = vld [vmem:[#allocation2 + $0x2a] sm:$0x1] }
 0x19f   :  { %v4243_v35 = vrot.slane %v4221_v15, %v9359_v50  ;;  %v2226_v4 = vmax.f32 %v1555_v46, %v1557_v33  ;;  %v2305_v11 = vmax.f32 %v9840_v26, %v2225_v47  ;;  %v4250_v13 = vrot.slane %v4222_v9, %v9359_v50  ;;  %v2970_v26 = vld [vmem:[#allocation2 + $0x2c] sm:$0x1]  ;;  %v2973_v46 = vld [vmem:[#allocation2 + $0x2f] sm:$0x1]  ;;  %v2969_v42 = vld [vmem:[#allocation2 + $0x2b] sm:$0x1] }
 0x1a0   :  { %v2232_v10 = vmax.f32 %v1606_v3, %v1608_v25  ;;  %v2310_v58 = vmax.f32 %v9844_v45, %v2230_v63  ;;  %v2413_v22 = vpack.c.bf16 %v2309_v37, %v2309_v37  ;;  %v2311_v21 = vmax.f32 %v9849_v24, %v2231_v62  ;;  %v9019_v33 = vld [vmem:[%s10841_s2] sm:$0xff]   ;;  %v2909_v63 = vld [vmem:[#allocation2 + $0x2f] sm:$0x1] }
 0x1a1   :  { %v4251_v43 = vcombine.low %v4229_v28, %v4236_v53  ;;  %v2306_v23 = vmax.f32 %v9846_v60, %v2226_v4  ;;  %v2409_v44 = vpack.c.bf16 %v2305_v11, %v2305_v11  ;;  %v4252_v20 = vcombine.low %v4243_v35, %v4250_v13  ;;  %v2905_v60 = vld [vmem:[#allocation2 + $0x2b] sm:$0x1]  ;;  %v2908_v28 = vld [vmem:[#allocation2 + $0x2e] sm:$0x1]  ;;  %v2906_v53 = vld [vmem:[#allocation2 + $0x2c] sm:$0x1]  ;;  %7533 = vmatpush1.bf16.msra.mxu1 %v9019_v33 }
 0x1a2   :  { %v2312_v15 = vmax.f32 %v9856_v0, %v2232_v10  ;;  %v2414_v9 = vpack.c.bf16 %v2310_v58, %v2310_v58  ;;  %2478 = vst.msk [vmem:[#allocation2 + $0x41] sm:$0x1] %vm2329_vm3, %v2413_v22  ;;  %v2415_v45 = vpack.c.bf16 %v2311_v21, %v2311_v21  ;;  %v590_v54 = vadd.f32 %v9685_v52, %v9634_v16  ;;  %v2907_v22 = vld [vmem:[#allocation2 + $0x2d] sm:$0x1] }
 0x1a3   :  { %v4259_v24 = vrot.slane %v4251_v43, %v9359_v50  ;;  %v2410_v3 = vpack.c.bf16 %v2306_v23, %v2306_v23  ;;  %2474 = vst.msk [vmem:[#allocation2 + $0x3d] sm:$0x1] %vm2329_vm3, %v2409_v44  ;;  %v4266_v30 = vrot.slane %v4252_v20, %v9359_v50  ;;  %v6530_v61 = vcombine.low %v2967_v1, %v2968_v55 }
 0x1a4   :  { %v2416_v0 = vpack.c.bf16 %v2312_v15, %v2312_v15  ;;  %2479 = vst.msk [vmem:[#allocation2 + $0x42] sm:$0x1] %vm2329_vm3, %v2414_v9  ;;  %2480 = vst.msk [vmem:[#allocation2 + $0x43] sm:$0x1] %vm2329_vm3, %v2415_v45  ;;  %v710_v16 = vmax.f32 %v590_v54, 0.0  ;;  %v6531_v52 = vcombine.low %v2969_v42, %v2970_v26  ;;  %v6532_v47 = vcombine.low %v2971_v6, %v2972_v57 }
 0x1a5   :  { %v6533_v25 = vcombine.low %v2973_v46, %v2974_v32  ;;  %2475 = vst.msk [vmem:[#allocation2 + $0x3e] sm:$0x1] %vm2329_vm3, %v2410_v3  ;;  %v4267_v37 = vcombine.low %v4259_v24, %v4266_v30  ;;  %v6540_v62 = vrot.slane %v6530_v61, %v9359_v50  ;;  %v6058_v35 = vcombine.low %v2902_v5, %v2903_v49  ;;  %v9942_v6 = vld [vmem:[%s10845_s6] ss:$0 sm:$0xff]  ;;  %v9020_v3 = vld [vmem:[%s10841_s2 + $0x8] sm:$0xff]  }
 0x1a6   :  { %2481 = vst.msk [vmem:[#allocation2 + $0x44] sm:$0x1] %vm2329_vm3, %v2416_v0  ;;  %v6059_v4 = vcombine.low %v2904_v17, %v2905_v60  ;;  %v1558_v11 = vcombine.high %v710_v16, %v710_v16  ;;  %v1565_v10 = vrot.slane %v710_v16, %v9381_v29  ;;  %v6547_v13 = vrot.slane %v6531_v52, %v9359_v50  ;;  %v2781_v61 = vld [vmem:[#allocation2 + $0x2a] sm:$0x1] }
 0x1a7   :  { %v6554_v58 = vrot.slane %v6532_v47, %v9359_v50  ;;  %7534 = vmatprep.subr.bf16.mxu1 %v9099_v38  ;;  %4470 = vrot.lane.b32.xlu0 %v4267_v37, %s9102_s20  ;;  %v6561_v21 = vrot.slane %v6533_v25, %v9359_v50  ;;  %v6060_v43 = vcombine.low %v2906_v53, %v2907_v22  ;;  %v2787_v22 = vld [vmem:[#allocation2 + $0x30] sm:$0x1] }
 0x1a8   :  { %v6061_v1 = vcombine.low %v2908_v28, %v2909_v63  ;;  %v6068_v55 = vrot.slane %v6058_v35, %v9359_v50  ;;  %v1572_v5 = vrot.slane %v1558_v11, %v9381_v29  ;;  %v1573_v49 = vcombine.high %v1565_v10, %v1565_v10  ;;  %7535 = vmatpush1.bf16.msra.mxu1 %v9020_v3  ;;  %v2780_v63 = vld [vmem:[#allocation2 + $0x29] sm:$0x1]  ;;  %v2785_v35 = vld [vmem:[#allocation2 + $0x2e] sm:$0x1] }
 0x1a9   :  { %v6562_v23 = vcombine.low %v6540_v62, %v6547_v13  ;;  %v6075_v44 = vrot.slane %v6059_v4, %v9359_v50  ;;  %v6563_v15 = vcombine.low %v6554_v58, %v6561_v21  ;;  %v6082_v20 = vrot.slane %v6060_v43, %v9359_v50  ;;  %7536 = vmatprep.subr.bf16.mxu1 %v9099_v38  ;;  %v2782_v58 = vld [vmem:[#allocation2 + $0x2b] sm:$0x1] }
 0x1aa   :  { %v6089_v26 = vrot.slane %v6061_v1, %v9359_v50  ;;  %v611_v57 = vadd.f32 %v9942_v6, %v9638_v27  ;;  %v1574_v32 = vcombine.high %v1572_v5, %v1572_v5  ;;  %v2227_v9 = vmax.f32 %v1565_v10, %v1573_v49 }
 0x1ab   :  { %v6570_v45 = vrot.slane %v6562_v23, %v9359_v50  ;;  %v6090_v24 = vcombine.low %v6068_v55, %v6075_v44  ;;  %v6577_v54 = vrot.slane %v6563_v15, %v9359_v50  ;;  %v603_v60 = vadd.f32 %v9942_v6, %v9642_v18  ;;  %v2784_v55 = vld [vmem:[#allocation2 + $0x2d] sm:$0x1]  ;;  %v2786_v15 = vld [vmem:[#allocation2 + $0x2f] sm:$0x1] }
 0x1ac   :  { %v6091_v46 = vcombine.low %v6082_v20, %v6089_v26  ;;  %v715_v17 = vmax.f32 %v611_v57, 0.0  ;;  %v2228_v0 = vmax.f32 %v1572_v5, %v1574_v32  ;;  %v2307_v30 = vmax.f32 %v9877_v2, %v2227_v9  ;;  %v2783_v2 = vld [vmem:[#allocation2 + $0x2c] sm:$0x1]  ;;  %v2716_v26 = vld [vmem:[#allocation2 + $0x28] sm:$0x1] }
 0x1ad   :  { %v6098_v27 = vrot.slane %v6090_v24, %v9359_v50  ;;  %v614_v42 = vadd.f32 %v9942_v6, %v9647_v19  ;;  %v6578_v28 = vcombine.low %v6570_v45, %v6577_v54  ;;  %v713_v25 = vmax.f32 %v603_v60, 0.0  ;;  %v2717_v57 = vld [vmem:[#allocation2 + $0x29] sm:$0x1]  ;;  %v2718_v54 = vld [vmem:[#allocation2 + $0x2a] sm:$0x1] }
 0x1ae   :  { %v6105_v33 = vrot.slane %v6091_v46, %v9359_v50  ;;  %v1643_v16 = vcombine.high %v715_v17, %v715_v17  ;;  %v1650_v52 = vrot.slane %v715_v17, %v9381_v29  ;;  %v2308_v18 = vmax.f32 %v9882_v59, %v2228_v0  ;;  %v2719_v46 = vld [vmem:[#allocation2 + $0x2b] sm:$0x1] }
 0x1af   :  { %v2411_v47 = vpack.c.bf16 %v2307_v30, %v2307_v30  ;;  %v716_v53 = vmax.f32 %v614_v42, 0.0  ;;  %6828 = vrot.lane.b32.xlu0 %v6578_v28, %s9107_s28  ;;  %v5163_v4 = vcombine.low %v2780_v63, %v2781_v61  ;;  %v1609_v10 = vcombine.high %v713_v25, %v713_v25  ;;  %v2720_v30 = vld [vmem:[#allocation2 + $0x2c] sm:$0x1]  ;;  %v2723_v42 = vld [vmem:[#allocation2 + $0x2f] sm:$0x1] }
 0x1b0   :  { %v6106_v19 = vcombine.low %v6098_v27, %v6105_v33  ;;  %v1657_v37 = vrot.slane %v1643_v16, %v9381_v29  ;;  %v1658_v62 = vcombine.high %v1650_v52, %v1650_v52  ;;  %v2412_v11 = vpack.c.bf16 %v2308_v18, %v2308_v18  ;;  %v2722_v27 = vld [vmem:[#allocation2 + $0x2e] sm:$0x1] }
 0x1b1   :  { %2476 = vst.msk [vmem:[#allocation2 + $0x3f] sm:$0x1] %vm2329_vm3, %v2411_v47  ;;  %v1616_v59 = vrot.slane %v713_v25, %v9381_v29  ;;  %v1660_v13 = vcombine.high %v716_v53, %v716_v53  ;;  %v1667_v1 = vrot.slane %v716_v53, %v9381_v29  ;;  %v5164_v5 = vcombine.low %v2782_v58, %v2783_v2  ;;  %v2721_v53 = vld [vmem:[#allocation2 + $0x2d] sm:$0x1]  ;;  %v2598_v2 = vld [vmem:[#allocation2 + $0x2c] sm:$0x1] }
 0x1b2   :  { %6356 = vrot.lane.b32.xlu1 %v6106_v19, %s9108_s29  ;;  %v1659_v21 = vcombine.high %v1657_v37, %v1657_v37  ;;  %v9966_v43 = vmax.f32 %v1650_v52, %v1658_v62  ;;  %2477 = vst.msk [vmem:[#allocation2 + $0x40] sm:$0x1] %vm2329_vm3, %v2412_v11  ;;  %v1623_v49 = vrot.slane %v1609_v10, %v9381_v29  ;;  %v2596_v52 = vld [vmem:[#allocation2 + $0x2a] sm:$0x1]  ;;  %v9021_v19 = vld [vmem:[%s10841_s2 + $0x10] sm:$0xff]  }
 0x1b3   :  { %v1624_v23 = vcombine.high %v1616_v59, %v1616_v59  ;;  %v1674_v44 = vrot.slane %v1660_v13, %v9381_v29  ;;  %v5165_v20 = vcombine.low %v2784_v55, %v2785_v35  ;;  %v1675_v9 = vcombine.high %v1667_v1, %v1667_v1  ;;  %v2595_v11 = vld [vmem:[#allocation2 + $0x29] sm:$0x1]  ;;  %v2600_v10 = vld [vmem:[#allocation2 + $0x2e] sm:$0x1]  ;;  %7537 = vmatpush1.bf16.msra.mxu1 %v9021_v19  ;;  %v2848_v19 = vld [vmem:[#allocation2 + $0x2d] sm:$0x1] }
 0x1b4   :  { %v9972_v32 = vmax.f32 %v1657_v37, %v1659_v21  ;;  %v5166_v45 = vcombine.low %v2786_v15, %v2787_v22  ;;  %v5173_v24 = vrot.slane %v5163_v4, %v9359_v50  ;;  %v1625_v17 = vcombine.high %v1623_v49, %v1623_v49  ;;  %v2597_v21 = vld [vmem:[#allocation2 + $0x2b] sm:$0x1]  ;;  %7538 = vmatprep.subr.bf16.mxu1 %v9099_v38 }
 0x1b5   :  { %v9975_v60 = vmax.f32 %v1616_v59, %v1624_v23  ;;  %v1676_v3 = vcombine.high %v1674_v44, %v1674_v44  ;;  %v5180_v0 = vrot.slane %v5164_v5, %v9359_v50  ;;  %v9978_v61 = vmax.f32 %v1667_v1, %v1675_v9  ;;  %v2602_v59 = vld [vmem:[#allocation2 + $0x30] sm:$0x1]  ;;  %v2599_v23 = vld [vmem:[#allocation2 + $0x2d] sm:$0x1] }
 0x1b6   :  { %v5187_v28 = vrot.slane %v5165_v20, %v9359_v50  ;;  %v5194_v33 = vrot.slane %v5166_v45, %v9359_v50  ;;  %v4691_v16 = vcombine.low %v2716_v26, %v2717_v57  ;;  %v9982_v18 = vmax.f32 %v1623_v49, %v1625_v17  ;;  %v2845_v45 = vld [vmem:[#allocation2 + $0x2a] sm:$0x1] }
 0x1b7   :  { %v9984_v47 = vmax.f32 %v1674_v44, %v1676_v3  ;;  %v5195_v25 = vcombine.low %v5173_v24, %v5180_v0  ;;  %v4692_v63 = vcombine.low %v2718_v54, %v2719_v46  ;;  %v4693_v62 = vcombine.low %v2720_v30, %v2721_v53  ;;  %v2601_v44 = vld [vmem:[#allocation2 + $0x2f] sm:$0x1]  ;;  %v9022_v24 = vld [vmem:[%s10841_s2 + $0x18] sm:$0xff]   ;;  %v2847_v0 = vld [vmem:[#allocation2 + $0x2c] sm:$0x1] }
 0x1b8   :  { %v5196_v37 = vcombine.low %v5187_v28, %v5194_v33  ;;  %v4694_v35 = vcombine.low %v2722_v27, %v2723_v42  ;;  %v4701_v4 = vrot.slane %v4691_v16, %v9359_v50  ;;  %v606_v22 = vadd.f32 %v9942_v6, %v9649_v48  ;;  %v2846_v48 = vld [vmem:[#allocation2 + $0x2b] sm:$0x1]  ;;  %v2849_v30 = vld [vmem:[#allocation2 + $0x2e] sm:$0x1]  ;;  %v2850_v27 = vld [vmem:[#allocation2 + $0x2f] sm:$0x1]  ;;  %7539 = vmatpush1.bf16.msra.mxu1 %v9022_v24 }
 0x1b9   :  { %v5203_v13 = vrot.slane %v5195_v25, %v9359_v50  ;;  %v4708_v58 = vrot.slane %v4692_v63, %v9359_v50  ;;  %v3796_v1 = vcombine.low %v2595_v11, %v2596_v52  ;;  %v4715_v5 = vrot.slane %v4693_v62, %v9359_v50  ;;  %v2851_v52 = vld [vmem:[#allocation2 + $0x30] sm:$0x1]  ;;  %v2852_v25 = vld [vmem:[#allocation2 + $0x31] sm:$0x1]  ;;  %7540 = vmatprep.subr.bf16.mxu1 %v9099_v38 }
 0x1ba   :  { %v5210_v55 = vrot.slane %v5196_v37, %v9359_v50  ;;  %v4722_v49 = vrot.slane %v4694_v35, %v9359_v50  ;;  %v3797_v15 = vcombine.low %v2597_v21, %v2598_v2  ;;  %v714_v26 = vmax.f32 %v606_v22, 0.0 }
 0x1bb   :  { %v4723_v20 = vcombine.low %v4701_v4, %v4708_v58  ;;  %v3798_v57 = vcombine.low %v2599_v23, %v2600_v10  ;;  %v3799_v9 = vcombine.low %v2601_v44, %v2602_v59  ;;  %v3806_v17 = vrot.slane %v3796_v1, %v9359_v50  ;;  %v9023_v10 = vld [vmem:[%s10841_s2 + $0x20] sm:$0xff]   ;;  %v2661_v23 = vld [vmem:[#allocation2 + $0x2b] sm:$0x1] }
 0x1bc   :  { %v5211_v54 = vcombine.low %v5203_v13, %v5210_v55  ;;  %v4724_v46 = vcombine.low %v4715_v5, %v4722_v49  ;;  %v3813_v3 = vrot.slane %v3797_v15, %v9359_v50  ;;  %v1626_v28 = vcombine.high %v714_v26, %v714_v26  ;;  %v2660_v49 = vld [vmem:[#allocation2 + $0x2a] sm:$0x1]  ;;  %7541 = vmatpush1.bf16.msra.mxu1 %v9023_v10 }
 0x1bd   :  { %v4731_v42 = vrot.slane %v4723_v20, %v9359_v50  ;;  %v1633_v33 = vrot.slane %v714_v26, %v9381_v29  ;;  %v3820_v16 = vrot.slane %v3798_v57, %v9359_v50  ;;  %v3827_v63 = vrot.slane %v3799_v9, %v9359_v50  ;;  %v2662_v57 = vld [vmem:[#allocation2 + $0x2c] sm:$0x1]  ;;  %7542 = vmatprep.subr.bf16.mxu1 %v9099_v38 }
 0x1be   :  { %5414 = vrot.lane.b32.xlu0 %v5211_v54, %s9106_s25  ;;  %v4738_v53 = vrot.slane %v4724_v46, %v9359_v50  ;;  %v3828_v2 = vcombine.low %v3806_v17, %v3813_v3  ;;  %v5635_v37 = vcombine.low %v2845_v45, %v2846_v48  ;;  %v1640_v62 = vrot.slane %v1626_v28, %v9381_v29  ;;  %v2664_v54 = vld [vmem:[#allocation2 + $0x2e] sm:$0x1]  ;;  %v2665_v46 = vld [vmem:[#allocation2 + $0x2f] sm:$0x1] }
 0x1bf   :  { %v1641_v35 = vcombine.high %v1633_v33, %v1633_v33  ;;  %v5636_v4 = vcombine.low %v2847_v0, %v2848_v19  ;;  %v5637_v11 = vcombine.low %v2849_v30, %v2850_v27  ;;  %v3829_v13 = vcombine.low %v3820_v16, %v3827_v63  ;;  %v2663_v30 = vld [vmem:[#allocation2 + $0x2d] sm:$0x1]  ;;  %v2667_v16 = vld [vmem:[#allocation2 + $0x31] sm:$0x1] }
 0x1c0   :  { %v4739_v59 = vcombine.low %v4731_v42, %v4738_v53  ;;  %v3836_v58 = vrot.slane %v3828_v2, %v9359_v50  ;;  %v5638_v22 = vcombine.low %v2851_v52, %v2852_v25  ;;  %v1642_v21 = vcombine.high %v1640_v62, %v1640_v62  ;;  %v9024_v63 = vld [vmem:[%s10841_s2 + $0x28] sm:$0xff]  }
 0x1c1   :  { %v10015_v1 = vmax.f32 %v1633_v33, %v1641_v35  ;;  %v5645_v55 = vrot.slane %v5635_v37, %v9359_v50  ;;  %v5652_v5 = vrot.slane %v5636_v4, %v9359_v50  ;;  %v3843_v44 = vrot.slane %v3829_v13, %v9359_v50  ;;  %v2666_v33 = vld [vmem:[#allocation2 + $0x30] sm:$0x1]  ;;  %7543 = vmatpush1.bf16.msra.mxu1 %v9024_v63 }
 0x1c2   :  { %4942 = vrot.lane.b32.xlu1 %v4739_v59, %s9105_s24  ;;  %v5659_v15 = vrot.slane %v5637_v11, %v9359_v50  ;;  %v5666_v20 = vrot.slane %v5638_v22, %v9359_v50  ;;  %v627_v26 = vadd.f32 %v9942_v6, %v9661_v39  ;;  %v10025_v9 = vmax.f32 %v1640_v62, %v1642_v21 }
 0x1c3   :  { %v5667_v45 = vcombine.low %v5645_v55, %v5652_v5  ;;  %v619_v48 = vadd.f32 %v9942_v6, %v9695_v51  ;;  %v630_v24 = vadd.f32 %v9942_v6, %v9702_v12  ;;  %v3844_v17 = vcombine.low %v3836_v58, %v3843_v44  ;;  %7544 = vmatprep.subr.bf16.mxu1 %v9099_v38 }
 0x1c4   :  { %v5668_v3 = vcombine.low %v5659_v15, %v5666_v20  ;;  %v719_v0 = vmax.f32 %v627_v26, 0.0  ;;  %v4268_v27 = vcombine.low %v2660_v49, %v2661_v23  ;;  %v4269_v52 = vcombine.low %v2662_v57, %v2663_v30 }
 0x1c5   :  { %v5675_v39 = vrot.slane %v5667_v45, %v9359_v50  ;;  %v717_v42 = vmax.f32 %v619_v48, 0.0  ;;  %v720_v28 = vmax.f32 %v630_v24, 0.0  ;;  %4000 = vrot.lane.b32.xlu0 %v3844_v17, %s9101_s0  ;;  %v4270_v53 = vcombine.low %v2664_v54, %v2665_v46 }
 0x1c6   :  { %v5682_v51 = vrot.slane %v5668_v3, %v9359_v50  ;;  %v1711_v12 = vcombine.high %v719_v0, %v719_v0  ;;  %v1718_v25 = vrot.slane %v719_v0, %v9381_v29  ;;  %v4271_v10 = vcombine.low %v2666_v33, %v2667_v16  ;;  %v2910_v3 = vld [vmem:[#allocation2 + $0x32] sm:$0x1]  ;;  %v2913_v33 = vld [vmem:[#allocation2 + $0x35] sm:$0x1] }
 0x1c7   :  { %v1677_v2 = vcombine.high %v717_v42, %v717_v42  ;;  %v1684_v19 = vrot.slane %v717_v42, %v9381_v29  ;;  %v1728_v37 = vcombine.high %v720_v28, %v720_v28  ;;  %v1735_v62 = vrot.slane %v720_v28, %v9381_v29  ;;  %v9025_v0 = vld [vmem:[%s10841_s2 + $0x30] sm:$0xff]  }
 0x1c8   :  { %v5683_v35 = vcombine.low %v5675_v39, %v5682_v51  ;;  %v1725_v4 = vrot.slane %v1711_v12, %v9381_v29  ;;  %v1726_v11 = vcombine.high %v1718_v25, %v1718_v25  ;;  %v4278_v5 = vrot.slane %v4268_v27, %v9359_v50  ;;  %v2911_v42 = vld [vmem:[#allocation2 + $0x33] sm:$0x1]  ;;  %v2912_v28 = vld [vmem:[#allocation2 + $0x34] sm:$0x1]  ;;  %v2916_v12 = vld [vmem:[#allocation2 + $0x38] sm:$0x1]  ;;  %7545 = vmatpush1.bf16.msra.mxu1 %v9025_v0 }
 0x1c9   :  { %v1691_v59 = vrot.slane %v1677_v2, %v9381_v29  ;;  %v1692_v13 = vcombine.high %v1684_v19, %v1684_v19  ;;  %v1742_v58 = vrot.slane %v1728_v37, %v9381_v29  ;;  %v1743_v22 = vcombine.high %v1735_v62, %v1735_v62  ;;  %7546 = vmatprep.subr.bf16.mxu1 %v9099_v38 }
 0x1ca   :  { %5886 = vrot.lane.b32.xlu1 %v5683_v35, %s9104_s23  ;;  %v1727_v21 = vcombine.high %v1725_v4, %v1725_v4  ;;  %v2245_v55 = vmax.f32 %v1718_v25, %v1726_v11  ;;  %v4285_v49 = vrot.slane %v4269_v52, %v9359_v50  ;;  %v4292_v45 = vrot.slane %v4270_v53, %v9359_v50  ;;  %v2917_v25 = vld [vmem:[#allocation2 + $0x39] sm:$0x1]  ;;  %v2975_v11 = vld [vmem:[#allocation2 + $0x33] sm:$0x1] }
 0x1cb   :  { %v1693_v23 = vcombine.high %v1691_v59, %v1691_v59  ;;  %v2241_v44 = vmax.f32 %v1684_v19, %v1692_v13  ;;  %v1744_v15 = vcombine.high %v1742_v58, %v1742_v58  ;;  %v2247_v20 = vmax.f32 %v1735_v62, %v1743_v22  ;;  %v2976_v19 = vld [vmem:[#allocation2 + $0x34] sm:$0x1]  ;;  %v2915_v62 = vld [vmem:[#allocation2 + $0x37] sm:$0x1]  ;;  %v2977_v22 = vld [vmem:[#allocation2 + $0x35] sm:$0x1] }
 0x1cc   :  { %v2246_v26 = vmax.f32 %v1725_v4, %v1727_v21  ;;  %v2317_v57 = vmax.f32 %v9966_v43, %v2245_v55  ;;  %v4299_v48 = vrot.slane %v4271_v10, %v9359_v50  ;;  %v4300_v39 = vcombine.low %v4278_v5, %v4285_v49  ;;  %v2980_v10 = vld [vmem:[#allocation2 + $0x38] sm:$0x1]  ;;  %v2982_v21 = vld [vmem:[#allocation2 + $0x3a] sm:$0x1] }
 0x1cd   :  { %v2242_v24 = vmax.f32 %v1691_v59, %v1693_v23  ;;  %v2313_v54 = vmax.f32 %v9975_v60, %v2241_v44  ;;  %v2248_v46 = vmax.f32 %v1742_v58, %v1744_v15  ;;  %v2319_v17 = vmax.f32 %v9978_v61, %v2247_v20  ;;  %v2914_v61 = vld [vmem:[#allocation2 + $0x36] sm:$0x1] }
 0x1ce   :  { %v2318_v30 = vmax.f32 %v9972_v32, %v2246_v26  ;;  %v2421_v27 = vpack.c.bf16 %v2317_v57, %v2317_v57  ;;  %v4301_v43 = vcombine.low %v4292_v45, %v4299_v48  ;;  %v4308_v32 = vrot.slane %v4300_v39, %v9359_v50  ;;  %v2979_v57 = vld [vmem:[#allocation2 + $0x37] sm:$0x1]  ;;  %v2981_v45 = vld [vmem:[#allocation2 + $0x39] sm:$0x1]  ;;  %v9027_v39 = vld [vmem:[%s10841_s2 + $0x40] sm:$0xff]  }
 0x1cf   :  { %v2314_v16 = vmax.f32 %v9982_v18, %v2242_v24  ;;  %v2417_v52 = vpack.c.bf16 %v2313_v54, %v2313_v54  ;;  %v2320_v60 = vmax.f32 %v9984_v47, %v2248_v46  ;;  %v2423_v51 = vpack.c.bf16 %v2319_v17, %v2319_v17  ;;  %v2978_v18 = vld [vmem:[#allocation2 + $0x36] sm:$0x1]  ;;  %v9026_v48 = vld [vmem:[%s10841_s2 + $0x38] sm:$0xff]  }
 0x1d0   :  { %v2422_v53 = vpack.c.bf16 %v2318_v30, %v2318_v30  ;;  %2486 = vst.msk [vmem:[#allocation2 + $0x4b] sm:$0x1] %vm2329_vm3, %v2421_v27  ;;  %v4315_v63 = vrot.slane %v4301_v43, %v9359_v50  ;;  %v622_v2 = vadd.f32 %v9942_v6, %v9705_v14  ;;  %v6107_v35 = vcombine.low %v2910_v3, %v2911_v42 }
 0x1d1   :  { %v2418_v47 = vpack.c.bf16 %v2314_v16, %v2314_v16  ;;  %2482 = vst.msk [vmem:[#allocation2 + $0x47] sm:$0x1] %vm2329_vm3, %v2417_v52  ;;  %v2424_v37 = vpack.c.bf16 %v2320_v60, %v2320_v60  ;;  %2488 = vst.msk [vmem:[#allocation2 + $0x4d] sm:$0x1] %vm2329_vm3, %v2423_v51  ;;  %v6108_v4 = vcombine.low %v2912_v28, %v2913_v33  ;;  %7547 = vmatpush1.bf16.msra.mxu1 %v9026_v48 }
 0x1d2   :  { %2487 = vst.msk [vmem:[#allocation2 + $0x4c] sm:$0x1] %vm2329_vm3, %v2422_v53  ;;  %v4316_v59 = vcombine.low %v4308_v32, %v4315_v63  ;;  %v718_v13 = vmax.f32 %v622_v2, 0.0  ;;  %v6109_v14 = vcombine.low %v2914_v61, %v2915_v62  ;;  %v6110_v58 = vcombine.low %v2916_v12, %v2917_v25  ;;  %7548 = vmatprep.subr.bf16.mxu1 %v9099_v38  ;;  %v2724_v32 = vld [vmem:[#allocation2 + $0x32] sm:$0x1] }
 0x1d3   :  { %2483 = vst.msk [vmem:[#allocation2 + $0x48] sm:$0x1] %vm2329_vm3, %v2418_v47  ;;  %2489 = vst.msk [vmem:[#allocation2 + $0x4e] sm:$0x1] %vm2329_vm3, %v2424_v37  ;;  %v6117_v55 = vrot.slane %v6107_v35, %v9359_v50  ;;  %v6124_v5 = vrot.slane %v6108_v4, %v9359_v50  ;;  %v6579_v49 = vcombine.low %v2975_v11, %v2976_v19  ;;  %v2725_v63 = vld [vmem:[#allocation2 + $0x33] sm:$0x1] }
 0x1d4   :  { %v6580_v23 = vcombine.low %v2977_v22, %v2978_v18  ;;  %4472 = vrot.lane.b32.xlu1 %v4316_v59, %s9102_s20  ;;  %v1694_v44 = vcombine.high %v718_v13, %v718_v13  ;;  %v1701_v15 = vrot.slane %v718_v13, %v9381_v29  ;;  %v6131_v20 = vrot.slane %v6109_v14, %v9359_v50  ;;  %v2726_v4 = vld [vmem:[#allocation2 + $0x34] sm:$0x1]  ;;  %v2727_v11 = vld [vmem:[#allocation2 + $0x35] sm:$0x1] }
 0x1d5   :  { %v6138_v26 = vrot.slane %v6110_v58, %v9359_v50  ;;  %v6139_v24 = vcombine.low %v6117_v55, %v6124_v5  ;;  %v6581_v54 = vcombine.low %v2979_v57, %v2980_v10  ;;  %v6582_v46 = vcombine.low %v2981_v45, %v2982_v21  ;;  %7549 = vmatpush1.bf16.msra.mxu1 %v9027_v39  ;;  %v2728_v58 = vld [vmem:[#allocation2 + $0x36] sm:$0x1]  ;;  %v2730_v5 = vld [vmem:[#allocation2 + $0x38] sm:$0x1] }
 0x1d6   :  { %v6589_v17 = vrot.slane %v6579_v49, %v9359_v50  ;;  %v1708_v3 = vrot.slane %v1694_v44, %v9381_v29  ;;  %v1709_v0 = vcombine.high %v1701_v15, %v1701_v15  ;;  %v6596_v27 = vrot.slane %v6580_v23, %v9359_v50  ;;  %v2731_v49 = vld [vmem:[#allocation2 + $0x39] sm:$0x1] }
 0x1d7   :  { %v6140_v30 = vcombine.low %v6131_v20, %v6138_v26  ;;  %v6147_v43 = vrot.slane %v6139_v24, %v9359_v50  ;;  %v6603_v42 = vrot.slane %v6581_v54, %v9359_v50  ;;  %v6610_v28 = vrot.slane %v6582_v46, %v9359_v50  ;;  %v2729_v20 = vld [vmem:[#allocation2 + $0x37] sm:$0x1]  ;;  %v2789_v54 = vld [vmem:[#allocation2 + $0x34] sm:$0x1] }
 0x1d8   :  { %v643_v33 = vadd.f32 %v9942_v6, %v9739_v56  ;;  %v1710_v16 = vcombine.high %v1708_v3, %v1708_v3  ;;  %v2243_v52 = vmax.f32 %v1701_v15, %v1709_v0  ;;  %v6611_v51 = vcombine.low %v6589_v17, %v6596_v27  ;;  %v2793_v27 = vld [vmem:[#allocation2 + $0x38] sm:$0x1] }
 0x1d9   :  { %v6154_v60 = vrot.slane %v6140_v30, %v9359_v50  ;;  %v6612_v61 = vcombine.low %v6603_v42, %v6610_v28  ;;  %v635_v25 = vadd.f32 %v9942_v6, %v9744_v34  ;;  %v646_v53 = vadd.f32 %v9942_v6, %v9750_v8  ;;  %v2791_v30 = vld [vmem:[#allocation2 + $0x36] sm:$0x1] }
 0x1da   :  { %v723_v12 = vmax.f32 %v643_v33, 0.0  ;;  %v2244_v2 = vmax.f32 %v1708_v3, %v1710_v16  ;;  %v2315_v56 = vmax.f32 %v10015_v1, %v2243_v52  ;;  %v6619_v38 = vrot.slane %v6611_v51, %v9359_v50  ;;  %v2788_v33 = vld [vmem:[#allocation2 + $0x33] sm:$0x1]  ;;  %v2792_v16 = vld [vmem:[#allocation2 + $0x37] sm:$0x1] }
 0x1db   :  { %v6155_v19 = vcombine.low %v6147_v43, %v6154_v60  ;;  %v6626_v18 = vrot.slane %v6612_v61, %v9359_v50  ;;  %v721_v62 = vmax.f32 %v635_v25, 0.0  ;;  %v724_v8 = vmax.f32 %v646_v53, 0.0  ;;  %v2795_v52 = vld [vmem:[#allocation2 + $0x3a] sm:$0x1]  ;;  %v2853_v53 = vld [vmem:[#allocation2 + $0x34] sm:$0x1] }
 0x1dc   :  { %v1779_v47 = vcombine.high %v723_v12, %v723_v12  ;;  %v1786_v37 = vrot.slane %v723_v12, %v9381_v29  ;;  %v2316_v34 = vmax.f32 %v10025_v9, %v2244_v2  ;;  %v2419_v35 = vpack.c.bf16 %v2315_v56, %v2315_v56  ;;  %v2790_v12 = vld [vmem:[#allocation2 + $0x35] sm:$0x1]  ;;  %v2794_v56 = vld [vmem:[#allocation2 + $0x39] sm:$0x1] }
 0x1dd   :  { %6358 = vrot.lane.b32.xlu0 %v6155_v19, %s9108_s29  ;;  %v4740_v10 = vcombine.low %v2724_v32, %v2725_v63  ;;  %v6627_v1 = vcombine.low %v6619_v38, %v6626_v18  ;;  %v1745_v14 = vcombine.high %v721_v62, %v721_v62  ;;  %v1752_v21 = vrot.slane %v721_v62, %v9381_v29  ;;  %v2854_v32 = vld [vmem:[#allocation2 + $0x35] sm:$0x1]  ;;  %v2855_v18 = vld [vmem:[#allocation2 + $0x36] sm:$0x1] }
 0x1de   :  { %v1793_v59 = vrot.slane %v1779_v47, %v9381_v29  ;;  %v1794_v13 = vcombine.high %v1786_v37, %v1786_v37  ;;  %v2420_v22 = vpack.c.bf16 %v2316_v34, %v2316_v34  ;;  %2484 = vst.msk [vmem:[#allocation2 + $0x49] sm:$0x1] %vm2329_vm3, %v2419_v35  ;;  %v1796_v55 = vcombine.high %v724_v8, %v724_v8  ;;  %v2860_v47 = vld [vmem:[#allocation2 + $0x3b] sm:$0x1] }
 0x1df   :  { %v1803_v9 = vrot.slane %v724_v8, %v9381_v29  ;;  %6830 = vrot.lane.b32.xlu1 %v6627_v1, %s9107_s28  ;;  %v1759_v15 = vrot.slane %v1745_v14, %v9381_v29  ;;  %v4741_v26 = vcombine.low %v2726_v4, %v2727_v11  ;;  %v1760_v57 = vcombine.high %v1752_v21, %v1752_v21  ;;  %v2857_v8 = vld [vmem:[#allocation2 + $0x38] sm:$0x1]  ;;  %v2858_v4 = vld [vmem:[#allocation2 + $0x39] sm:$0x1]  ;;  %v2859_v11 = vld [vmem:[#allocation2 + $0x3a] sm:$0x1] }
 0x1e0   :  { %v1795_v23 = vcombine.high %v1793_v59, %v1793_v59  ;;  %v10107_v44 = vmax.f32 %v1786_v37, %v1794_v13  ;;  %2485 = vst.msk [vmem:[#allocation2 + $0x4a] sm:$0x1] %vm2329_vm3, %v2420_v22  ;;  %v1810_v45 = vrot.slane %v1796_v55, %v9381_v29  ;;  %v4742_v24 = vcombine.low %v2728_v58, %v2729_v20  ;;  %v2856_v13 = vld [vmem:[#allocation2 + $0x37] sm:$0x1] }
 0x1e1   :  { %v1811_v48 = vcombine.high %v1803_v9, %v1803_v9  ;;  %v1761_v17 = vcombine.high %v1759_v15, %v1759_v15  ;;  %v4743_v3 = vcombine.low %v2730_v5, %v2731_v49  ;;  %v4750_v0 = vrot.slane %v4740_v10, %v9359_v50 }
 0x1e2   :  { %v10112_v46 = vmax.f32 %v1793_v59, %v1795_v23  ;;  %v10115_v39 = vmax.f32 %v1752_v21, %v1760_v57  ;;  %v1812_v43 = vcombine.high %v1810_v45, %v1810_v45  ;;  %v4757_v28 = vrot.slane %v4741_v26, %v9359_v50  ;;  %v2604_v23 = vld [vmem:[#allocation2 + $0x34] sm:$0x1] }
 0x1e3   :  { %v10117_v42 = vmax.f32 %v1803_v9, %v1811_v48  ;;  %v10120_v60 = vmax.f32 %v1759_v15, %v1761_v17  ;;  %v4764_v51 = vrot.slane %v4742_v24, %v9359_v50  ;;  %v4771_v61 = vrot.slane %v4743_v3, %v9359_v50  ;;  %v2608_v48 = vld [vmem:[#allocation2 + $0x38] sm:$0x1] }
 0x1e4   :  { %v5212_v25 = vcombine.low %v2788_v33, %v2789_v54  ;;  %v10124_v63 = vmax.f32 %v1810_v45, %v1812_v43  ;;  %v4772_v2 = vcombine.low %v4750_v0, %v4757_v28  ;;  %v5213_v19 = vcombine.low %v2790_v12, %v2791_v30  ;;  %v2606_v45 = vld [vmem:[#allocation2 + $0x36] sm:$0x1]  ;;  %v2603_v0 = vld [vmem:[#allocation2 + $0x33] sm:$0x1]  ;;  %v2610_v30 = vld [vmem:[#allocation2 + $0x3a] sm:$0x1] }
 0x1e5   :  { %v5214_v38 = vcombine.low %v2792_v16, %v2793_v27  ;;  %v4773_v37 = vcombine.low %v4764_v51, %v4771_v61  ;;  %v5215_v62 = vcombine.low %v2794_v56, %v2795_v52  ;;  %v638_v35 = vadd.f32 %v9942_v6, %v9780_v31  ;;  %v2605_v33 = vld [vmem:[#allocation2 + $0x35] sm:$0x1]  ;;  %v2607_v16 = vld [vmem:[#allocation2 + $0x37] sm:$0x1]  ;;  %v2609_v12 = vld [vmem:[#allocation2 + $0x39] sm:$0x1] }
 0x1e6   :  { %v5222_v34 = vrot.slane %v5212_v25, %v9359_v50  ;;  %v4780_v10 = vrot.slane %v4772_v2, %v9359_v50  ;;  %v5229_v1 = vrot.slane %v5213_v19, %v9359_v50  ;;  %v5684_v14 = vcombine.low %v2853_v53, %v2854_v32 }
 0x1e7   :  { %v5236_v59 = vrot.slane %v5214_v38, %v9359_v50  ;;  %v4787_v58 = vrot.slane %v4773_v37, %v9359_v50  ;;  %v5243_v22 = vrot.slane %v5215_v62, %v9359_v50  ;;  %v722_v21 = vmax.f32 %v638_v35, 0.0  ;;  %v2668_v62 = vld [vmem:[#allocation2 + $0x34] sm:$0x1]  ;;  %v2670_v35 = vld [vmem:[#allocation2 + $0x36] sm:$0x1] }
 0x1e8   :  { %v5685_v55 = vcombine.low %v2855_v18, %v2856_v13  ;;  %v5244_v9 = vcombine.low %v5222_v34, %v5229_v1  ;;  %v5686_v5 = vcombine.low %v2857_v8, %v2858_v4  ;;  %v5687_v31 = vcombine.low %v2859_v11, %v2860_v47  ;;  %v2669_v34 = vld [vmem:[#allocation2 + $0x35] sm:$0x1]  ;;  %v2672_v1 = vld [vmem:[#allocation2 + $0x38] sm:$0x1] }
 0x1e9   :  { %v5694_v49 = vrot.slane %v5684_v14, %v9359_v50  ;;  %v4788_v15 = vcombine.low %v4780_v10, %v4787_v58  ;;  %v5245_v20 = vcombine.low %v5236_v59, %v5243_v22  ;;  %v1762_v26 = vcombine.high %v722_v21, %v722_v21  ;;  %v2673_v59 = vld [vmem:[#allocation2 + $0x39] sm:$0x1] }
 0x1ea   :  { %v1769_v57 = vrot.slane %v722_v21, %v9381_v29  ;;  %v5252_v24 = vrot.slane %v5244_v9, %v9359_v50  ;;  %v5701_v54 = vrot.slane %v5685_v55, %v9359_v50  ;;  %v5708_v17 = vrot.slane %v5686_v5, %v9359_v50  ;;  %v2671_v21 = vld [vmem:[#allocation2 + $0x37] sm:$0x1]  ;;  %v2674_v55 = vld [vmem:[#allocation2 + $0x3a] sm:$0x1]  ;;  %v2675_v9 = vld [vmem:[#allocation2 + $0x3b] sm:$0x1] }
 0x1eb   :  { %v5715_v3 = vrot.slane %v5687_v31, %v9359_v50  ;;  %4944 = vrot.lane.b32.xlu0 %v4788_v15, %s9105_s24  ;;  %v5259_v27 = vrot.slane %v5245_v20, %v9359_v50  ;;  %v1776_v43 = vrot.slane %v1762_v26, %v9381_v29  ;;  %v3845_v52 = vcombine.low %v2603_v0, %v2604_v23 }
 0x1ec   :  { %v1777_v28 = vcombine.high %v1769_v57, %v1769_v57  ;;  %v5716_v51 = vcombine.low %v5694_v49, %v5701_v54  ;;  %v3846_v25 = vcombine.low %v2605_v33, %v2606_v45  ;;  %v3847_v53 = vcombine.low %v2607_v16, %v2608_v48 }
 0x1ed   :  { %v5717_v61 = vcombine.low %v5708_v17, %v5715_v3  ;;  %v5260_v32 = vcombine.low %v5252_v24, %v5259_v27  ;;  %v1778_v2 = vcombine.high %v1776_v43, %v1776_v43  ;;  %v3848_v19 = vcombine.low %v2609_v12, %v2610_v30 }
 0x1ee   :  { %v10143_v56 = vmax.f32 %v1769_v57, %v1777_v28  ;;  %v5724_v38 = vrot.slane %v5716_v51, %v9359_v50  ;;  %v3855_v47 = vrot.slane %v3845_v52, %v9359_v50  ;;  %v3862_v37 = vrot.slane %v3846_v25, %v9359_v50 }
 0x1ef   :  { %v5731_v18 = vrot.slane %v5717_v61, %v9359_v50  ;;  %5416 = vrot.lane.b32.xlu1 %v5260_v32, %s9106_s25  ;;  %v10150_v8 = vmax.f32 %v1776_v43, %v1778_v2  ;;  %v3869_v4 = vrot.slane %v3847_v53, %v9359_v50  ;;  %v3876_v11 = vrot.slane %v3848_v19, %v9359_v50 }
 0x1f0   :  { %v659_v10 = vadd.f32 %v9942_v6, %v9798_v41  ;;  %v3877_v14 = vcombine.low %v3855_v47, %v3862_v37  ;;  %v651_v58 = vadd.f32 %v9942_v6, %v9831_v36  ;;  %v662_v22 = vadd.f32 %v9942_v6, %v9853_v40 }
 0x1f1   :  { %v5732_v13 = vcombine.low %v5724_v38, %v5731_v18  ;;  %v3878_v5 = vcombine.low %v3869_v4, %v3876_v11  ;;  %v4317_v49 = vcombine.low %v2668_v62, %v2669_v34  ;;  %v4318_v23 = vcombine.low %v2670_v35, %v2671_v21  ;;  %v2984_v4 = vld [vmem:[#allocation2 + $0x3e] sm:$0x1] }
 0x1f2   :  { %v727_v31 = vmax.f32 %v659_v10, 0.0  ;;  %v3885_v41 = vrot.slane %v3877_v14, %v9359_v50  ;;  %v725_v15 = vmax.f32 %v651_v58, 0.0  ;;  %v728_v20 = vmax.f32 %v662_v22, 0.0  ;;  %v2987_v14 = vld [vmem:[#allocation2 + $0x41] sm:$0x1] }
 0x1f3   :  { %5888 = vrot.lane.b32.xlu0 %v5732_v13, %s9104_s23  ;;  %v4319_v26 = vcombine.low %v2672_v1, %v2673_v59  ;;  %v3892_v57 = vrot.slane %v3878_v5, %v9359_v50  ;;  %v4320_v40 = vcombine.low %v2674_v55, %v2675_v9  ;;  %v4327_v27 = vrot.slane %v4317_v49, %v9359_v50  ;;  %v2986_v13 = vld [vmem:[#allocation2 + $0x40] sm:$0x1]  ;;  %v2988_v58 = vld [vmem:[#allocation2 + $0x42] sm:$0x1]  ;;  %v2983_v9 = vld [vmem:[#allocation2 + $0x3d] sm:$0x1] }
 0x1f4   :  { %v1847_v36 = vcombine.high %v727_v31, %v727_v31  ;;  %v1854_v45 = vrot.slane %v727_v31, %v9381_v29  ;;  %v1813_v48 = vcombine.high %v725_v15, %v725_v15  ;;  %v1820_v24 = vrot.slane %v725_v15, %v9381_v29  ;;  %v2990_v5 = vld [vmem:[#allocation2 + $0x44] sm:$0x1]  ;;  %v2920_v15 = vld [vmem:[#allocation2 + $0x3e] sm:$0x1] }
 0x1f5   :  { %v1864_v54 = vcombine.high %v728_v20, %v728_v20  ;;  %v1871_v17 = vrot.slane %v728_v20, %v9381_v29  ;;  %v3893_v3 = vcombine.low %v3885_v41, %v3892_v57  ;;  %v4334_v61 = vrot.slane %v4318_v23, %v9359_v50  ;;  %v2985_v23 = vld [vmem:[#allocation2 + $0x3f] sm:$0x1] }
 0x1f6   :  { %v1861_v0 = vrot.slane %v1847_v36, %v9381_v29  ;;  %v1862_v30 = vcombine.high %v1854_v45, %v1854_v45  ;;  %v1827_v43 = vrot.slane %v1813_v48, %v9381_v29  ;;  %v1828_v28 = vcombine.high %v1820_v24, %v1820_v24  ;;  %v2921_v20 = vld [vmem:[#allocation2 + $0x3f] sm:$0x1] }
 0x1f7   :  { %v1878_v33 = vrot.slane %v1864_v54, %v9381_v29  ;;  %v1879_v16 = vcombine.high %v1871_v17, %v1871_v17  ;;  %4002 = vrot.lane.b32.xlu1 %v3893_v3, %s9101_s0  ;;  %v4341_v12 = vrot.slane %v4319_v26, %v9359_v50  ;;  %v4348_v18 = vrot.slane %v4320_v40, %v9359_v50  ;;  %v2989_v26 = vld [vmem:[#allocation2 + $0x43] sm:$0x1] }
 0x1f8   :  { %v1863_v52 = vcombine.high %v1861_v0, %v1861_v0  ;;  %v2261_v51 = vmax.f32 %v1854_v45, %v1862_v30  ;;  %v1829_v25 = vcombine.high %v1827_v43, %v1827_v43  ;;  %v2257_v53 = vmax.f32 %v1820_v24, %v1828_v28  ;;  %v2922_v45 = vld [vmem:[#allocation2 + $0x40] sm:$0x1]  ;;  %v2925_v54 = vld [vmem:[#allocation2 + $0x43] sm:$0x1] }
 0x1f9   :  { %v1880_v32 = vcombine.high %v1878_v33, %v1878_v33  ;;  %v2263_v2 = vmax.f32 %v1871_v17, %v1879_v16  ;;  %v4349_v47 = vcombine.low %v4327_v27, %v4334_v61  ;;  %v4350_v1 = vcombine.low %v4341_v12, %v4348_v18  ;;  %v2796_v18 = vld [vmem:[#allocation2 + $0x3d] sm:$0x1] }
 0x1fa   :  { %v2262_v19 = vmax.f32 %v1861_v0, %v1863_v52  ;;  %v2325_v38 = vmax.f32 %v10107_v44, %v2261_v51  ;;  %v2258_v37 = vmax.f32 %v1827_v43, %v1829_v25  ;;  %v2321_v62 = vmax.f32 %v10115_v39, %v2257_v53  ;;  %v2918_v44 = vld [vmem:[#allocation2 + $0x3c] sm:$0x1]  ;;  %v2923_v0 = vld [vmem:[#allocation2 + $0x41] sm:$0x1]  ;;  %v2797_v52 = vld [vmem:[#allocation2 + $0x3e] sm:$0x1] }
 0x1fb   :  { %v2264_v34 = vmax.f32 %v1878_v33, %v1880_v32  ;;  %v2327_v35 = vmax.f32 %v10117_v42, %v2263_v2  ;;  %v4357_v59 = vrot.slane %v4349_v47, %v9359_v50  ;;  %v2919_v42 = vld [vmem:[#allocation2 + $0x3d] sm:$0x1]  ;;  %v654_v49 = vadd.f32 %v9942_v6, %v9860_v7  ;;  %v2924_v6 = vld [vmem:[#allocation2 + $0x42] sm:$0x1]  ;;  %v2799_v53 = vld [vmem:[#allocation2 + $0x40] sm:$0x1] }
 0x1fc   :  { %v2326_v11 = vmax.f32 %v10112_v46, %v2262_v19  ;;  %v2429_v10 = vpack.c.bf16 %v2325_v38, %v2325_v38  ;;  %v2322_v22 = vmax.f32 %v10120_v60, %v2258_v37  ;;  %v2425_v21 = vpack.c.bf16 %v2321_v62, %v2321_v62  ;;  %v2801_v47 = vld [vmem:[#allocation2 + $0x42] sm:$0x1]  ;;  %v2803_v37 = vld [vmem:[#allocation2 + $0x44] sm:$0x1] }
 0x1fd   :  { %v2328_v55 = vmax.f32 %v10124_v63, %v2264_v34  ;;  %v2431_v39 = vpack.c.bf16 %v2327_v35, %v2327_v35  ;;  %v4364_v46 = vrot.slane %v4350_v1, %v9359_v50  ;;  %v6628_v41 = vcombine.low %v2983_v9, %v2984_v4  ;;  %v2798_v4 = vld [vmem:[#allocation2 + $0x3f] sm:$0x1]  ;;  %v2733_v9 = vld [vmem:[#allocation2 + $0x3d] sm:$0x1] }
 0x1fe   :  { %v2430_v31 = vpack.c.bf16 %v2326_v11, %v2326_v11  ;;  %2494 = vst.msk [vmem:[#allocation2 + $0x55] sm:$0x1] %vm2329_vm3, %v2429_v10  ;;  %v2426_v60 = vpack.c.bf16 %v2322_v22, %v2322_v22  ;;  %2490 = vst.msk [vmem:[#allocation2 + $0x51] sm:$0x1] %vm2329_vm3, %v2425_v21  ;;  %v6629_v57 = vcombine.low %v2985_v23, %v2986_v13  ;;  %v726_v48 = vmax.f32 %v654_v49, 0.0 }
 0x1ff   :  { %v2432_v63 = vpack.c.bf16 %v2328_v55, %v2328_v55  ;;  %2496 = vst.msk [vmem:[#allocation2 + $0x57] sm:$0x1] %vm2329_vm3, %v2431_v39  ;;  %v6630_v36 = vcombine.low %v2987_v14, %v2988_v58  ;;  %v4365_v40 = vcombine.low %v4357_v59, %v4364_v46  ;;  %v6631_v24 = vcombine.low %v2989_v26, %v2990_v5  ;;  %v2800_v13 = vld [vmem:[#allocation2 + $0x41] sm:$0x1]  ;;  %v2802_v14 = vld [vmem:[#allocation2 + $0x43] sm:$0x1] }
 0x200   :  { %2495 = vst.msk [vmem:[#allocation2 + $0x56] sm:$0x1] %vm2329_vm3, %v2430_v31  ;;  %v6638_v7 = vrot.slane %v6628_v41, %v9359_v50  ;;  %2491 = vst.msk [vmem:[#allocation2 + $0x52] sm:$0x1] %vm2329_vm3, %v2426_v60  ;;  %v6645_v17 = vrot.slane %v6629_v57, %v9359_v50  ;;  %v6156_v30 = vcombine.low %v2918_v44, %v2919_v42  ;;  %v2732_v44 = vld [vmem:[#allocation2 + $0x3c] sm:$0x1] }
 0x201   :  { %2497 = vst.msk [vmem:[#allocation2 + $0x58] sm:$0x1] %vm2329_vm3, %v2432_v63  ;;  %v6652_v3 = vrot.slane %v6630_v36, %v9359_v50  ;;  %v6157_v27 = vcombine.low %v2920_v15, %v2921_v20  ;;  %4474 = vrot.lane.b32.xlu0 %v4365_v40, %s9102_s20  ;;  %v1830_v43 = vcombine.high %v726_v48, %v726_v48  ;;  %v2734_v5 = vld [vmem:[#allocation2 + $0x3e] sm:$0x1]  ;;  %v2735_v42 = vld [vmem:[#allocation2 + $0x3f] sm:$0x1] }
 0x202   :  { %v1837_v28 = vrot.slane %v726_v48, %v9381_v29  ;;  %v6659_v33 = vrot.slane %v6631_v24, %v9359_v50  ;;  %v6158_v16 = vcombine.low %v2922_v45, %v2923_v0  ;;  %v6660_v51 = vcombine.low %v6638_v7, %v6645_v17  ;;  %v2736_v41 = vld [vmem:[#allocation2 + $0x40] sm:$0x1]  ;;  %v2738_v26 = vld [vmem:[#allocation2 + $0x42] sm:$0x1]  ;;  %v2739_v57 = vld [vmem:[#allocation2 + $0x43] sm:$0x1] }
 0x203   :  { %v6159_v61 = vcombine.low %v2924_v6, %v2925_v54  ;;  %v6166_v12 = vrot.slane %v6156_v30, %v9359_v50  ;;  %v6173_v25 = vrot.slane %v6157_v27, %v9359_v50  ;;  %v1844_v32 = vrot.slane %v1830_v43, %v9381_v29  ;;  %v2611_v24 = vld [vmem:[#allocation2 + $0x3d] sm:$0x1]  ;;  %v2612_v7 = vld [vmem:[#allocation2 + $0x3e] sm:$0x1]  ;;  %v2614_v0 = vld [vmem:[#allocation2 + $0x40] sm:$0x1] }
 0x204   :  { %v1845_v2 = vcombine.high %v1837_v28, %v1837_v28  ;;  %v6661_v19 = vcombine.low %v6652_v3, %v6659_v33  ;;  %v6180_v38 = vrot.slane %v6158_v16, %v9359_v50  ;;  %v6668_v62 = vrot.slane %v6660_v51, %v9359_v50  ;;  %v2615_v30 = vld [vmem:[#allocation2 + $0x41] sm:$0x1]  ;;  %v2616_v27 = vld [vmem:[#allocation2 + $0x42] sm:$0x1]  ;;  %v2618_v16 = vld [vmem:[#allocation2 + $0x44] sm:$0x1] }
 0x205   :  { %v6187_v34 = vrot.slane %v6159_v61, %v9359_v50  ;;  %v6188_v35 = vcombine.low %v6166_v12, %v6173_v25  ;;  %v5261_v11 = vcombine.low %v2796_v18, %v2797_v52  ;;  %v1846_v10 = vcombine.high %v1844_v32, %v1844_v32  ;;  %v2861_v52 = vld [vmem:[#allocation2 + $0x3e] sm:$0x1]  ;;  %v2862_v51 = vld [vmem:[#allocation2 + $0x3f] sm:$0x1]  ;;  %v2868_v61 = vld [vmem:[#allocation2 + $0x45] sm:$0x1] }
 0x206   :  { %v2259_v1 = vmax.f32 %v1837_v28, %v1845_v2  ;;  %v6675_v59 = vrot.slane %v6661_v19, %v9359_v50  ;;  %v5262_v58 = vcombine.low %v2798_v4, %v2799_v53  ;;  %v5263_v55 = vcombine.low %v2800_v13, %v2801_v47  ;;  %v2617_v2 = vld [vmem:[#allocation2 + $0x43] sm:$0x1]  ;;  %v2867_v4 = vld [vmem:[#allocation2 + $0x44] sm:$0x1]  ;;  %v2676_v13 = vld [vmem:[#allocation2 + $0x3e] sm:$0x1] }
 0x207   :  { %v6189_v22 = vcombine.low %v6180_v38, %v6187_v34  ;;  %v6196_v21 = vrot.slane %v6188_v35, %v9359_v50  ;;  %v5264_v39 = vcombine.low %v2802_v14, %v2803_v37  ;;  %v2260_v31 = vmax.f32 %v1844_v32, %v1846_v10  ;;  %v2613_v32 = vld [vmem:[#allocation2 + $0x3f] sm:$0x1]  ;;  %v2865_v38 = vld [vmem:[#allocation2 + $0x42] sm:$0x1]  ;;  %v2863_v34 = vld [vmem:[#allocation2 + $0x40] sm:$0x1] }
 0x208   :  { %v2323_v46 = vmax.f32 %v10143_v56, %v2259_v1  ;;  %v6676_v49 = vcombine.low %v6668_v62, %v6675_v59  ;;  %v5271_v23 = vrot.slane %v5261_v11, %v9359_v50  ;;  %v5278_v20 = vrot.slane %v5262_v58, %v9359_v50  ;;  %v2737_v56 = vld [vmem:[#allocation2 + $0x41] sm:$0x1]  ;;  %v2866_v35 = vld [vmem:[#allocation2 + $0x43] sm:$0x1]  ;;  %v2677_v14 = vld [vmem:[#allocation2 + $0x3f] sm:$0x1] }
 0x209   :  { %v6203_v15 = vrot.slane %v6189_v22, %v9359_v50  ;;  %v5285_v60 = vrot.slane %v5263_v55, %v9359_v50  ;;  %v5292_v63 = vrot.slane %v5264_v39, %v9359_v50  ;;  %v2324_v36 = vmax.f32 %v10150_v8, %v2260_v31  ;;  %v2864_v55 = vld [vmem:[#allocation2 + $0x41] sm:$0x1]  ;;  %v2678_v31 = vld [vmem:[#allocation2 + $0x40] sm:$0x1] }
 0x20a   :  { %v2427_v45 = vpack.c.bf16 %v2323_v46, %v2323_v46  ;;  %6832 = vrot.lane.b32.xlu0 %v6676_v49, %s9107_s28  ;;  %v4789_v40 = vcombine.low %v2732_v44, %v2733_v9  ;;  %v4790_v48 = vcombine.low %v2734_v5, %v2735_v42  ;;  %v5293_v54 = vcombine.low %v5271_v23, %v5278_v20  ;;  %v2680_v46 = vld [vmem:[#allocation2 + $0x42] sm:$0x1]  ;;  %v2681_v49 = vld [vmem:[#allocation2 + $0x43] sm:$0x1]  ;;  %v2682_v20 = vld [vmem:[#allocation2 + $0x44] sm:$0x1] }
 0x20b   :  { %v6204_v6 = vcombine.low %v6196_v21, %v6203_v15  ;;  %v5294_v17 = vcombine.low %v5285_v60, %v5292_v63  ;;  %v4791_v3 = vcombine.low %v2736_v41, %v2737_v56  ;;  %v2428_v43 = vpack.c.bf16 %v2324_v36, %v2324_v36  ;;  %v2683_v60 = vld [vmem:[#allocation2 + $0x45] sm:$0x1]  ;;  %v2679_v56 = vld [vmem:[#allocation2 + $0x41] sm:$0x1] }
 0x20c   :  { %2492 = vst.msk [vmem:[#allocation2 + $0x53] sm:$0x1] %vm2329_vm3, %v2427_v45  ;;  %v4792_v28 = vcombine.low %v2738_v26, %v2739_v57  ;;  %v4799_v8 = vrot.slane %v4789_v40, %v9359_v50  ;;  %v4806_v33 = vrot.slane %v4790_v48, %v9359_v50  ;;  %v5301_v12 = vrot.slane %v5293_v54, %v9359_v50  ;;  %v2926_v40 = vld [vmem:[#allocation2 + $0x46] sm:$0x1]  ;;  %v2927_v48 = vld [vmem:[#allocation2 + $0x47] sm:$0x1] }
 0x20d   :  { %6360 = vrot.lane.b32.xlu1 %v6204_v6, %s9108_s29  ;;  %v5308_v25 = vrot.slane %v5294_v17, %v9359_v50  ;;  %v4813_v53 = vrot.slane %v4791_v3, %v9359_v50  ;;  %v3894_v19 = vcombine.low %v2611_v24, %v2612_v7  ;;  %2493 = vst.msk [vmem:[#allocation2 + $0x54] sm:$0x1] %vm2329_vm3, %v2428_v43  ;;  %v2932_v17 = vld [vmem:[#allocation2 + $0x4c] sm:$0x1]  ;;  %v2933_v3 = vld [vmem:[#allocation2 + $0x4d] sm:$0x1] }
 0x20e   :  { %v4820_v18 = vrot.slane %v4792_v28, %v9359_v50  ;;  %v4821_v47 = vcombine.low %v4799_v8, %v4806_v33  ;;  %v3895_v37 = vcombine.low %v2613_v32, %v2614_v0  ;;  %v3896_v62 = vcombine.low %v2615_v30, %v2616_v27  ;;  %v2928_v28 = vld [vmem:[#allocation2 + $0x48] sm:$0x1]  ;;  %v2929_v8 = vld [vmem:[#allocation2 + $0x49] sm:$0x1]  ;;  %v2930_v33 = vld [vmem:[#allocation2 + $0x4a] sm:$0x1] }
 0x20f   :  { %v5309_v11 = vcombine.low %v5301_v12, %v5308_v25  ;;  %v3897_v10 = vcombine.low %v2617_v2, %v2618_v16  ;;  %v3904_v1 = vrot.slane %v3894_v19, %v9359_v50  ;;  %v5733_v59 = vcombine.low %v2861_v52, %v2862_v51  ;;  %v2992_v12 = vld [vmem:[#allocation2 + $0x48] sm:$0x1]  ;;  %v2931_v19 = vld [vmem:[#allocation2 + $0x4b] sm:$0x1] }
 0x210   :  { %v4822_v58 = vcombine.low %v4813_v53, %v4820_v18  ;;  %v4829_v44 = vrot.slane %v4821_v47, %v9359_v50  ;;  %v3911_v22 = vrot.slane %v3895_v37, %v9359_v50  ;;  %v3918_v21 = vrot.slane %v3896_v62, %v9359_v50 }
 0x211   :  { %5418 = vrot.lane.b32.xlu0 %v5309_v11, %s9106_s25  ;;  %v3925_v39 = vrot.slane %v3897_v10, %v9359_v50  ;;  %v5734_v9 = vcombine.low %v2863_v34, %v2864_v55  ;;  %v5735_v5 = vcombine.low %v2865_v38, %v2866_v35  ;;  %v5736_v42 = vcombine.low %v2867_v4, %v2868_v61  ;;  %v2991_v38 = vld [vmem:[#allocation2 + $0x47] sm:$0x1]  ;;  %v2994_v34 = vld [vmem:[#allocation2 + $0x4a] sm:$0x1]  ;;  %v2996_v35 = vld [vmem:[#allocation2 + $0x4c] sm:$0x1]  ;;  %v10241_v11 = vpop.permute.xlu0 %3992  ;;  %v10243_v10 = vpop.permute.xlu1 %4936 }
 0x212   :  { %v4836_v23 = vrot.slane %v4822_v58, %v9359_v50  ;;  %v3926_v41 = vcombine.low %v3904_v1, %v3911_v22  ;;  %v5743_v15 = vrot.slane %v5733_v59, %v9359_v50  ;;  %v4366_v63 = vcombine.low %v2676_v13, %v2677_v14  ;;  %v2998_v4 = vld [vmem:[#allocation2 + $0x4e] sm:$0x1]  ;;  %v2740_v58 = vld [vmem:[#allocation2 + $0x46] sm:$0x1] }
 0x213   :  { %v3927_v26 = vcombine.low %v3918_v21, %v3925_v39  ;;  %v5750_v57 = vrot.slane %v5734_v9, %v9359_v50  ;;  %v5757_v36 = vrot.slane %v5735_v5, %v9359_v50  ;;  %v5764_v45 = vrot.slane %v5736_v42, %v9359_v50  ;;  %v2993_v9 = vld [vmem:[#allocation2 + $0x49] sm:$0x1]  ;;  %v2995_v5 = vld [vmem:[#allocation2 + $0x4b] sm:$0x1]  ;;  %v2997_v42 = vld [vmem:[#allocation2 + $0x4d] sm:$0x1] }
 0x214   :  { %v4837_v24 = vcombine.low %v4829_v44, %v4836_v23  ;;  %v3934_v7 = vrot.slane %v3926_v41, %v9359_v50  ;;  %v4367_v6 = vcombine.low %v2678_v31, %v2679_v56  ;;  %v4368_v54 = vcombine.low %v2680_v46, %v2681_v49  ;;  %v2741_v44 = vld [vmem:[#allocation2 + $0x47] sm:$0x1]  ;;  %v2742_v41 = vld [vmem:[#allocation2 + $0x48] sm:$0x1] }
 0x215   :  { %v3941_v0 = vrot.slane %v3927_v26, %v9359_v50  ;;  %v5765_v30 = vcombine.low %v5743_v15, %v5750_v57  ;;  %v5766_v27 = vcombine.low %v5757_v36, %v5764_v45  ;;  %v4369_v43 = vcombine.low %v2682_v20, %v2683_v60  ;;  %v2743_v15 = vld [vmem:[#allocation2 + $0x49] sm:$0x1]  ;;  %v2744_v20 = vld [vmem:[#allocation2 + $0x4a] sm:$0x1]  ;;  %v2746_v57 = vld [vmem:[#allocation2 + $0x4c] sm:$0x1] }
 0x216   :  { %4946 = vrot.lane.b32.xlu1 %v4837_v24, %s9105_s24  ;;  %v4376_v16 = vrot.slane %v4366_v63, %v9359_v50  ;;  %v4383_v52 = vrot.slane %v4367_v6, %v9359_v50  ;;  %v4390_v51 = vrot.slane %v4368_v54, %v9359_v50  ;;  %v6205_v61 = vcombine.low %v2926_v40, %v2927_v48  ;;  %v2747_v36 = vld [vmem:[#allocation2 + $0x4d] sm:$0x1]  ;;  %v2805_v6 = vld [vmem:[#allocation2 + $0x48] sm:$0x1] }
 0x217   :  { %v3942_v25 = vcombine.low %v3934_v7, %v3941_v0  ;;  %v5773_v53 = vrot.slane %v5765_v30, %v9359_v50  ;;  %v5780_v32 = vrot.slane %v5766_v27, %v9359_v50  ;;  %v4397_v2 = vrot.slane %v4369_v43, %v9359_v50  ;;  %v2745_v7 = vld [vmem:[#allocation2 + $0x4b] sm:$0x1]  ;;  %v2807_v30 = vld [vmem:[#allocation2 + $0x4a] sm:$0x1]  ;;  %v10259_v27 = vpop.permute.xlu0 %4464  ;;  %v10261_v43 = vpop.permute.xlu1 %5408 }
 0x218   :  { %v4398_v18 = vcombine.low %v4376_v16, %v4383_v52  ;;  %v6206_v47 = vcombine.low %v2928_v28, %v2929_v8  ;;  %v6207_v37 = vcombine.low %v2930_v33, %v2931_v19  ;;  %v6208_v62 = vcombine.low %v2932_v17, %v2933_v3  ;;  %v2804_v52 = vld [vmem:[#allocation2 + $0x47] sm:$0x1]  ;;  %v2869_v19 = vld [vmem:[#allocation2 + $0x48] sm:$0x1] }
 0x219   :  { %4004 = vrot.lane.b32.xlu0 %v3942_v25, %s9101_s0  ;;  %v5781_v1 = vcombine.low %v5773_v53, %v5780_v32  ;;  %v4399_v59 = vcombine.low %v4390_v51, %v4397_v2  ;;  %v6215_v13 = vrot.slane %v6205_v61, %v9359_v50  ;;  %v6677_v14 = vcombine.low %v2991_v38, %v2992_v12  ;;  %v2809_v51 = vld [vmem:[#allocation2 + $0x4c] sm:$0x1]  ;;  %v2811_v61 = vld [vmem:[#allocation2 + $0x4e] sm:$0x1]  ;;  %v2806_v32 = vld [vmem:[#allocation2 + $0x49] sm:$0x1] }
 0x21a   :  { %v4406_v22 = vrot.slane %v4398_v18, %v9359_v50  ;;  %v6222_v21 = vrot.slane %v6206_v47, %v9359_v50  ;;  %v6229_v55 = vrot.slane %v6207_v37, %v9359_v50  ;;  %v6236_v39 = vrot.slane %v6208_v62, %v9359_v50  ;;  %v2870_v38 = vld [vmem:[#allocation2 + $0x49] sm:$0x1]  ;;  %v2876_v18 = vld [vmem:[#allocation2 + $0x4f] sm:$0x1] }
 0x21b   :  { %5890 = vrot.lane.b32.xlu1 %v5781_v1, %s9104_s23  ;;  %v4413_v31 = vrot.slane %v4399_v59, %v9359_v50  ;;  %v6678_v46 = vcombine.low %v2993_v9, %v2994_v34  ;;  %v6679_v49 = vcombine.low %v2995_v5, %v2996_v35  ;;  %v6680_v23 = vcombine.low %v2997_v42, %v2998_v4  ;;  %v2808_v34 = vld [vmem:[#allocation2 + $0x4b] sm:$0x1]  ;;  %v2810_v35 = vld [vmem:[#allocation2 + $0x4d] sm:$0x1]  ;;  %v2871_v1 = vld [vmem:[#allocation2 + $0x4a] sm:$0x1] }
 0x21c   :  { %v6237_v60 = vcombine.low %v6215_v13, %v6222_v21  ;;  %v6238_v63 = vcombine.low %v6229_v55, %v6236_v39  ;;  %v6687_v26 = vrot.slane %v6677_v14, %v9359_v50  ;;  %v4838_v45 = vcombine.low %v2740_v58, %v2741_v44  ;;  %v2873_v44 = vld [vmem:[#allocation2 + $0x4c] sm:$0x1]  ;;  %v2875_v21 = vld [vmem:[#allocation2 + $0x4e] sm:$0x1]  ;;  %v2872_v5 = vld [vmem:[#allocation2 + $0x4b] sm:$0x1] }
 0x21d   :  { %v4414_v56 = vcombine.low %v4406_v22, %v4413_v31  ;;  %v6694_v40 = vrot.slane %v6678_v46, %v9359_v50  ;;  %v6701_v48 = vrot.slane %v6679_v49, %v9359_v50  ;;  %v6708_v24 = vrot.slane %v6680_v23, %v9359_v50  ;;  %v2874_v22 = vld [vmem:[#allocation2 + $0x4d] sm:$0x1]  ;;  %v2620_v31 = vld [vmem:[#allocation2 + $0x48] sm:$0x1] }
 0x21e   :  { %v6245_v54 = vrot.slane %v6237_v60, %v9359_v50  ;;  %v6252_v17 = vrot.slane %v6238_v63, %v9359_v50  ;;  %v4839_v3 = vcombine.low %v2742_v41, %v2743_v15  ;;  %v4840_v0 = vcombine.low %v2744_v20, %v2745_v7  ;;  %v2498_v15 = vld [vmem:[#allocation2] sm:$0x1]  ;;  %v2499_v20 = vld [vmem:[#allocation2 + $0x1] sm:$0x1]  ;;  %v10276_v60 = vpop.permute.xlu0 %5880  ;;  %v10278_v63 = vpop.permute.xlu1 %3994 }
 0x21f   :  { %4476 = vrot.lane.b32.xlu1 %v4414_v56, %s9102_s20  ;;  %v6709_v28 = vcombine.low %v6687_v26, %v6694_v40  ;;  %v6710_v8 = vcombine.low %v6701_v48, %v6708_v24  ;;  %v4841_v33 = vcombine.low %v2746_v57, %v2747_v36  ;;  %v4848_v16 = vrot.slane %v4838_v45, %v9359_v50  ;;  %v2619_v56 = vld [vmem:[#allocation2 + $0x47] sm:$0x1]  ;;  %v2622_v40 = vld [vmem:[#allocation2 + $0x4a] sm:$0x1]  ;;  %v2624_v48 = vld [vmem:[#allocation2 + $0x4c] sm:$0x1] }
 0x220   :  { %v6253_v12 = vcombine.low %v6245_v54, %v6252_v17  ;;  %v4855_v25 = vrot.slane %v4839_v3, %v9359_v50  ;;  %v4862_v53 = vrot.slane %v4840_v0, %v9359_v50  ;;  %v5310_v2 = vcombine.low %v2804_v52, %v2805_v6  ;;  %v2626_v54 = vld [vmem:[#allocation2 + $0x4e] sm:$0x1]  ;;  %v2500_v3 = vld [vmem:[#allocation2 + $0x2] sm:$0x1]  ;;  %v2501_v0 = vld [vmem:[#allocation2 + $0x3] sm:$0x1] }
 0x221   :  { %v6717_v47 = vrot.slane %v6709_v28, %v9359_v50  ;;  %v6724_v37 = vrot.slane %v6710_v8, %v9359_v50  ;;  %v4869_v62 = vrot.slane %v4841_v33, %v9359_v50  ;;  %v5311_v4 = vcombine.low %v2806_v32, %v2807_v30  ;;  %v2623_v52 = vld [vmem:[#allocation2 + $0x4b] sm:$0x1] }
 0x222   :  { %6362 = vrot.lane.b32.xlu0 %v6253_v12, %s9108_s29  ;;  %v4870_v59 = vcombine.low %v4848_v16, %v4855_v25  ;;  %v5312_v13 = vcombine.low %v2808_v34, %v2809_v51  ;;  %v5313_v14 = vcombine.low %v2810_v35, %v2811_v61  ;;  %v5320_v58 = vrot.slane %v5310_v2, %v9359_v50  ;;  %v2621_v16 = vld [vmem:[#allocation2 + $0x49] sm:$0x1]  ;;  %v2502_v51 = vld [vmem:[#allocation2 + $0x4] sm:$0x1]  ;;  %v2625_v25 = vld [vmem:[#allocation2 + $0x4d] sm:$0x1] }
 0x223   :  { %v6725_v55 = vcombine.low %v6717_v47, %v6724_v37  ;;  %v4871_v39 = vcombine.low %v4862_v53, %v4869_v62  ;;  %v5327_v9 = vrot.slane %v5311_v4, %v9359_v50  ;;  %v5782_v42 = vcombine.low %v2869_v19, %v2870_v38  ;;  %v2503_v2 = vld [vmem:[#allocation2 + $0x5] sm:$0x1]  ;;  %v2504_v19 = vld [vmem:[#allocation2 + $0x6] sm:$0x1]  ;;  %v10288_v38 = vpop.permute.xlu1 %6352  ;;  %v2505_v62 = vld [vmem:[#allocation2 + $0x7] sm:$0x1] }
 0x224   :  { %v4878_v46 = vrot.slane %v4870_v59, %v9359_v50  ;;  %v5334_v49 = vrot.slane %v5312_v13, %v9359_v50  ;;  %v5341_v23 = vrot.slane %v5313_v14, %v9359_v50  ;;  %v5783_v41 = vcombine.low %v2871_v1, %v2872_v5  ;;  %v2684_v35 = vld [vmem:[#allocation2 + $0x48] sm:$0x1]  ;;  %v2685_v4 = vld [vmem:[#allocation2 + $0x49] sm:$0x1]  ;;  %v2689_v5 = vld [vmem:[#allocation2 + $0x4d] sm:$0x1] }
 0x225   :  { %6834 = vrot.lane.b32.xlu1 %v6725_v55, %s9107_s28  ;;  %v4885_v26 = vrot.slane %v4871_v39, %v9359_v50  ;;  %v5342_v57 = vcombine.low %v5320_v58, %v5327_v9  ;;  %v5784_v36 = vcombine.low %v2873_v44, %v2874_v22  ;;  %v5785_v45 = vcombine.low %v2875_v21, %v2876_v18  ;;  %v10295_v58 = vpop.permute.xlu0 %4466  ;;  %v2686_v39 = vld [vmem:[#allocation2 + $0x4a] sm:$0x1]  ;;  %v2688_v9 = vld [vmem:[#allocation2 + $0x4c] sm:$0x1] }
 0x226   :  { %v5343_v24 = vcombine.low %v5334_v49, %v5341_v23  ;;  %v5792_v7 = vrot.slane %v5782_v42, %v9359_v50  ;;  %v5799_v6 = vrot.slane %v5783_v41, %v9359_v50  ;;  %v3943_v17 = vcombine.low %v2619_v56, %v2620_v31  ;;  %v2690_v49 = vld [vmem:[#allocation2 + $0x4e] sm:$0x1]  ;;  %v2691_v23 = vld [vmem:[#allocation2 + $0x4f] sm:$0x1] }
 0x227   :  { %v4886_v30 = vcombine.low %v4878_v46, %v4885_v26  ;;  %v5350_v28 = vrot.slane %v5342_v57, %v9359_v50  ;;  %v5806_v8 = vrot.slane %v5784_v36, %v9359_v50  ;;  %v5813_v33 = vrot.slane %v5785_v45, %v9359_v50  ;;  %v2687_v36 = vld [vmem:[#allocation2 + $0x4b] sm:$0x1] }
 0x228   :  { %v5357_v61 = vrot.slane %v5343_v24, %v9359_v50  ;;  %v5814_v12 = vcombine.low %v5792_v7, %v5799_v6  ;;  %v3944_v53 = vcombine.low %v2621_v16, %v2622_v40  ;;  %v3945_v32 = vcombine.low %v2623_v52, %v2624_v48  ;;  %v3000_v24 = vld [vmem:[#allocation2 + $0x52] sm:$0x1]  ;;  %v2934_v7 = vld [vmem:[#allocation2 + $0x50] sm:$0x1] }
 0x229   :  { %4948 = vrot.lane.b32.xlu0 %v4886_v30, %s9105_s24  ;;  %v5815_v18 = vcombine.low %v5806_v8, %v5813_v33  ;;  %v3946_v47 = vcombine.low %v2625_v25, %v2626_v54  ;;  %v3953_v37 = vrot.slane %v3943_v17, %v9359_v50  ;;  %v3144_v34 = vcombine.low %v2498_v15, %v2499_v20  ;;  %v10305_v6 = vpop.permute.xlu0 %6824  ;;  %v10307_v54 = vpop.permute.xlu1 %4938  ;;  %v3002_v8 = vld [vmem:[#allocation2 + $0x54] sm:$0x1]  ;;  %v3004_v33 = vld [vmem:[#allocation2 + $0x56] sm:$0x1] }
 0x22a   :  { %v5358_v1 = vcombine.low %v5350_v28, %v5357_v61  ;;  %v5822_v59 = vrot.slane %v5814_v12, %v9359_v50  ;;  %v3960_v13 = vrot.slane %v3944_v53, %v9359_v50  ;;  %v3967_v14 = vrot.slane %v3945_v32, %v9359_v50  ;;  %v2999_v28 = vld [vmem:[#allocation2 + $0x51] sm:$0x1]  ;;  %v3006_v61 = vld [vmem:[#allocation2 + $0x58] sm:$0x1] }
 0x22b   :  { %v5829_v44 = vrot.slane %v5815_v18, %v9359_v50  ;;  %v3974_v22 = vrot.slane %v3946_v47, %v9359_v50  ;;  %v3145_v21 = vcombine.low %v2500_v3, %v2501_v0  ;;  %v3146_v55 = vcombine.low %v2502_v51, %v2503_v2  ;;  %v2935_v12 = vld [vmem:[#allocation2 + $0x51] sm:$0x1]  ;;  %v3001_v2 = vld [vmem:[#allocation2 + $0x53] sm:$0x1]  ;;  %v3005_v18 = vld [vmem:[#allocation2 + $0x57] sm:$0x1] }
 0x22c   :  { %5420 = vrot.lane.b32.xlu1 %v5358_v1, %s9106_s25  ;;  %v3975_v42 = vcombine.low %v3953_v37, %v3960_v13  ;;  %v3147_v31 = vcombine.low %v2504_v19, %v2505_v62  ;;  %v3154_v46 = vrot.slane %v3144_v34, %v9359_v50  ;;  %v4415_v41 = vcombine.low %v2684_v35, %v2685_v4  ;;  %v3003_v19 = vld [vmem:[#allocation2 + $0x55] sm:$0x1]  ;;  %v2936_v4 = vld [vmem:[#allocation2 + $0x52] sm:$0x1]  ;;  %v2937_v1 = vld [vmem:[#allocation2 + $0x53] sm:$0x1] }
 0x22d   :  { %v5830_v15 = vcombine.low %v5822_v59, %v5829_v44  ;;  %v3976_v20 = vcombine.low %v3967_v14, %v3974_v22  ;;  %v3161_v26 = vrot.slane %v3145_v21, %v9359_v50  ;;  %v3168_v57 = vrot.slane %v3146_v55, %v9359_v50  ;;  %v2938_v59 = vld [vmem:[#allocation2 + $0x54] sm:$0x1]  ;;  %v2940_v22 = vld [vmem:[#allocation2 + $0x56] sm:$0x1]  ;;  %v2941_v21 = vld [vmem:[#allocation2 + $0x57] sm:$0x1] }
 0x22e   :  { %v3983_v45 = vrot.slane %v3975_v42, %v9359_v50  ;;  %v3175_v56 = vrot.slane %v3147_v31, %v9359_v50  ;;  %v4416_v40 = vcombine.low %v2686_v39, %v2687_v36  ;;  %v4417_v48 = vcombine.low %v2688_v9, %v2689_v5  ;;  %v2939_v31 = vld [vmem:[#allocation2 + $0x55] sm:$0x1] }
 0x22f   :  { %5892 = vrot.lane.b32.xlu0 %v5830_v15, %s9104_s23  ;;  %v3990_v17 = vrot.slane %v3976_v20, %v9359_v50  ;;  %v3176_v3 = vcombine.low %v3154_v46, %v3161_v26  ;;  %v4418_v0 = vcombine.low %v2690_v49, %v2691_v23  ;;  %v4425_v30 = vrot.slane %v4415_v41, %v9359_v50  ;;  %v10322_v46 = vpop.permute.xlu0 %5410  ;;  %v10324_v49 = vpop.permute.xlu1 %5882 }
 0x230   :  { %v3177_v16 = vcombine.low %v3168_v57, %v3175_v56  ;;  %v4432_v52 = vrot.slane %v4416_v40, %v9359_v50  ;;  %v4439_v51 = vrot.slane %v4417_v48, %v9359_v50  ;;  %v6726_v47 = vcombine.low %v2999_v28, %v3000_v24  ;;  %v2812_v56 = vld [vmem:[#allocation2 + $0x51] sm:$0x1]  ;;  %v2813_v40 = vld [vmem:[#allocation2 + $0x52] sm:$0x1]  ;;  %v2748_v48 = vld [vmem:[#allocation2 + $0x50] sm:$0x1] }
 0x231   :  { %v3991_v25 = vcombine.low %v3983_v45, %v3990_v17  ;;  %v3184_v53 = vrot.slane %v3176_v3, %v9359_v50  ;;  %v4446_v32 = vrot.slane %v4418_v0, %v9359_v50  ;;  %v6727_v34 = vcombine.low %v3001_v2, %v3002_v8  ;;  %v2815_v0 = vld [vmem:[#allocation2 + $0x54] sm:$0x1]  ;;  %v2817_v28 = vld [vmem:[#allocation2 + $0x56] sm:$0x1]  ;;  %v2819_v8 = vld [vmem:[#allocation2 + $0x58] sm:$0x1] }
 0x232   :  { %v3191_v37 = vrot.slane %v3177_v16, %v9359_v50  ;;  %v4447_v62 = vcombine.low %v4425_v30, %v4432_v52  ;;  %v6728_v35 = vcombine.low %v3003_v19, %v3004_v33  ;;  %v6729_v14 = vcombine.low %v3005_v18, %v3006_v61  ;;  %v2816_v30 = vld [vmem:[#allocation2 + $0x55] sm:$0x1]  ;;  %v2818_v52 = vld [vmem:[#allocation2 + $0x57] sm:$0x1]  ;;  %v2754_v2 = vld [vmem:[#allocation2 + $0x56] sm:$0x1] }
 0x233   :  { %4006 = vrot.lane.b32.xlu1 %v3991_v25, %s9101_s0  ;;  %v4448_v13 = vcombine.low %v4439_v51, %v4446_v32  ;;  %v6736_v44 = vrot.slane %v6726_v47, %v9359_v50  ;;  %v6254_v55 = vcombine.low %v2934_v7, %v2935_v12  ;;  %v6743_v5 = vrot.slane %v6727_v34, %v9359_v50  ;;  %v2749_v51 = vld [vmem:[#allocation2 + $0x51] sm:$0x1]  ;;  %v2814_v25 = vld [vmem:[#allocation2 + $0x53] sm:$0x1]  ;;  %v2750_v32 = vld [vmem:[#allocation2 + $0x52] sm:$0x1] }
 0x234   :  { %v3192_v39 = vcombine.low %v3184_v53, %v3191_v37  ;;  %v4455_v9 = vrot.slane %v4447_v62, %v9359_v50  ;;  %v6750_v42 = vrot.slane %v6728_v35, %v9359_v50  ;;  %v6757_v41 = vrot.slane %v6729_v14, %v9359_v50  ;;  %v2751_v62 = vld [vmem:[#allocation2 + $0x53] sm:$0x1]  ;;  %v2752_v34 = vld [vmem:[#allocation2 + $0x54] sm:$0x1]  ;;  %v2755_v35 = vld [vmem:[#allocation2 + $0x57] sm:$0x1] }
 0x235   :  { %v4462_v23 = vrot.slane %v4448_v13, %v9359_v50  ;;  %v6255_v15 = vcombine.low %v2936_v4, %v2937_v1  ;;  %v6256_v20 = vcombine.low %v2938_v59, %v2939_v31  ;;  %v6758_v57 = vcombine.low %v6736_v44, %v6743_v5  ;;  %v10341_v4 = vpop.permute.xlu0 %3996  ;;  %v10343_v1 = vpop.permute.xlu1 %4468  ;;  %v2884_v5 = vld [vmem:[#allocation2 + $0x59] sm:$0x1] }
 0x236   :  { %v7299_v26 = vsel %vm7296_vm4, %v3192_v39, %v10241_v11  ;;  %v6257_v36 = vcombine.low %v2940_v22, %v2941_v21  ;;  %v6264_v45 = vrot.slane %v6254_v55, %v9359_v50  ;;  %v6759_v17 = vcombine.low %v6750_v42, %v6757_v41  ;;  %v2753_v39 = vld [vmem:[#allocation2 + $0x55] sm:$0x1] }
 0x237   :  { %v4463_v24 = vcombine.low %v4455_v9, %v4462_v23  ;;  %v7323_v7 = vsel %vm7321_vm5, %v7299_v26, %v10259_v27  ;;  %v6271_v3 = vrot.slane %v6255_v15, %v9359_v50  ;;  %v6766_v11 = vrot.slane %v6758_v57, %v9359_v50  ;;  %v2877_v9 = vld [vmem:[#allocation2 + $0x52] sm:$0x1]  ;;  %v2878_v15 = vld [vmem:[#allocation2 + $0x53] sm:$0x1]  ;;  %v2881_v26 = vld [vmem:[#allocation2 + $0x56] sm:$0x1] }
 0x238   :  { %v6278_v33 = vrot.slane %v6256_v20, %v9359_v50  ;;  %v6285_v16 = vrot.slane %v6257_v36, %v9359_v50  ;;  %v6773_v27 = vrot.slane %v6759_v17, %v9359_v50  ;;  %v7340_v12 = vsel %vm7338_vm6, %v7323_v7, %v10243_v10  ;;  %v2879_v20 = vld [vmem:[#allocation2 + $0x54] sm:$0x1] }
 0x239   :  { %4478 = vrot.lane.b32.xlu0 %v4463_v24, %s9102_s20  ;;  %v6286_v61 = vcombine.low %v6264_v45, %v6271_v3  ;;  %v5359_v53 = vcombine.low %v2812_v56, %v2813_v40  ;;  %v5360_v18 = vcombine.low %v2814_v25, %v2815_v0  ;;  %v5361_v47 = vcombine.low %v2816_v30, %v2817_v28  ;;  %v2882_v56 = vld [vmem:[#allocation2 + $0x57] sm:$0x1]  ;;  %v2883_v40 = vld [vmem:[#allocation2 + $0x58] sm:$0x1]  ;;  %v2880_v0 = vld [vmem:[#allocation2 + $0x55] sm:$0x1] }
 0x23a   :  { %v6287_v19 = vcombine.low %v6278_v33, %v6285_v16  ;;  %v5362_v37 = vcombine.low %v2818_v52, %v2819_v8  ;;  %v6774_v59 = vcombine.low %v6766_v11, %v6773_v27  ;;  %v4887_v14 = vcombine.low %v2748_v48, %v2749_v51  ;;  %v10353_v48 = vpop.permute.xlu0 %6354  ;;  %v2942_v30 = vld [vmem:[#allocation2 + $0x5a] sm:$0x1]  ;;  %v2943_v28 = vld [vmem:[#allocation2 + $0x5b] sm:$0x1]  ;;  %v2944_v52 = vld [vmem:[#allocation2 + $0x5c] sm:$0x1] }
 0x23b   :  { %v6294_v13 = vrot.slane %v6286_v61, %v9359_v50  ;;  %v5369_v10 = vrot.slane %v5359_v53, %v9359_v50  ;;  %v5376_v22 = vrot.slane %v5360_v18, %v9359_v50  ;;  %v5383_v21 = vrot.slane %v5361_v47, %v9359_v50  ;;  %v2945_v51 = vld [vmem:[#allocation2 + $0x5d] sm:$0x1]  ;;  %v2946_v27 = vld [vmem:[#allocation2 + $0x5e] sm:$0x1]  ;;  %v10365_v61 = vpop.permute.xlu1 %6826 }
 0x23c   :  { %v6301_v44 = vrot.slane %v6287_v19, %v9359_v50  ;;  %v5390_v55 = vrot.slane %v5362_v37, %v9359_v50  ;;  %v4888_v42 = vcombine.low %v2750_v32, %v2751_v62  ;;  %v4889_v31 = vcombine.low %v2752_v34, %v2753_v39  ;;  %v2947_v32 = vld [vmem:[#allocation2 + $0x5f] sm:$0x1]  ;;  %v2949_v19 = vld [vmem:[#allocation2 + $0x61] sm:$0x1]  ;;  %v2506_v34 = vld [vmem:[#allocation2 + $0xa] sm:$0x1] }
 0x23d   :  { %6836 = vrot.lane.b32.xlu0 %v6774_v59, %s9107_s28  ;;  %v4890_v23 = vcombine.low %v2754_v2, %v2755_v35  ;;  %v4897_v41 = vrot.slane %v4887_v14, %v9359_v50  ;;  %v5391_v36 = vcombine.low %v5369_v10, %v5376_v22  ;;  %v10360_v3 = vsel %vm7355_vm7, %v7340_v12, %v10261_v43  ;;  %v2948_v2 = vld [vmem:[#allocation2 + $0x60] sm:$0x1]  ;;  %v2507_v35 = vld [vmem:[#allocation2 + $0xb] sm:$0x1] }
 0x23e   :  { %v6302_v57 = vcombine.low %v6294_v13, %v6301_v44  ;;  %v5392_v45 = vcombine.low %v5383_v21, %v5390_v55  ;;  %v4904_v24 = vrot.slane %v4888_v42, %v9359_v50  ;;  %v4911_v7 = vrot.slane %v4889_v31, %v9359_v50  ;;  %v2512_v44 = vld [vmem:[#allocation2 + $0x10] sm:$0x1]  ;;  %v2513_v42 = vld [vmem:[#allocation2 + $0x11] sm:$0x1]  ;;  %v10374_v31 = vpop.permute.xlu0 %4940 }
 0x23f   :  { %v4918_v17 = vrot.slane %v4890_v23, %v9359_v50  ;;  %v5399_v8 = vrot.slane %v5391_v36, %v9359_v50  ;;  %v5831_v33 = vcombine.low %v2877_v9, %v2878_v15  ;;  %v5832_v16 = vcombine.low %v2879_v20, %v2880_v0  ;;  %v2509_v9 = vld [vmem:[#allocation2 + $0xd] sm:$0x1]  ;;  %v3008_v36 = vld [vmem:[#allocation2 + $0x5c] sm:$0x1]  ;;  %v3010_v0 = vld [vmem:[#allocation2 + $0x5e] sm:$0x1] }
 0x240   :  { %6364 = vrot.lane.b32.xlu1 %v6302_v57, %s9108_s29  ;;  %v5406_v11 = vrot.slane %v5392_v45, %v9359_v50  ;;  %v4919_v25 = vcombine.low %v4897_v41, %v4904_v24  ;;  %v5833_v43 = vcombine.low %v2881_v26, %v2882_v56  ;;  %v5834_v12 = vcombine.low %v2883_v40, %v2884_v5  ;;  %v2510_v5 = vld [vmem:[#allocation2 + $0xe] sm:$0x1]  ;;  %v2508_v26 = vld [vmem:[#allocation2 + $0xc] sm:$0x1]  ;;  %v3007_v57 = vld [vmem:[#allocation2 + $0x5b] sm:$0x1] }
 0x241   :  { %v4920_v53 = vcombine.low %v4911_v7, %v4918_v17  ;;  %v5841_v47 = vrot.slane %v5831_v33, %v9359_v50  ;;  %v5848_v37 = vrot.slane %v5832_v16, %v9359_v50  ;;  %v6303_v62 = vcombine.low %v2942_v30, %v2943_v28  ;;  %v2511_v7 = vld [vmem:[#allocation2 + $0xf] sm:$0x1]  ;;  %v3009_v17 = vld [vmem:[#allocation2 + $0x5d] sm:$0x1]  ;;  %v10381_v30 = vpop.permute.xlu1 %5412  ;;  %v3011_v16 = vld [vmem:[#allocation2 + $0x5f] sm:$0x1] }
 0x242   :  { %v5407_v18 = vcombine.low %v5399_v8, %v5406_v11  ;;  %v4927_v59 = vrot.slane %v4919_v25, %v9359_v50  ;;  %v5855_v10 = vrot.slane %v5833_v43, %v9359_v50  ;;  %v5862_v14 = vrot.slane %v5834_v12, %v9359_v50  ;;  %v3014_v43 = vld [vmem:[#allocation2 + $0x62] sm:$0x1] }
 0x243   :  { %v4934_v13 = vrot.slane %v4920_v53, %v9359_v50  ;;  %v5863_v22 = vcombine.low %v5841_v47, %v5848_v37  ;;  %v6304_v21 = vcombine.low %v2944_v52, %v2945_v51  ;;  %v6305_v55 = vcombine.low %v2946_v27, %v2947_v32  ;;  %v3012_v52 = vld [vmem:[#allocation2 + $0x60] sm:$0x1]  ;;  %v3013_v53 = vld [vmem:[#allocation2 + $0x61] sm:$0x1] }
 0x244   :  { %5422 = vrot.lane.b32.xlu0 %v5407_v18, %s9106_s25  ;;  %v6306_v39 = vcombine.low %v2948_v2, %v2949_v19  ;;  %v5864_v41 = vcombine.low %v5855_v10, %v5862_v14  ;;  %v6313_v15 = vrot.slane %v6303_v62, %v9359_v50  ;;  %v3193_v20 = vcombine.low %v2506_v34, %v2507_v35  ;;  %v10391_v35 = vpop.permute.xlu0 %5884 }
 0x245   :  { %v4935_v23 = vcombine.low %v4927_v59, %v4934_v13  ;;  %v5871_v45 = vrot.slane %v5863_v22, %v9359_v50  ;;  %v6320_v56 = vrot.slane %v6304_v21, %v9359_v50  ;;  %v6327_v40 = vrot.slane %v6305_v55, %v9359_v50  ;;  %v3025_v22 = vld [vmem:[#allocation2 + $0x21] sm:$0x1]  ;;  %v3026_v21 = vld [vmem:[#allocation2 + $0x22] sm:$0x1] }
 0x246   :  { %v6334_v24 = vrot.slane %v6306_v39, %v9359_v50  ;;  %v5878_v28 = vrot.slane %v5864_v41, %v9359_v50  ;;  %v3195_v8 = vcombine.low %v2510_v5, %v2511_v7  ;;  %v3196_v11 = vcombine.low %v2512_v44, %v2513_v42  ;;  %v3024_v44 = vld [vmem:[#allocation2 + $0x20] sm:$0x1]  ;;  %v3027_v5 = vld [vmem:[#allocation2 + $0x23] sm:$0x1]  ;;  %v3028_v42 = vld [vmem:[#allocation2 + $0x24] sm:$0x1] }
 0x247   :  { %4950 = vrot.lane.b32.xlu1 %v4935_v23, %s9105_s24  ;;  %v3203_v33 = vrot.slane %v3193_v20, %v9359_v50  ;;  %v6335_v51 = vcombine.low %v6313_v15, %v6320_v56  ;;  %v3194_v25 = vcombine.low %v2508_v26, %v2509_v9  ;;  %v6775_v12 = vcombine.low %v3007_v57, %v3008_v36  ;;  %v10397_v23 = vpop.permute.xlu1 %3998  ;;  %v3029_v57 = vld [vmem:[#allocation2 + $0x25] sm:$0x1]  ;;  %v3030_v36 = vld [vmem:[#allocation2 + $0x26] sm:$0x1]  ;;  %v2515_v7 = vld [vmem:[#allocation2 + $0x15] sm:$0x1] }
 0x248   :  { %v6336_v27 = vcombine.low %v6327_v40, %v6334_v24  ;;  %v5879_v32 = vcombine.low %v5871_v45, %v5878_v28  ;;  %v3217_v2 = vrot.slane %v3195_v8, %v9359_v50  ;;  %v3224_v19 = vrot.slane %v3196_v11, %v9359_v50  ;;  %v3031_v45 = vld [vmem:[#allocation2 + $0x27] sm:$0x1]  ;;  %v2514_v24 = vld [vmem:[#allocation2 + $0x14] sm:$0x1] }
 0x249   :  { %v6776_v18 = vcombine.low %v3009_v17, %v3010_v0  ;;  %v6343_v47 = vrot.slane %v6335_v51, %v9359_v50  ;;  %v3210_v62 = vrot.slane %v3194_v25, %v9359_v50  ;;  %v6777_v34 = vcombine.low %v3011_v16, %v3012_v52  ;;  %v2518_v51 = vld [vmem:[#allocation2 + $0x18] sm:$0x1] }
 0x24a   :  { %v6350_v37 = vrot.slane %v6336_v27, %v9359_v50  ;;  %v3226_v59 = vcombine.low %v3217_v2, %v3224_v19  ;;  %v6778_v13 = vcombine.low %v3013_v53, %v3014_v43  ;;  %v6785_v10 = vrot.slane %v6775_v12, %v9359_v50  ;;  %v10411_v27 = vpop.permute.xlu0 %4470  ;;  %v2520_v12 = vld [vmem:[#allocation2 + $0x1a] sm:$0x1] }
 0x24b   :  { %5894 = vrot.lane.b32.xlu1 %v5879_v32, %s9104_s23  ;;  %v6792_v14 = vrot.slane %v6776_v18, %v9359_v50  ;;  %v3225_v39 = vcombine.low %v3203_v33, %v3210_v62  ;;  %v6799_v9 = vrot.slane %v6777_v34, %v9359_v50  ;;  %v7374_v26 = vsel %vm7372_vm8, %v10360_v3, %v10276_v60  ;;  %v2516_v60 = vld [vmem:[#allocation2 + $0x16] sm:$0x1]  ;;  %v2517_v3 = vld [vmem:[#allocation2 + $0x17] sm:$0x1]  ;;  %v10413_v25 = vpop.permute.xlu1 %6356  ;;  %v2521_v32 = vld [vmem:[#allocation2 + $0x1b] sm:$0x1] }
 0x24c   :  { %v6351_v55 = vcombine.low %v6343_v47, %v6350_v37  ;;  %v3240_v41 = vrot.slane %v3226_v59, %v9359_v50  ;;  %v6806_v15 = vrot.slane %v6778_v13, %v9359_v50  ;;  %v6953_v40 = vcombine.low %v3024_v44, %v3025_v22  ;;  %v2519_v47 = vld [vmem:[#allocation2 + $0x19] sm:$0x1] }
 0x24d   :  { %v6807_v20 = vcombine.low %v6785_v10, %v6792_v14  ;;  %v3233_v56 = vrot.slane %v3225_v39, %v9359_v50  ;;  %v7391_v28 = vsel %vm7389_vm9, %v7374_v26, %v10288_v38  ;;  %v6954_v8 = vcombine.low %v3026_v21, %v3027_v5  ;;  %v3032_v10 = vld [vmem:[#allocation2 + $0x2a] sm:$0x1]  ;;  %v3033_v14 = vld [vmem:[#allocation2 + $0x2b] sm:$0x1]  ;;  %v3036_v39 = vld [vmem:[#allocation2 + $0x2e] sm:$0x1] }
 0x24e   :  { %6366 = vrot.lane.b32.xlu0 %v6351_v55, %s9108_s29  ;;  %v6808_v17 = vcombine.low %v6799_v9, %v6806_v15  ;;  %v7408_v33 = vsel %vm7406_vm10, %v7391_v28, %v10305_v6  ;;  %v6955_v16 = vcombine.low %v3028_v42, %v3029_v57  ;;  %v6956_v52 = vcombine.low %v3030_v36, %v3031_v45  ;;  %v3034_v55 = vld [vmem:[#allocation2 + $0x2c] sm:$0x1]  ;;  %v3037_v9 = vld [vmem:[#allocation2 + $0x2f] sm:$0x1]  ;;  %v3035_v15 = vld [vmem:[#allocation2 + $0x2d] sm:$0x1] }
 0x24f   :  { %v6815_v0 = vrot.slane %v6807_v20, %v9359_v50  ;;  %v3241_v11 = vcombine.low %v3233_v56, %v3240_v41  ;;  %7565 = vmatmul.mubr.bf16.vlgmr.msra.gmra.mrb[0].mxu1 %v7408_v33  ;;  %v6963_v43 = vrot.slane %v6953_v40, %v9359_v50  ;;  %v6970_v38 = vrot.slane %v6954_v8, %v9359_v50  ;;  %v3038_v20 = vld [vmem:[#allocation2 + $0x30] sm:$0x1]  ;;  %v2522_v56 = vld [vmem:[#allocation2 + $0x1e] sm:$0x1]  ;;  %v2523_v40 = vld [vmem:[#allocation2 + $0x1f] sm:$0x1] }
 0x250   :  { %v6822_v53 = vrot.slane %v6808_v17, %v9359_v50  ;;  %v3242_v2 = vcombine.low %v2514_v24, %v2515_v7  ;;  %v6977_v19 = vrot.slane %v6955_v16, %v9359_v50  ;;  %v6984_v18 = vrot.slane %v6956_v52, %v9359_v50  ;;  %v2524_v24 = vld [vmem:[#allocation2 + $0x20] sm:$0x1]  ;;  %v10437_v7 = vpop.permute.xlu0 %6828  ;;  %v10439_v17 = vpop.permute.xlu1 %4942 }
 0x251   :  { %v7302_v6 = vsel %vm7296_vm4, %v3241_v11, %v10278_v63  ;;  %v3243_v37 = vcombine.low %v2516_v60, %v2517_v3  ;;  %v6985_v34 = vcombine.low %v6963_v43, %v6970_v38  ;;  %v3244_v13 = vcombine.low %v2518_v51, %v2519_v47  ;;  %v2525_v60 = vld [vmem:[#allocation2 + $0x21] sm:$0x1]  ;;  %v2526_v3 = vld [vmem:[#allocation2 + $0x22] sm:$0x1]  ;;  %v2528_v11 = vld [vmem:[#allocation2 + $0x24] sm:$0x1] }
 0x252   :  { %v6823_v62 = vcombine.low %v6815_v0, %v6822_v53  ;;  %v7325_v59 = vsel %vm7321_vm5, %v7302_v6, %v10295_v58  ;;  %v6986_v44 = vcombine.low %v6977_v19, %v6984_v18  ;;  %v3245_v21 = vcombine.low %v2520_v12, %v2521_v32  ;;  %v2529_v51 = vld [vmem:[#allocation2 + $0x25] sm:$0x1]  ;;  %v3040_v53 = vld [vmem:[#allocation2 + $0x34] sm:$0x1]  ;;  %v3041_v43 = vld [vmem:[#allocation2 + $0x35] sm:$0x1] }
 0x253   :  { %v7342_v22 = vsel %vm7338_vm6, %v7325_v59, %v10307_v54  ;;  %v3252_v63 = vrot.slane %v3242_v2, %v9359_v50  ;;  %v6993_v5 = vrot.slane %v6985_v34, %v9359_v50  ;;  %v3259_v42 = vrot.slane %v3243_v37, %v9359_v50  ;;  %v3039_v54 = vld [vmem:[#allocation2 + $0x31] sm:$0x1]  ;;  %v2527_v19 = vld [vmem:[#allocation2 + $0x23] sm:$0x1]  ;;  %v3042_v47 = vld [vmem:[#allocation2 + $0x36] sm:$0x1] }
 0x254   :  { %6838 = vrot.lane.b32.xlu1 %v6823_v62, %s9107_s28  ;;  %v3266_v58 = vrot.slane %v3244_v13, %v9359_v50  ;;  %v7359_v41 = vsel %vm7355_vm7, %v7342_v22, %v10322_v46  ;;  %v7000_v26 = vrot.slane %v6986_v44, %v9359_v50  ;;  %v3273_v57 = vrot.slane %v3245_v21, %v9359_v50  ;;  %v3044_v59 = vld [vmem:[#allocation2 + $0x38] sm:$0x1]  ;;  %v3045_v13 = vld [vmem:[#allocation2 + $0x39] sm:$0x1] }
 0x255   :  { %v7376_v36 = vsel %vm7372_vm8, %v7359_v41, %v10324_v49  ;;  %v7002_v45 = vcombine.low %v3032_v10, %v3033_v14  ;;  %v3274_v0 = vcombine.low %v3252_v63, %v3259_v42  ;;  %v7003_v28 = vcombine.low %v3034_v55, %v3035_v15  ;;  %v10454_v63 = vpop.permute.xlu0 %5414  ;;  %v3043_v55 = vld [vmem:[#allocation2 + $0x37] sm:$0x1] }
 0x256   :  { %v7393_v46 = vsel %vm7389_vm9, %v7376_v36, %v10353_v48  ;;  %v7004_v8 = vcombine.low %v3036_v39, %v3037_v9  ;;  %v7001_v33 = vcombine.low %v6993_v5, %v7000_v26  ;;  %v3275_v16 = vcombine.low %v3266_v58, %v3273_v57  ;;  %v3046_v39 = vld [vmem:[#allocation2 + $0x3a] sm:$0x1]  ;;  %v3047_v9 = vld [vmem:[#allocation2 + $0x3b] sm:$0x1]  ;;  %v10456_v5 = vpop.permute.xlu1 %5886 }
 0x257   :  { %v7411_v49 = vsel %vm7406_vm10, %v7393_v46, %v10365_v61  ;;  %v7005_v52 = vcombine.low %v3038_v20, %v3039_v54  ;;  %v3282_v38 = vrot.slane %v3274_v0, %v9359_v50  ;;  %v7012_v12 = vrot.slane %v7002_v45, %v9359_v50 }
 0x258   :  { %v7019_v48 = vrot.slane %v7003_v28, %v9359_v50  ;;  %v7026_v32 = vrot.slane %v7004_v8, %v9359_v50  ;;  %8739 = vmatprep.mubr.msk.bf16.mxu1 %vm7296_vm4, %v7001_v33  ;;  %v3289_v2 = vrot.slane %v3275_v16, %v9359_v50  ;;  %v3291_v61 = vcombine.low %v2522_v56, %v2523_v40 }
 0x259   :  { %v7033_v6 = vrot.slane %v7005_v52, %v9359_v50  ;;  %v3292_v18 = vcombine.low %v2524_v24, %v2525_v60  ;;  %7573 = vmatmul.mubr.bf16.gmra.mrb[4].mxu1 %v7411_v49  ;;  %v3293_v62 = vcombine.low %v2526_v3, %v2527_v19  ;;  %v3294_v34 = vcombine.low %v2528_v11, %v2529_v51  ;;  %v10479_v11 = vpop.permute.xlu0 %4000  ;;  %v2532_v52 = vld [vmem:[#allocation2 + $0x2a] sm:$0x1]  ;;  %v2533_v51 = vld [vmem:[#allocation2 + $0x2b] sm:$0x1]  ;;  %v3051_v19 = vld [vmem:[#allocation2 + $0x41] sm:$0x1] }
 0x25a   :  { %v7034_v37 = vcombine.low %v7012_v12, %v7019_v48  ;;  %v7051_v10 = vcombine.low %v3040_v53, %v3041_v43  ;;  %v3290_v14 = vcombine.low %v3282_v38, %v3289_v2  ;;  %v3301_v22 = vrot.slane %v3291_v61, %v9359_v50  ;;  %v10481_v33 = vpop.permute.xlu1 %4472  ;;  %v3048_v53 = vld [vmem:[#allocation2 + $0x3e] sm:$0x1]  ;;  %v3049_v43 = vld [vmem:[#allocation2 + $0x3f] sm:$0x1]  ;;  %v3050_v38 = vld [vmem:[#allocation2 + $0x40] sm:$0x1] }
 0x25b   :  { %v7035_v44 = vcombine.low %v7026_v32, %v7033_v6  ;;  %v3308_v21 = vrot.slane %v3292_v18, %v9359_v50  ;;  %v3315_v58 = vrot.slane %v3293_v62, %v9359_v50  ;;  %v3322_v41 = vrot.slane %v3294_v34, %v9359_v50  ;;  %v2534_v48 = vld [vmem:[#allocation2 + $0x2c] sm:$0x1]  ;;  %v3052_v32 = vld [vmem:[#allocation2 + $0x42] sm:$0x1]  ;;  %v3053_v2 = vld [vmem:[#allocation2 + $0x43] sm:$0x1] }
 0x25c   :  { %v7042_v42 = vrot.slane %v7034_v37, %v9359_v50  ;;  %v7052_v15 = vcombine.low %v3042_v47, %v3043_v55  ;;  %v7305_v20 = vsel %vm7296_vm4, %v3290_v14, %v10341_v4  ;;  %v7053_v57 = vcombine.low %v3044_v59, %v3045_v13  ;;  %v3054_v61 = vld [vmem:[#allocation2 + $0x44] sm:$0x1]  ;;  %v3055_v18 = vld [vmem:[#allocation2 + $0x45] sm:$0x1]  ;;  %v2535_v37 = vld [vmem:[#allocation2 + $0x2d] sm:$0x1] }
 0x25d   :  { %v7049_v54 = vrot.slane %v7035_v44, %v9359_v50  ;;  %v3323_v26 = vcombine.low %v3301_v22, %v3308_v21  ;;  %v7327_v36 = vsel %vm7321_vm5, %v7305_v20, %v10343_v1  ;;  %v3324_v45 = vcombine.low %v3315_v58, %v3322_v41  ;;  %v2536_v62 = vld [vmem:[#allocation2 + $0x2e] sm:$0x1]  ;;  %v6359_v34 = vpop.permute.xlu0 %6358  ;;  %v2530_v22 = vld [vmem:[#allocation2 + $0x28] sm:$0x1]  ;;  %v2531_v21 = vld [vmem:[#allocation2 + $0x29] sm:$0x1] }
 0x25e   :  { %v7054_v56 = vcombine.low %v3046_v39, %v3047_v9  ;;  %v7061_v40 = vrot.slane %v7051_v10, %v9359_v50  ;;  %v7344_v24 = vsel %vm7338_vm6, %v7327_v36, %v10374_v31  ;;  %v7068_v28 = vrot.slane %v7052_v15, %v9359_v50  ;;  %v6831_v9 = vpop.permute.xlu1 %6830 }
 0x25f   :  { %v7050_v0 = vcombine.low %v7042_v42, %v7049_v54  ;;  %v3331_v46 = vrot.slane %v3323_v26, %v9359_v50  ;;  %v7361_v4 = vsel %vm7355_vm7, %v7344_v24, %v10381_v30  ;;  %v3338_v8 = vrot.slane %v3324_v45, %v9359_v50 }
 0x260   :  { %v7075_v60 = vrot.slane %v7053_v57, %v9359_v50  ;;  %v7082_v1 = vrot.slane %v7054_v56, %v9359_v50  ;;  %v7378_v3 = vsel %vm7372_vm8, %v7361_v4, %v10391_v35  ;;  %v7083_v31 = vcombine.low %v7061_v40, %v7068_v28  ;;  %v3062_v28 = vld [vmem:[#allocation2 + $0x4e] sm:$0x1]  ;;  %v3063_v4 = vld [vmem:[#allocation2 + $0x4f] sm:$0x1] }
 0x261   :  { %8740 = vmatprep.mubr.msk.bf16.mxu1 %vm7296_vm4, %v7050_v0  ;;  %v3339_v16 = vcombine.low %v3331_v46, %v3338_v8  ;;  %v7395_v30 = vsel %vm7389_vm9, %v7378_v3, %v10413_v25  ;;  %v7100_v59 = vcombine.low %v3048_v53, %v3049_v43  ;;  %v7101_v13 = vcombine.low %v3050_v38, %v3051_v19  ;;  %v4945_v45 = vpop.permute.xlu0 %4944  ;;  %v3058_v46 = vld [vmem:[#allocation2 + $0x4a] sm:$0x1]  ;;  %v3057_v3 = vld [vmem:[#allocation2 + $0x49] sm:$0x1] }
 0x262   :  { %v7084_v49 = vcombine.low %v7075_v60, %v7082_v1  ;;  %v7414_v12 = vsel %vm7406_vm10, %v7395_v30, %v10437_v7  ;;  %v7091_v35 = vrot.slane %v7083_v31, %v9359_v50  ;;  %v2537_v7 = vld [vmem:[#allocation2 + $0x2f] sm:$0x1]  ;;  %v7102_v44 = vcombine.low %v3052_v32, %v3053_v2  ;;  %v3056_v1 = vld [vmem:[#allocation2 + $0x48] sm:$0x1]  ;;  %v3060_v30 = vld [vmem:[#allocation2 + $0x4c] sm:$0x1]  ;;  %v5417_v32 = vpop.permute.xlu1 %5416 }
 0x263   :  { %v7308_v6 = vsel %vm7296_vm4, %v3339_v16, %v10397_v23  ;;  %7581 = vmatmul.mubr.bf16.gmra.mrb[8].mxu1 %v7414_v12  ;;  %v3342_v23 = vcombine.low %v2534_v48, %v2535_v37  ;;  %v3341_v55 = vcombine.low %v2532_v52, %v2533_v51  ;;  %v3343_v42 = vcombine.low %v2536_v62, %v2537_v7  ;;  %v3059_v16 = vld [vmem:[#allocation2 + $0x4b] sm:$0x1]  ;;  %v2542_v37 = vld [vmem:[#allocation2 + $0x36] sm:$0x1] }
 0x264   :  { %v7098_v25 = vrot.slane %v7084_v49, %v9359_v50  ;;  %v7329_v47 = vsel %vm7321_vm5, %v7308_v6, %v10411_v27  ;;  %v7103_v27 = vcombine.low %v3054_v61, %v3055_v18  ;;  %v7110_v41 = vrot.slane %v7100_v59, %v9359_v50  ;;  %v3061_v49 = vld [vmem:[#allocation2 + $0x4d] sm:$0x1]  ;;  %v2540_v59 = vld [vmem:[#allocation2 + $0x34] sm:$0x1] }
 0x265   :  { %v7346_v10 = vsel %vm7338_vm6, %v7329_v47, %v10439_v17  ;;  %v7117_v17 = vrot.slane %v7101_v13, %v9359_v50  ;;  %v7124_v20 = vrot.slane %v7102_v44, %v9359_v50  ;;  %v3340_v26 = vcombine.low %v2530_v22, %v2531_v21  ;;  %v5889_v43 = vpop.permute.xlu0 %5888  ;;  %v2541_v13 = vld [vmem:[#allocation2 + $0x35] sm:$0x1]  ;;  %v2545_v44 = vld [vmem:[#allocation2 + $0x39] sm:$0x1] }
 0x266   :  { %v7099_v14 = vcombine.low %v7091_v35, %v7098_v25  ;;  %v7363_v39 = vsel %vm7355_vm7, %v7346_v10, %v10454_v63  ;;  %v7131_v54 = vrot.slane %v7103_v27, %v9359_v50  ;;  %v3364_v63 = vrot.slane %v3342_v23, %v9359_v50  ;;  %v2544_v23 = vld [vmem:[#allocation2 + $0x38] sm:$0x1] }
 0x267   :  { %v7380_v58 = vsel %vm7372_vm8, %v7363_v39, %v10456_v5  ;;  %v7132_v36 = vcombine.low %v7110_v41, %v7117_v17  ;;  %v3357_v5 = vrot.slane %v3341_v55, %v9359_v50  ;;  %v3371_v40 = vrot.slane %v3343_v42, %v9359_v50  ;;  %v2538_v55 = vld [vmem:[#allocation2 + $0x32] sm:$0x1]  ;;  %v2539_v39 = vld [vmem:[#allocation2 + $0x33] sm:$0x1] }
 0x268   :  { %8741 = vmatprep.mubr.msk.bf16.mxu1 %vm7296_vm4, %v7099_v14  ;;  %v7397_v15 = vsel %vm7389_vm9, %v7380_v58, %v6359_v34  ;;  %v7133_v56 = vcombine.low %v7124_v20, %v7131_v54  ;;  %v3350_v8 = vrot.slane %v3340_v26, %v9359_v50  ;;  %v7150_v51 = vcombine.low %v3058_v46, %v3059_v16  ;;  %v2543_v14 = vld [vmem:[#allocation2 + $0x37] sm:$0x1]  ;;  %v3064_v46 = vld [vmem:[#allocation2 + $0x52] sm:$0x1] }
 0x269   :  { %v7417_v57 = vsel %vm7406_vm10, %v7397_v15, %v6831_v9  ;;  %v7140_v24 = vrot.slane %v7132_v36, %v9359_v50  ;;  %v3373_v60 = vcombine.low %v3364_v63, %v3371_v40  ;;  %v7152_v53 = vcombine.low %v3062_v28, %v3063_v4  ;;  %v4003_v22 = vpop.permute.xlu1 %4002  ;;  %v3070_v40 = vld [vmem:[#allocation2 + $0x58] sm:$0x1]  ;;  %v3065_v28 = vld [vmem:[#allocation2 + $0x53] sm:$0x1]  ;;  %v3067_v4 = vld [vmem:[#allocation2 + $0x55] sm:$0x1] }
 0x26a   :  { %v7147_v0 = vrot.slane %v7133_v56, %v9359_v50  ;;  %v3372_v52 = vcombine.low %v3350_v8, %v3357_v5  ;;  %v7149_v12 = vcombine.low %v3056_v1, %v3057_v3  ;;  %v7151_v35 = vcombine.low %v3060_v30, %v3061_v49  ;;  %v3066_v5 = vld [vmem:[#allocation2 + $0x54] sm:$0x1]  ;;  %v3068_v8 = vld [vmem:[#allocation2 + $0x56] sm:$0x1] }
 0x26b   :  { %7589 = vmatmul.mubr.bf16.gmra.mrb[12].mxu1 %v7417_v57  ;;  %v3387_v38 = vrot.slane %v3373_v60, %v9359_v50  ;;  %v7166_v2 = vrot.slane %v7150_v51, %v9359_v50  ;;  %v7180_v6 = vrot.slane %v7152_v53, %v9359_v50  ;;  %v3391_v21 = vcombine.low %v2542_v37, %v2543_v14  ;;  %v3069_v60 = vld [vmem:[#allocation2 + $0x57] sm:$0x1]  ;;  %v2551_v14 = vld [vmem:[#allocation2 + $0x41] sm:$0x1] }
 0x26c   :  { %v7148_v31 = vcombine.low %v7140_v24, %v7147_v0  ;;  %v3380_v48 = vrot.slane %v3372_v52, %v9359_v50  ;;  %v7159_v19 = vrot.slane %v7149_v12, %v9359_v50  ;;  %v7173_v61 = vrot.slane %v7151_v35, %v9359_v50  ;;  %v3071_v24 = vld [vmem:[#allocation2 + $0x59] sm:$0x1] }
 0x26d   :  { %v3390_v42 = vcombine.low %v2540_v59, %v2541_v13  ;;  %v3392_v58 = vcombine.low %v2544_v23, %v2545_v44  ;;  %v3389_v15 = vcombine.low %v2538_v55, %v2539_v39  ;;  %v3413_v20 = vrot.slane %v3391_v21, %v9359_v50  ;;  %v2552_v23 = vld [vmem:[#allocation2 + $0x42] sm:$0x1]  ;;  %v2553_v44 = vld [vmem:[#allocation2 + $0x43] sm:$0x1]  ;;  %v2548_v55 = vld [vmem:[#allocation2 + $0x3e] sm:$0x1] }
 0x26e   :  { %8742 = vmatprep.mubr.msk.bf16.mxu1 %vm7296_vm4, %v7148_v31  ;;  %v3388_v25 = vcombine.low %v3380_v48, %v3387_v38  ;;  %v7181_v62 = vcombine.low %v7159_v19, %v7166_v2  ;;  %v7182_v7 = vcombine.low %v7173_v61, %v7180_v6  ;;  %v7199_v31 = vcombine.low %v3066_v5, %v3067_v4  ;;  %v2549_v39 = vld [vmem:[#allocation2 + $0x3f] sm:$0x1] }
 0x26f   :  { %v3406_v57 = vrot.slane %v3390_v42, %v9359_v50  ;;  %v3420_v36 = vrot.slane %v3392_v58, %v9359_v50  ;;  %v7201_v16 = vcombine.low %v3070_v40, %v3071_v24  ;;  %v7198_v52 = vcombine.low %v3064_v46, %v3065_v28 }
 0x270   :  { %v7311_v47 = vsel %vm7296_vm4, %v3388_v25, %v10479_v11  ;;  %v7189_v9 = vrot.slane %v7181_v62, %v9359_v50  ;;  %v7196_v11 = vrot.slane %v7182_v7, %v9359_v50  ;;  %v7200_v51 = vcombine.low %v3068_v8, %v3069_v60 }
 0x271   :  { %v7331_v34 = vsel %vm7321_vm5, %v7311_v47, %v10481_v33  ;;  %v3422_v56 = vcombine.low %v3413_v20, %v3420_v36  ;;  %v7229_v38 = vrot.slane %v7201_v16, %v9359_v50  ;;  %v7208_v48 = vrot.slane %v7198_v52, %v9359_v50  ;;  %v3074_v20 = vld [vmem:[#allocation2 + $0x5e] sm:$0x1]  ;;  %v3077_v36 = vld [vmem:[#allocation2 + $0x61] sm:$0x1] }
 0x272   :  { %v7348_v10 = vsel %vm7338_vm6, %v7331_v34, %v4945_v45  ;;  %v7197_v63 = vcombine.low %v7189_v9, %v7196_v11  ;;  %v3399_v45 = vrot.slane %v3389_v15, %v9359_v50  ;;  %v2546_v11 = vld [vmem:[#allocation2 + $0x3c] sm:$0x1]  ;;  %v3441_v42 = vcombine.low %v2552_v23, %v2553_v44  ;;  %v3073_v15 = vld [vmem:[#allocation2 + $0x5d] sm:$0x1] }
 0x273   :  { %v4475_v18 = vpop.permute.xlu0 %4474  ;;  %v7365_v27 = vsel %vm7355_vm7, %v7348_v10, %v5417_v32  ;;  %v3436_v1 = vrot.slane %v3422_v56, %v9359_v50  ;;  %v7222_v32 = vrot.slane %v7200_v51, %v9359_v50  ;;  %v3439_v58 = vcombine.low %v2548_v55, %v2549_v39  ;;  %v3079_v56 = vld [vmem:[#allocation2 + $0x63] sm:$0x1]  ;;  %v2558_v51 = vld [vmem:[#allocation2 + $0x4a] sm:$0x1] }
 0x274   :  { %v7382_v41 = vsel %vm7372_vm8, %v7365_v27, %v5889_v43  ;;  %v3421_v0 = vcombine.low %v3399_v45, %v3406_v57  ;;  %v7215_v43 = vrot.slane %v7199_v31, %v9359_v50  ;;  %v2547_v27 = vld [vmem:[#allocation2 + $0x3d] sm:$0x1]  ;;  %v3078_v45 = vld [vmem:[#allocation2 + $0x62] sm:$0x1] }
 0x275   :  { %v7231_v61 = vcombine.low %v7222_v32, %v7229_v38  ;;  %v3455_v5 = vrot.slane %v3439_v58, %v9359_v50  ;;  %v7250_v4 = vcombine.low %v3078_v45, %v3079_v56  ;;  %v2557_v38 = vld [vmem:[#allocation2 + $0x49] sm:$0x1]  ;;  %v2560_v32 = vld [vmem:[#allocation2 + $0x4c] sm:$0x1] }
 0x276   :  { %v3429_v30 = vrot.slane %v3421_v0, %v9359_v50  ;;  %v7230_v19 = vcombine.low %v7208_v48, %v7215_v43  ;;  %v2556_v43 = vld [vmem:[#allocation2 + $0x48] sm:$0x1]  ;;  %v2559_v48 = vld [vmem:[#allocation2 + $0x4b] sm:$0x1] }
 0x277   :  { %v7245_v59 = vrot.slane %v7231_v61, %v9359_v50  ;;  %v3489_v61 = vcombine.low %v2558_v51, %v2559_v48 }
 0x278   :  { %v3437_v53 = vcombine.low %v3429_v30, %v3436_v1  ;;  %v7238_v34 = vrot.slane %v7230_v19, %v9359_v50  ;;  %v7278_v30 = vrot.slane %v7250_v4, %v9359_v50 }
 0x279   :  { %v3511_v44 = vrot.slane %v3489_v61, %v9359_v50 }
 0x27a   :  { %v7314_v35 = vsel %vm7296_vm4, %v3437_v53, %v4003_v22  ;;  %v7246_v21 = vcombine.low %v7238_v34, %v7245_v59  ;;  %v3488_v34 = vcombine.low %v2556_v43, %v2557_v38 }
 0x27b   :  { %v7333_v2 = vsel %vm7321_vm5, %v7314_v35, %v4475_v18  ;;  %v2550_v18 = vld [vmem:[#allocation2 + $0x40] sm:$0x1] }
 0x27c   :  { %v6833_v33 = vpop.permute.xlu0 %6832  ;;  %v3440_v9 = vcombine.low %v2550_v18, %v2551_v14 }
 0x27f   :  { %v6361_v17 = vpop.permute.xlu1 %6360 }
 0x280   :  { %v7399_v54 = vsel %vm7389_vm9, %v7382_v41, %v6361_v17  ;;  %v3462_v41 = vrot.slane %v3440_v9, %v9359_v50  ;;  %v3072_v17 = vld [vmem:[#allocation2 + $0x5c] sm:$0x1] }
 0x281   :  { %v7420_v26 = vsel %vm7406_vm10, %v7399_v54, %v6833_v33  ;;  %v3438_v33 = vcombine.low %v2546_v11, %v2547_v27  ;;  %v3075_v54 = vld [vmem:[#allocation2 + $0x5f] sm:$0x1]  ;;  %v7247_v0 = vcombine.low %v3072_v17, %v3073_v15 }
 0x282   :  { %7597 = vmatmul.mubr.bf16.gmra.mrb[16].mxu1 %v7420_v26  ;;  %v3076_v26 = vld [vmem:[#allocation2 + $0x60] sm:$0x1]  ;;  %v7248_v46 = vcombine.low %v3074_v20, %v3075_v54 }
 0x283   :  { %8743 = vmatprep.mubr.msk.bf16.mxu1 %vm7296_vm4, %v7197_v63  ;;  %v5419_v49 = vpop.permute.xlu0 %5418  ;;  %v3469_v63 = vrot.slane %v3441_v42, %v9359_v50  ;;  %v3448_v40 = vrot.slane %v3438_v33, %v9359_v50  ;;  %v7249_v28 = vcombine.low %v3076_v26, %v3077_v36 }
 0x284   :  { %v7264_v31 = vrot.slane %v7248_v46, %v9359_v50 }
 0x285   :  { %v3471_v24 = vcombine.low %v3462_v41, %v3469_v63  ;;  %v3470_v8 = vcombine.low %v3448_v40, %v3455_v5  ;;  %v7271_v16 = vrot.slane %v7249_v28, %v9359_v50 }
 0x287   :  { %v3485_v60 = vrot.slane %v3471_v24, %v9359_v50  ;;  %v7280_v35 = vcombine.low %v7271_v16, %v7278_v30 }
 0x288   :  { %v4947_v3 = vpop.permute.xlu1 %4946 }
 0x289   :  { %v7350_v6 = vsel %vm7338_vm6, %v7333_v2, %v4947_v3  ;;  %v7257_v3 = vrot.slane %v7247_v0, %v9359_v50  ;;  %v2561_v2 = vld [vmem:[#allocation2 + $0x4d] sm:$0x1]  ;;  %v7294_v14 = vrot.slane %v7280_v35, %v9359_v50  ;;  %v10593_v0 = vld [vmem:[%s10845_s6 + $0x1] ss:$0 sm:$0xff] }
 0x28a   :  { %v7367_v37 = vsel %vm7355_vm7, %v7350_v6, %v5419_v49  ;;  %v3478_v49 = vrot.slane %v3470_v8, %v9359_v50 }
 0x28b   :  { %v10544_v25 = vpop.permute.xlu0 %4004 }
 0x28c   :  { %v3486_v53 = vcombine.low %v3478_v49, %v3485_v60 }
 0x28d   :  { %v5891_v12 = vpop.permute.xlu1 %5890 }
 0x28e   :  { %v7384_v62 = vsel %vm7372_vm8, %v7367_v37, %v5891_v12  ;;  %v7279_v12 = vcombine.low %v7257_v3, %v7264_v31  ;;  %v7317_v19 = vsel %vm7296_vm4, %v3486_v53, %v10544_v25 }
 0x291   :  { %v10546_v47 = vpop.permute.xlu1 %4476 }
 0x292   :  { %v7335_v37 = vsel %vm7321_vm5, %v7317_v19, %v10546_v47  ;;  %v3504_v47 = vrot.slane %v3488_v34, %v9359_v50 }
 0x294   :  { %v6363_v7 = vpop.permute.xlu0 %6362 }
 0x295   :  { %v7401_v13 = vsel %vm7389_vm9, %v7384_v62, %v6363_v7  ;;  %v2554_v62 = vld [vmem:[#allocation2 + $0x46] sm:$0x1]  ;;  %v2555_v7 = vld [vmem:[#allocation2 + $0x47] sm:$0x1] }
 0x296   :  { %v3487_v23 = vcombine.low %v2554_v62, %v2555_v7 }
 0x297   :  { %v6835_v10 = vpop.permute.xlu1 %6834 }
 0x298   :  { %v7423_v22 = vsel %vm7406_vm10, %v7401_v13, %v6835_v10  ;;  %v3490_v13 = vcombine.low %v2560_v32, %v2561_v2  ;;  %v7287_v10 = vrot.slane %v7279_v12, %v9359_v50  ;;  %v3497_v27 = vrot.slane %v3487_v23, %v9359_v50 }
 0x299   :  { %7605 = vmatmul.mubr.bf16.gmra.mrb[20].mxu1 %v7423_v22 }
 0x29a   :  { %8744 = vmatprep.mubr.msk.bf16.mxu1 %vm7296_vm4, %v7246_v21  ;;  %v3518_v55 = vrot.slane %v3490_v13, %v9359_v50  ;;  %v7295_v9 = vcombine.low %v7287_v10, %v7294_v14  ;;  %v3519_v33 = vcombine.low %v3497_v27, %v3504_v47  ;;  %v9028_v10 = vld [vmem:[%s10842_s3 + $0x40] sm:$0xff]  }
 0x29b   :  { %v4949_v57 = vpop.permute.xlu0 %4948  ;;  %v9029_v14 = vld [vmem:[%s10842_s3] sm:$0xff]   ;;  %8825 = vmatprep.subr.bf16.mxu1 %v9028_v10 }
 0x29c   :  { %v7352_v59 = vsel %vm7338_vm6, %v7335_v37, %v4949_v57  ;;  %v3520_v42 = vcombine.low %v3511_v44, %v3518_v55  ;;  %v3527_v17 = vrot.slane %v3519_v33, %v9359_v50  ;;  %8826 = vmatpush3.bf16.msra.mxu1 %v9029_v14 }
 0x29e   :  { %v5421_v52 = vpop.permute.xlu1 %5420  ;;  %v3534_v41 = vrot.slane %v3520_v42, %v9359_v50 }
 0x29f   :  { %v7369_v25 = vsel %vm7355_vm7, %v7352_v59, %v5421_v52 }
 0x2a0   :  { %v3535_v20 = vcombine.low %v3527_v17, %v3534_v41 }
 0x2a1   :  { %v5893_v1 = vpop.permute.xlu0 %5892 }
 0x2a2   :  { %v7386_v21 = vsel %vm7372_vm8, %v7369_v25, %v5893_v1 }
 0x2a5   :  { %v4007_v18 = vpop.permute.xlu1 %4006 }
 0x2a6   :  { %v7320_v54 = vsel %vm7296_vm4, %v3535_v20, %v4007_v18  ;;  %v9031_v20 = vld [vmem:[%s10842_s3 + $0x8] sm:$0xff]  }
 0x2ab   :  { %v4479_v6 = vpop.permute.xlu0 %4478 }
 0x2ac   :  { %v7337_v63 = vsel %vm7321_vm5, %v7320_v54, %v4479_v6  ;;  %v9032_v54 = vld [vmem:[%s10842_s3 + $0x50] sm:$0xff]  }
 0x2af   :  { %v6837_v22 = vpop.permute.xlu0 %6836 }
 0x2b2   :  { %v6365_v39 = vpop.permute.xlu1 %6364 }
 0x2b3   :  { %v7403_v11 = vsel %vm7389_vm9, %v7386_v21, %v6365_v39 }
 0x2b4   :  { %v7426_v58 = vsel %vm7406_vm10, %v7403_v11, %v6837_v22 }
 0x2b5   :  { %7613 = vmatmul.mubr.bf16.gmra.mrb[24].mxu1 %v7426_v58 }
 0x2b6   :  { %8745 = vmatprep.mubr.msk.bf16.mxu1 %vm7296_vm4, %v7295_v9  ;;  %v5423_v26 = vpop.permute.xlu0 %5422 }
 0x2b9   :  { %v4951_v15 = vpop.permute.xlu1 %4950 }
 0x2ba   :  { %v7354_v57 = vsel %vm7338_vm6, %v7337_v63, %v4951_v15  ;;  %v9030_v15 = vld [vmem:[%s10842_s3 + $0x48] sm:$0xff]  }
 0x2bb   :  { %v7371_v45 = vsel %vm7355_vm7, %v7354_v57, %v5423_v26  ;;  %8827 = vmatprep.subr.bf16.mxu1 %v9030_v15  ;;  %v9041_v15 = vld [vmem:[%s10842_s3 + $0x30] sm:$0xff]  }
 0x2bc   :  { %8828 = vmatpush3.bf16.msra.mxu1 %v9031_v20 }
 0x2bd   :  { %v5895_v36 = vpop.permute.xlu1 %5894  ;;  %8829 = vmatprep.subr.bf16.mxu1 %v9032_v54  ;;  %v9042_v54 = vld [vmem:[%s10842_s3 + $0x78] sm:$0xff]  }
 0x2be   :  { %v7388_v56 = vsel %vm7372_vm8, %v7371_v45, %v5895_v36 }
 0x2c0   :  { %v6367_v5 = vpop.permute.xlu0 %6366 }
 0x2c1   :  { %v7405_v40 = vsel %vm7389_vm9, %v7388_v56, %v6367_v5 }
 0x2c6   :  { %v6839_v24 = vpop.permute.xlu1 %6838 }
 0x2c7   :  { %v7429_v50 = vsel %vm7406_vm10, %v7405_v40, %v6839_v24 }
 0x2c8   :  { %7621 = vmatmul.mubr.bf16.gmra.mrb[28].mxu1 %v7429_v50  ;;  %v9033_v50 = vld [vmem:[%s10842_s3 + $0x10] sm:$0xff]  }
 0x2c9   :  { %8830 = vmatpush3.bf16.msra.mxu1 %v9033_v50 }
 0x322   :  { %v7566_v46 = vpop.f32.mrb[0].mxu1 }
 0x323   :  { %v7567_v28 = vadd.f32 %v10593_v0, %v7566_v46  ;;  %v7568_v4 = vpop.f32.mrb[1].mxu1 }
 0x324   :  { %v7569_v8 = vpop.f32.mrb[2].mxu1 }
 0x325   :  { %v7571_v60 = vpop.f32.mrb[3].mxu1  ;;  %v7629_v1 = vmax.f32 %v7567_v28, 0.0  ;;  %v7570_v3 = vadd.f32 %v10593_v0, %v7569_v8  ;;  %v9034_v28 = vld [vmem:[%s10842_s3 + $0x58] sm:$0xff]  }
 0x326   :  { %8831 = vmatprep.subr.bf16.mxu1 %v9034_v28 }
 0x327   :  { %v7661_v31 = vcombine.high %v7629_v1, %v7629_v1  ;;  %v7630_v16 = vmax.f32 %v7570_v3, 0.0  ;;  %v7668_v51 = vrot.slane %v7629_v1, %v9381_v29 }
 0x329   :  { %v7675_v53 = vrot.slane %v7661_v31, %v9381_v29  ;;  %v7678_v43 = vcombine.high %v7630_v16, %v7630_v16  ;;  %v7685_v38 = vrot.slane %v7630_v16, %v9381_v29  ;;  %v7676_v61 = vcombine.high %v7668_v51, %v7668_v51  ;;  %v9035_v31 = vld [vmem:[%s10842_s3 + $0x18] sm:$0xff]  }
 0x32a   :  { %8832 = vmatpush3.bf16.msra.mxu1 %v9035_v31 }
 0x32b   :  { %v7677_v37 = vcombine.high %v7675_v53, %v7675_v53  ;;  %v7692_v62 = vrot.slane %v7678_v43, %v9381_v29  ;;  %v7693_v7 = vcombine.high %v7685_v38, %v7685_v38  ;;  %v7997_v21 = vmax.f32 %v7668_v51, %v7676_v61 }
 0x32c   :  { %v7574_v30 = vpop.f32.mrb[4].mxu1 }
 0x32d   :  { %v7575_v49 = vadd.f32 %v10593_v0, %v7574_v30  ;;  %v7576_v52 = vpop.f32.mrb[5].mxu1  ;;  %v7694_v47 = vcombine.high %v7692_v62, %v7692_v62  ;;  %v7999_v55 = vmax.f32 %v7685_v38, %v7693_v7  ;;  %v7998_v9 = vmax.f32 %v7675_v53, %v7677_v37  ;;  %v9038_v37 = vld [vmem:[%s10842_s3 + $0x68] sm:$0xff]  }
 0x32e   :  { %v7577_v12 = vpop.f32.mrb[6].mxu1  ;;  %v9036_v52 = vld [vmem:[%s10842_s3 + $0x60] sm:$0xff]  }
 0x32f   :  { %v7631_v35 = vmax.f32 %v7575_v49, 0.0  ;;  %v7578_v48 = vadd.f32 %v10593_v0, %v7577_v12  ;;  %v7579_v32 = vpop.f32.mrb[7].mxu1  ;;  %v8000_v56 = vmax.f32 %v7692_v62, %v7694_v47  ;;  %8833 = vmatprep.subr.bf16.mxu1 %v9036_v52  ;;  %v9040_v47 = vld [vmem:[%s10842_s3 + $0x70] sm:$0xff]  }
 0x331   :  { %v7695_v2 = vcombine.high %v7631_v35, %v7631_v35  ;;  %v7702_v6 = vrot.slane %v7631_v35, %v9381_v29  ;;  %v7632_v19 = vmax.f32 %v7578_v48, 0.0 }
 0x333   :  { %v7709_v34 = vrot.slane %v7695_v2, %v9381_v29  ;;  %v7710_v59 = vcombine.high %v7702_v6, %v7702_v6  ;;  %v7712_v13 = vcombine.high %v7632_v19, %v7632_v19  ;;  %v7719_v18 = vrot.slane %v7632_v19, %v9381_v29  ;;  %v9037_v2 = vld [vmem:[%s10842_s3 + $0x20] sm:$0xff]  }
 0x334   :  { %8834 = vmatpush3.bf16.msra.mxu1 %v9037_v2 }
 0x335   :  { %v7711_v23 = vcombine.high %v7709_v34, %v7709_v34  ;;  %v8001_v44 = vmax.f32 %v7702_v6, %v7710_v59  ;;  %v7726_v25 = vrot.slane %v7712_v13, %v9381_v29  ;;  %v7727_v22 = vcombine.high %v7719_v18, %v7719_v18  ;;  %8835 = vmatprep.subr.bf16.mxu1 %v9038_v37 }
 0x336   :  { %v7582_v39 = vpop.f32.mrb[8].mxu1 }
 0x337   :  { %v7728_v11 = vcombine.high %v7726_v25, %v7726_v25  ;;  %v8003_v27 = vmax.f32 %v7719_v18, %v7727_v22  ;;  %v7583_v42 = vadd.f32 %v10593_v0, %v7582_v39  ;;  %v7584_v58 = vpop.f32.mrb[9].mxu1  ;;  %v8002_v33 = vmax.f32 %v7709_v34, %v7711_v23 }
 0x338   :  { %v7585_v41 = vpop.f32.mrb[10].mxu1  ;;  %v10614_v17 = vmax.f32 %v7997_v21, %v8001_v44  ;;  %v9039_v44 = vld [vmem:[%s10842_s3 + $0x28] sm:$0xff]  }
 0x339   :  { %v8030_v26 = vmax.f32 %v7998_v9, %v8002_v33  ;;  %v7586_v63 = vadd.f32 %v10593_v0, %v7585_v41  ;;  %v7587_v57 = vpop.f32.mrb[11].mxu1  ;;  %v8031_v36 = vmax.f32 %v7999_v55, %v8003_v27  ;;  %v7633_v45 = vmax.f32 %v7583_v42, 0.0  ;;  %8836 = vmatpush3.bf16.msra.mxu1 %v9039_v44 }
 0x33a   :  { %v8004_v5 = vmax.f32 %v7726_v25, %v7728_v11  ;;  %8837 = vmatprep.subr.bf16.mxu1 %v9040_v47  ;;  %v9043_v57 = vld [vmem:[%s10842_s3 + $0x38] sm:$0xff]  }
 0x33b   :  { %v8046_v40 = vpack.c.bf16 %v8030_v26, %v8030_v26  ;;  %v7634_v24 = vmax.f32 %v7586_v63, 0.0  ;;  %v7729_v4 = vcombine.high %v7633_v45, %v7633_v45  ;;  %v8047_v1 = vpack.c.bf16 %v8031_v36, %v8031_v36 }
 0x33c   :  { %v8032_v46 = vmax.f32 %v8000_v56, %v8004_v5  ;;  %v7736_v16 = vrot.slane %v7633_v45, %v9381_v29 }
 0x33d   :  { %8062 = vrot.lane.b32.xlu1 %v8046_v40, %s9102_s20  ;;  %v7746_v60 = vcombine.high %v7634_v24, %v7634_v24  ;;  %v7753_v51 = vrot.slane %v7634_v24, %v9381_v29  ;;  %v7743_v38 = vrot.slane %v7729_v4, %v9381_v29  ;;  %8838 = vmatpush3.bf16.msra.mxu1 %v9041_v15 }
 0x33e   :  { %v7590_v8 = vpop.f32.mrb[12].mxu1  ;;  %v8048_v48 = vpack.c.bf16 %v8032_v46, %v8032_v46  ;;  %v7744_v6 = vcombine.high %v7736_v16, %v7736_v16  ;;  %8839 = vmatprep.subr.bf16.mxu1 %v9042_v54 }
 0x33f   :  { %v7592_v3 = vpop.f32.mrb[13].mxu1  ;;  %v7591_v30 = vadd.f32 %v10593_v0, %v7590_v8  ;;  %v7760_v35 = vrot.slane %v7746_v60, %v9381_v29  ;;  %v7761_v62 = vcombine.high %v7753_v51, %v7753_v51  ;;  %v7745_v59 = vcombine.high %v7743_v38, %v7743_v38 }
 0x340   :  { %v7593_v49 = vpop.f32.mrb[14].mxu1  ;;  %v8005_v25 = vmax.f32 %v7736_v16, %v7744_v6 }
 0x341   :  { %8065 = vrot.lane.b32.xlu1 %v8047_v1, %s9106_s25  ;;  %v7594_v53 = vadd.f32 %v10593_v0, %v7593_v49  ;;  %v7595_v43 = vpop.f32.mrb[15].mxu1  ;;  %v7635_v12 = vmax.f32 %v7591_v30, 0.0  ;;  %v7762_v10 = vcombine.high %v7760_v35, %v7760_v35  ;;  %v8007_v55 = vmax.f32 %v7753_v51, %v7761_v62  ;;  %8840 = vmatpush3.bf16.msra.mxu1 %v9043_v57 }
 0x342   :  { %v8006_v11 = vmax.f32 %v7743_v38, %v7745_v59  ;;  %v9044_v59 = vld [vmem:[%s10842_s3 + $0xc0] sm:$0xff]  }
 0x343   :  { %v7636_v32 = vmax.f32 %v7594_v53, 0.0  ;;  %v7763_v19 = vcombine.high %v7635_v12, %v7635_v12  ;;  %v7770_v61 = vrot.slane %v7635_v12, %v9381_v29  ;;  %v8008_v33 = vmax.f32 %v7760_v35, %v7762_v10  ;;  %8847 = vmatprep.subr.bf16.mxu1 %v9044_v59 }
 0x345   :  { %8068 = vrot.lane.b32.xlu1 %v8048_v48, %s9108_s29  ;;  %v7780_v7 = vcombine.high %v7636_v32, %v7636_v32  ;;  %v7787_v34 = vrot.slane %v7636_v32, %v9381_v29  ;;  %v7777_v13 = vrot.slane %v7763_v19, %v9381_v29  ;;  %v7778_v18 = vcombine.high %v7770_v61, %v7770_v61 }
 0x347   :  { %v7794_v14 = vrot.slane %v7780_v7, %v9381_v29  ;;  %v7795_v23 = vcombine.high %v7787_v34, %v7787_v34  ;;  %v7779_v22 = vcombine.high %v7777_v13, %v7777_v13  ;;  %v8009_v21 = vmax.f32 %v7770_v61, %v7778_v18 }
 0x349   :  { %v7796_v39 = vcombine.high %v7794_v14, %v7794_v14  ;;  %v8011_v9 = vmax.f32 %v7787_v34, %v7795_v23  ;;  %v8010_v27 = vmax.f32 %v7777_v13, %v7779_v22  ;;  %v10663_v42 = vmax.f32 %v8005_v25, %v8009_v21 }
 0x34b   :  { %v8035_v58 = vmax.f32 %v8007_v55, %v8011_v9  ;;  %v8012_v41 = vmax.f32 %v7794_v14, %v7796_v39  ;;  %v8034_v20 = vmax.f32 %v8006_v11, %v8010_v27 }
 0x34d   :  { %v8036_v26 = vmax.f32 %v8008_v33, %v8012_v41  ;;  %v8050_v63 = vpack.c.bf16 %v8034_v20, %v8034_v20  ;;  %v8051_v36 = vpack.c.bf16 %v8035_v58, %v8035_v58 }
 0x34f   :  { %8071 = vrot.lane.b32.xlu0 %v8050_v63, %s9102_s20  ;;  %v8052_v24 = vpack.c.bf16 %v8036_v26, %v8036_v26 }
 0x353   :  { %8074 = vrot.lane.b32.xlu0 %v8051_v36, %s9106_s25 }
 0x355   :  { %v7598_v45 = vpop.f32.mrb[16].mxu1 }
 0x356   :  { %v7600_v56 = vpop.f32.mrb[17].mxu1  ;;  %v7599_v50 = vadd.f32 %v10593_v0, %v7598_v45 }
 0x357   :  { %v7601_v5 = vpop.f32.mrb[18].mxu1  ;;  %8077 = vrot.lane.b32.xlu0 %v8052_v24, %s9108_s29 }
 0x358   :  { %v7603_v40 = vpop.f32.mrb[19].mxu1  ;;  %v7602_v46 = vadd.f32 %v10593_v0, %v7601_v5  ;;  %v7637_v28 = vmax.f32 %v7599_v50, 0.0 }
 0x35a   :  { %v7638_v4 = vmax.f32 %v7602_v46, 0.0  ;;  %v7797_v8 = vcombine.high %v7637_v28, %v7637_v28  ;;  %v7804_v60 = vrot.slane %v7637_v28, %v9381_v29 }
 0x35c   :  { %v7814_v1 = vcombine.high %v7638_v4, %v7638_v4  ;;  %v7811_v30 = vrot.slane %v7797_v8, %v9381_v29  ;;  %v7821_v49 = vrot.slane %v7638_v4, %v9381_v29  ;;  %v7812_v38 = vcombine.high %v7804_v60, %v7804_v60 }
 0x35e   :  { %v7828_v12 = vrot.slane %v7814_v1, %v9381_v29  ;;  %v7813_v2 = vcombine.high %v7811_v30, %v7811_v30  ;;  %v7829_v6 = vcombine.high %v7821_v49, %v7821_v49  ;;  %v8013_v7 = vmax.f32 %v7804_v60, %v7812_v38 }
 0x360   :  { %v7830_v34 = vcombine.high %v7828_v12, %v7828_v12  ;;  %v8015_v23 = vmax.f32 %v7821_v49, %v7829_v6  ;;  %v8014_v44 = vmax.f32 %v7811_v30, %v7813_v2 }
 0x362   :  { %v8016_v9 = vmax.f32 %v7828_v12, %v7830_v34 }
 0x36c   :  { %v7606_v3 = vpop.f32.mrb[20].mxu1 }
 0x36d   :  { %v7607_v31 = vadd.f32 %v10593_v0, %v7606_v3  ;;  %v7608_v16 = vpop.f32.mrb[21].mxu1 }
 0x36e   :  { %v7609_v52 = vpop.f32.mrb[22].mxu1 }
 0x36f   :  { %v7639_v51 = vmax.f32 %v7607_v31, 0.0  ;;  %v7610_v53 = vadd.f32 %v10593_v0, %v7609_v52  ;;  %v7611_v43 = vpop.f32.mrb[23].mxu1 }
 0x371   :  { %v7831_v35 = vcombine.high %v7639_v51, %v7639_v51  ;;  %v7838_v48 = vrot.slane %v7639_v51, %v9381_v29  ;;  %v7640_v32 = vmax.f32 %v7610_v53, 0.0 }
 0x373   :  { %v7845_v19 = vrot.slane %v7831_v35, %v9381_v29  ;;  %v7846_v61 = vcombine.high %v7838_v48, %v7838_v48  ;;  %v7848_v37 = vcombine.high %v7640_v32, %v7640_v32  ;;  %v7855_v62 = vrot.slane %v7640_v32, %v9381_v29 }
 0x375   :  { %v7847_v13 = vcombine.high %v7845_v19, %v7845_v19  ;;  %v8017_v18 = vmax.f32 %v7838_v48, %v7846_v61  ;;  %v7862_v10 = vrot.slane %v7848_v37, %v9381_v29  ;;  %v7863_v14 = vcombine.high %v7855_v62, %v7855_v62 }
 0x377   :  { %v7864_v25 = vcombine.high %v7862_v10, %v7862_v10  ;;  %v8019_v22 = vmax.f32 %v7855_v62, %v7863_v14  ;;  %v8018_v21 = vmax.f32 %v7845_v19, %v7847_v13  ;;  %v10692_v47 = vmax.f32 %v8013_v7, %v8017_v18 }
 0x379   :  { %v8038_v55 = vmax.f32 %v8014_v44, %v8018_v21  ;;  %v8039_v39 = vmax.f32 %v8015_v23, %v8019_v22  ;;  %v8020_v11 = vmax.f32 %v7862_v10, %v7864_v25  ;;  %v9060_v23 = vld [vmem:[%s10843_s4] sm:$0xff]   ;;  %v9109_v22 = vmov 0.0  }
 0x37a   :  { %8947 = vmatprep.subr.bf16.mxu0 %v9109_v22  ;;  %8955 = vmatprep.mubr.msk.bf16.mxu0 %vm9110_vm11, %v9109_v22 }
 0x37b   :  { %v8054_v27 = vpack.c.bf16 %v8038_v55, %v8038_v55  ;;  %v8040_v58 = vmax.f32 %v8016_v9, %v8020_v11  ;;  %v8055_v33 = vpack.c.bf16 %v8039_v39, %v8039_v39  ;;  %8948 = vmatpush3.bf16.msra.mxu0 %v9060_v23 }
 0x37c   :  { %8949 = vmatprep.subr.bf16.mxu0 %v9109_v22 }
 0x37d   :  { %8080 = vrot.lane.b32.xlu1 %v8054_v27, %s9102_s20  ;;  %v8056_v41 = vpack.c.bf16 %v8040_v58, %v8040_v58  ;;  %v8049_v58 = vpack.c.bf16 %v10663_v42, %v10663_v42 }
 0x381   :  { %8083 = vrot.lane.b32.xlu1 %v8055_v33, %s9106_s25  ;;  %v8045_v33 = vpack.c.bf16 %v10614_v17, %v10614_v17  ;;  %v9046_v17 = vld [vmem:[%s10842_s3 + $0xc8] sm:$0xff]  }
 0x385   :  { %8086 = vrot.lane.b32.xlu1 %v8056_v41, %s9108_s29 }
 0x388   :  { %v7614_v15 = vpop.f32.mrb[24].mxu1 }
 0x389   :  { %v7616_v20 = vpop.f32.mrb[25].mxu1  ;;  %v7615_v63 = vadd.f32 %v10593_v0, %v7614_v15 }
 0x38a   :  { %v7617_v54 = vpop.f32.mrb[26].mxu1 }
 0x38b   :  { %v7619_v26 = vpop.f32.mrb[27].mxu1  ;;  %v7618_v57 = vadd.f32 %v10593_v0, %v7617_v54  ;;  %v7641_v36 = vmax.f32 %v7615_v63, 0.0  ;;  %v9045_v63 = vld [vmem:[%s10842_s3 + $0x80] sm:$0xff]  }
 0x38d   :  { %v7642_v45 = vmax.f32 %v7618_v57, 0.0  ;;  %v7865_v56 = vcombine.high %v7641_v36, %v7641_v36  ;;  %v7872_v5 = vrot.slane %v7641_v36, %v9381_v29 }
 0x38f   :  { %v7882_v40 = vcombine.high %v7642_v45, %v7642_v45  ;;  %v7879_v28 = vrot.slane %v7865_v56, %v9381_v29  ;;  %v7889_v4 = vrot.slane %v7642_v45, %v9381_v29  ;;  %v7880_v31 = vcombine.high %v7872_v5, %v7872_v5  ;;  %v9047_v45 = vld [vmem:[%s10842_s3 + $0x88] sm:$0xff]   ;;  %v9048_v56 = vld [vmem:[%s10842_s3 + $0xd0] sm:$0xff]  }
 0x391   :  { %v7896_v16 = vrot.slane %v7882_v40, %v9381_v29  ;;  %v7881_v51 = vcombine.high %v7879_v28, %v7879_v28  ;;  %v7897_v53 = vcombine.high %v7889_v4, %v7889_v4  ;;  %v8021_v48 = vmax.f32 %v7872_v5, %v7880_v31  ;;  %v9049_v5 = vld [vmem:[%s10842_s3 + $0x90] sm:$0xff]   ;;  %v9050_v40 = vld [vmem:[%s10842_s3 + $0xd8] sm:$0xff]  }
 0x393   :  { %v7898_v32 = vcombine.high %v7896_v16, %v7896_v16  ;;  %v8023_v61 = vmax.f32 %v7889_v4, %v7897_v53  ;;  %v8022_v37 = vmax.f32 %v7879_v28, %v7881_v51  ;;  %v9054_v28 = vld [vmem:[%s10842_s3 + $0xe8] sm:$0xff]   ;;  %v8053_v51 = vpack.c.bf16 %v10692_v47, %v10692_v47  ;;  %v9063_v47 = vld [vmem:[%s10843_s4 + $0x18] sm:$0xff]  }
 0x394   :  { %v9055_v4 = vld [vmem:[%s10842_s3 + $0xa8] sm:$0xff]  }
 0x395   :  { %v8024_v10 = vmax.f32 %v7896_v16, %v7898_v32 }
 0x39b   :  { %v7622_v24 = vpop.f32.mrb[28].mxu1 }
 0x39c   :  { %v7623_v50 = vadd.f32 %v10593_v0, %v7622_v24  ;;  %v7624_v46 = vpop.f32.mrb[29].mxu1  ;;  %v9051_v24 = vld [vmem:[%s10842_s3 + $0x98] sm:$0xff]  }
 0x39d   :  { %v7625_v8 = vpop.f32.mrb[30].mxu1  ;;  %v9053_v46 = vld [vmem:[%s10842_s3 + $0xa0] sm:$0xff]  }
 0x39e   :  { %v7643_v60 = vmax.f32 %v7623_v50, 0.0  ;;  %v7626_v1 = vadd.f32 %v10593_v0, %v7625_v8  ;;  %v7627_v3 = vpop.f32.mrb[31].mxu1  ;;  %v9052_v50 = vld [vmem:[%s10842_s3 + $0xe0] sm:$0xff]   ;;  %v9056_v8 = vld [vmem:[%s10842_s3 + $0xf0] sm:$0xff]  }
 0x39f   :  { %v9059_v3 = vld [vmem:[%s10842_s3 + $0xb8] sm:$0xff]  }
 0x3a0   :  { %v7899_v30 = vcombine.high %v7643_v60, %v7643_v60  ;;  %v7906_v49 = vrot.slane %v7643_v60, %v9381_v29  ;;  %v7644_v52 = vmax.f32 %v7626_v1, 0.0  ;;  %v9057_v60 = vld [vmem:[%s10842_s3 + $0xb0] sm:$0xff]   ;;  %v9058_v1 = vld [vmem:[%s10842_s3 + $0xf8] sm:$0xff]  }
 0x3a2   :  { %v7913_v43 = vrot.slane %v7899_v30, %v9381_v29  ;;  %v7914_v38 = vcombine.high %v7906_v49, %v7906_v49  ;;  %v7916_v12 = vcombine.high %v7644_v52, %v7644_v52  ;;  %v7923_v35 = vrot.slane %v7644_v52, %v9381_v29 }
 0x3a4   :  { %v7915_v2 = vcombine.high %v7913_v43, %v7913_v43  ;;  %v8025_v0 = vmax.f32 %v7906_v49, %v7914_v38  ;;  %v7930_v6 = vrot.slane %v7916_v12, %v9381_v29  ;;  %v7931_v19 = vcombine.high %v7923_v35, %v7923_v35  ;;  %v9061_v29 = vld [vmem:[%s10843_s4 + $0x8] sm:$0xff]   ;;  %v9062_v38 = vld [vmem:[%s10843_s4 + $0x10] sm:$0xff]  }
 0x3a5   :  { %8950 = vmatpush3.bf16.msra.mxu0 %v9061_v29 }
 0x3a6   :  { %v7932_v62 = vcombine.high %v7930_v6, %v7930_v6  ;;  %v8027_v7 = vmax.f32 %v7923_v35, %v7931_v19  ;;  %v8026_v34 = vmax.f32 %v7913_v43, %v7915_v2  ;;  %v10709_v59 = vmax.f32 %v8021_v48, %v8025_v0  ;;  %8951 = vmatprep.subr.bf16.mxu0 %v9109_v22  ;;  %v9065_v19 = vld [vmem:[%s10844_s5 + $0x8] sm:$0xff]  }
 0x3a8   :  { %v8042_v13 = vmax.f32 %v8022_v37, %v8026_v34  ;;  %v8043_v18 = vmax.f32 %v8023_v61, %v8027_v7  ;;  %v8028_v14 = vmax.f32 %v7930_v6, %v7932_v62  ;;  %v8057_v52 = vpack.c.bf16 %v10709_v59, %v10709_v59  ;;  %v9064_v6 = vld [vmem:[%s10844_s5] sm:$0xff]  }
 0x3a9   :  { %8952 = vmatpush3.bf16.msra.mxu0 %v9062_v38  ;;  %v8746_v59 = vld [vmem:[%s10845_s6 + $0x2] ss:$0 sm:$0xff] }
 0x3aa   :  { %v8058_v44 = vpack.c.bf16 %v8042_v13, %v8042_v13  ;;  %v8044_v25 = vmax.f32 %v8024_v10, %v8028_v14  ;;  %v8059_v21 = vpack.c.bf16 %v8043_v18, %v8043_v18  ;;  %8953 = vmatprep.subr.bf16.mxu0 %v9109_v22 }
 0x3ac   :  { %8089 = vrot.lane.b32.xlu0 %v8058_v44, %s9102_s20  ;;  %v8060_v55 = vpack.c.bf16 %v8044_v25, %v8044_v25 }
 0x3ad   :  { %8954 = vmatpush3.bf16.msra.mxu0 %v9063_v47 }
 0x3af   :  { %v8063_v39 = vpop.permute.xlu1 %8062 }
 0x3b0   :  { %8092 = vrot.lane.b32.xlu0 %v8059_v21, %s9106_s25  ;;  %v8099_v20 = vsel %vm7321_vm5, %v8045_v33, %v8063_v39  ;;  %v9067_v39 = vld [vmem:[%s10844_s5 + $0x18] sm:$0xff]  }
 0x3b3   :  { %v8066_v11 = vpop.permute.xlu1 %8065 }
 0x3b4   :  { %8095 = vrot.lane.b32.xlu0 %v8060_v55, %s9108_s29  ;;  %v8101_v57 = vsel %vm7355_vm7, %v8099_v20, %v8066_v11  ;;  %v9066_v55 = vld [vmem:[%s10844_s5 + $0x10] sm:$0xff]   ;;  %s9111_s5 = smov [#allocation3]  }
 0x3b7   :  { %v8069_v41 = vpop.permute.xlu1 %8068 }
 0x3b8   :  { %v8103_v42 = vsel %vm7389_vm9, %v8101_v57, %v8069_v41 }
 0x3c1   :  { %v8072_v9 = vpop.permute.xlu0 %8071 }
 0x3c2   :  { %v8107_v15 = vsel %vm7321_vm5, %v8049_v58, %v8072_v9  ;;  %v8779_v9 = vld [vmem:[%s10845_s6 + $0x3] ss:$0 sm:$0xff] }
 0x3c5   :  { %v8075_v27 = vpop.permute.xlu0 %8074 }
 0x3c6   :  { %v8109_v54 = vsel %vm7355_vm7, %v8107_v15, %v8075_v27 }
 0x3c9   :  { %v8078_v26 = vpop.permute.xlu0 %8077 }
 0x3ca   :  { %v8111_v36 = vsel %vm7389_vm9, %v8109_v54, %v8078_v26  ;;  %v8785_v54 = vld [vmem:[%s10845_s6 + $0x4] ss:$0 sm:$0xff]  ;;  %s8653_s6 = sshll.u32 %s9111_s5, 4  ;;  %s8654_s6 = int_to_ptr.vmem [resolvable:$true] %s8653_s6 }
 0x3cb   :  { %8422 = vmatprep.mubr.bf16.mxu1 %v8111_v36  ;;  %s9074_s14 = scalar_lea.vmem %s8654_s6, 32  ;;  %p9079_p1 = scmp.lt.s32.totalorder %s8654_s6, %s8654_s6 }
 0x3cc   :  { %8423 = vmatmul.mubr.bf16.vlgmr.msra.gmra.mrb[32].mxu1 %v8103_v42  ;;  %p9075_p0 = scmp.ne.s32.totalorder %s8654_s6, %s9074_s14  ;;  %p9080_p2 = scmp.lt.s32.totalorder %s9074_s14, %s9074_s14 }
 0x3cd   :  { %8848 = vmatpush3.bf16.msra.mxu1 %v9045_v63 }
 0x3ce   :  { %8849 = vmatprep.subr.bf16.mxu1 %v9046_v17  ;;  %p9081_p3 = por %p9080_p2, %p9079_p1 }
 0x3d0   :  { %p9082_p4 = pnand %p9081_p3, %p9075_p0 }
 0x3d1   :  { %8850 = vmatpush3.bf16.msra.mxu1 %v9047_v45 }
 0x3d2   :  { %8851 = vmatprep.subr.bf16.mxu1 %v9048_v56 }
 0x3d5   :  { %8852 = vmatpush3.bf16.msra.mxu1 %v9049_v5 }
 0x3d6   :  { %8853 = vmatprep.subr.bf16.mxu1 %v9050_v40 }
 0x3d9   :  { %8854 = vmatpush3.bf16.msra.mxu1 %v9051_v24 }
 0x3da   :  { %8855 = vmatprep.subr.bf16.mxu1 %v9052_v50 }
 0x3dd   :  { %8856 = vmatpush3.bf16.msra.mxu1 %v9053_v46 }
 0x3de   :  { %8857 = vmatprep.subr.bf16.mxu1 %v9054_v28 }
 0x3e1   :  { %8858 = vmatpush3.bf16.msra.mxu1 %v9055_v4 }
 0x3e2   :  { %8859 = vmatprep.subr.bf16.mxu1 %v9056_v8 }
 0x3e5   :  { %8860 = vmatpush3.bf16.msra.mxu1 %v9057_v60 }
 0x3e6   :  { %8861 = vmatprep.subr.bf16.mxu1 %v9058_v1 }
 0x3e9   :  { %8862 = vmatpush3.bf16.msra.mxu1 %v9059_v3 }
 0x3ea   :  { %8959 = vmatprep.subr.bf16.mxu1 %v9109_v22 }
 0x3ef   :  { %v8081_v31 = vpop.permute.xlu1 %8080 }
 0x3f0   :  { %v8115_v12 = vsel %vm7321_vm5, %v8053_v51, %v8081_v31 }
 0x3f3   :  { %v8084_v30 = vpop.permute.xlu1 %8083 }
 0x3f4   :  { %v8117_v32 = vsel %vm7355_vm7, %v8115_v12, %v8084_v30 }
 0x3f7   :  { %v8087_v53 = vpop.permute.xlu1 %8086 }
 0x3f8   :  { %v8119_v0 = vsel %vm7389_vm9, %v8117_v32, %v8087_v53 }
 0x41e   :  { %v8090_v16 = vpop.permute.xlu0 %8089 }
 0x41f   :  { %v8123_v43 = vsel %vm7321_vm5, %v8057_v52, %v8090_v16 }
 0x422   :  { %v8093_v49 = vpop.permute.xlu0 %8092 }
 0x423   :  { %v8125_v35 = vsel %vm7355_vm7, %v8123_v43, %v8093_v49 }
 0x426   :  { %v8096_v48 = vpop.permute.xlu0 %8095 }
 0x427   :  { %v8127_v2 = vsel %vm7389_vm9, %v8125_v35, %v8096_v48 }
 0x428   :  { %8462 = vmatprep.mubr.bf16.mxu1 %v8127_v2 }
 0x429   :  { %8463 = vmatmul.mubr.bf16.vlgmr.msra.gmra.mrb[36].mxu1 %v8119_v0 }
 0x42a   :  { %8967 = vmatprep.mubr.msk.bf16.mxu1 %vm9110_vm11, %v9109_v22  ;;  %8960 = vmatpush3.bf16.msra.mxu1 %v9064_v6 }
 0x42b   :  { %8961 = vmatprep.subr.bf16.mxu1 %v9109_v22 }
 0x42e   :  { %8962 = vmatpush3.bf16.msra.mxu1 %v9065_v19 }
 0x42f   :  { %8963 = vmatprep.subr.bf16.mxu1 %v9109_v22 }
 0x432   :  { %8964 = vmatpush3.bf16.msra.mxu1 %v9066_v55 }
 0x433   :  { %8965 = vmatprep.subr.bf16.mxu1 %v9109_v22 }
 0x436   :  { %8966 = vmatpush3.bf16.msra.mxu1 %v9067_v39 }
 0x49f   :  { %v8841_v61 = vpop.f32.mrb[32].mxu1 }
 0x4a0   :  { %v8842_v37 = vpop.f32.mrb[33].mxu1 }
 0x4a1   :  { %v8843_v62 = vadd.f32 %v8842_v37, %v8841_v61  ;;  %v8844_v7 = vpop.f32.mrb[34].mxu1 }
 0x4a2   :  { %v8845_v34 = vpop.f32.mrb[35].mxu1 }
 0x4a3   :  { %v8425_v10 = vadd.f32 %v8843_v62, %v8746_v59 }
 0x4fc   :  { %v8863_v13 = vpop.f32.mrb[36].mxu1 }
 0x4fd   :  { %v8864_v18 = vpop.f32.mrb[37].mxu1 }
 0x4fe   :  { %v8865_v14 = vadd.f32 %v8864_v18, %v8863_v13  ;;  %v8866_v23 = vpop.f32.mrb[38].mxu1 }
 0x4ff   :  { %v8867_v44 = vpop.f32.mrb[39].mxu1 }
 0x500   :  { %v8465_v25 = vadd.f32 %v8865_v14, %v8425_v10 }
 0x502   :  { %v8470_v29 = vmax.f32 %v8465_v25, 0.0 }
 0x504   :  { %v8471_v21 = vpack.c.bf16 %v8470_v29, %v8470_v29 }
 0x506   :  { %8956 = vmatmul.mubr.msk.bf16.vlgmr.msra.gmra.mrb[64].mxu0 %vm7355_vm7, %v8471_v21 }
 0x5d9   :  { %v8546_v11 = vpop.f32.mrb[64].mxu0 }
 0x5da   :  { %v8547_v27 = vadd.f32 %v8779_v9, %v8546_v11  ;;  %v8957_v58 = vpop.f32.mrb[65].mxu0 }
 0x5db   :  { %v8549_v33 = vpop.f32.mrb[66].mxu0 }
 0x5dc   :  { %v8552_v41 = vmax.f32 %v8547_v27, 0.0  ;;  %v8958_v15 = vpop.f32.mrb[67].mxu0 }
 0x5de   :  { %v8553_v20 = vpack.c.bf16 %v8552_v41, %v8552_v41 }
 0x5e0   :  { %8968 = vmatmul.mubr.msk.bf16.vlgmr.msra.gmra.mrb[40].mxu1 %vm7355_vm7, %v8553_v20 }
 0x6b3   :  { %v8628_v26 = vpop.f32.mrb[40].mxu1 }
 0x6b4   :  { %v8629_v22 = vadd.f32 %v8785_v54, %v8628_v26  ;;  %v8969_v63 = vpop.f32.mrb[41].mxu1 }
 0x6b5   :  { %v8631_v57 = vpop.f32.mrb[42].mxu1 }
 0x6b6   :  { %v8970_v36 = vpop.f32.mrb[43].mxu1  ;;  %v8635_v17 = vsel %vm8634_vm12, %v8629_v22, -inf }
 0x6b7   :  { %8636 = vmax.xlane.f32.xlu0 %v8635_v17 }
 0x744   :  { %v8637_v42 = vpop.xlane.xlu0 %8636 }
 0x745   :  { %v8638_v45 = vsub.f32 %v8629_v22, %v8637_v42 }
 0x747   :  { %v8639_v56 = vmul.f32 1.442695, %v8638_v45 }
 0x749   :  { %9068 = vpow2.f32 %v8639_v56 }
 0x753   :  { %v9069_v5 = vpop.eup %9068 }
 0x754   :  { %v8641_v40 = vsel %vm8634_vm12, %v9069_v5, 0.0 }
 0x755   :  { %8642 = vadd.xlane.f32.xlu1 %v8641_v40 }
 0x7e2   :  { %v8643_v24 = vpop.xlane.xlu1 %8642 }
 0x7e3   :  { %9070 = vrcp.f32 %v8643_v24 }
 0x7ed   :  { %v9071_v50 = vpop.eup %9070 }
 0x7ee   :  { %v8645_v46 = vmul.f32 %v9071_v50, %v9069_v5 }
 0x7f0   :  { %8646 = vst.msk [vmem:[#allocation3] sm:$0x3] %vm8634_vm12, %v8645_v46 }
 0x7f1   :  { %9085 = shalt.err (!%p9082_p4)
}
 0x7f2   :  { %s9086_s17 = scalar_lea.hbm %s10846_s7, 32 }
 0x7f3   :  { %p9087_p5 = scmp.ne.s32.totalorder %s10846_s7, %s9086_s17  ;;  %p9090_p6 = scmp.lt.u32.totalorder %s9086_s17, %s10846_s7 }
 0x7f5   :  { %p9092_p7 = pnand %p9090_p6, %p9087_p5 }
 0x7f7   :  { %9095 = shalt.err (!%p9092_p7)
}
 0x7f8   :  { %8656 = dma.vmem_to_hbm [thread:$0]  %s8654_s6, 32, %s10846_s7, [#allocation4]  }
 0x7f9   :  { %9096 = dma.done.wait [#allocation4], 32  }
 0x7fa   :  { %9097 = vsyncadd [#allocation4], 4294967264 }
 0x7fb   :  { %8660 = vsyncpa [#allocation4], 1 }

</bundles_post_ra>
